<compile_context>
chip_gen: v5e
topology: v5e:2x2
jax: 0.10.0
libtpu: 0.0.40
codegen_flags: <defaults>
</compile_context>

<pallas_src>
import functools

import jax
import jax.numpy as jnp
from jax.experimental import pallas as pl
from jax.experimental.pallas import tpu as pltpu

LANE = 128      # channel dims kept lane-dense (multiples of 128) end-to-end
SUBLANE = 16    # M padding granularity for bf16 sublane packing


def _round_up(x, m):
    return (x + m - 1) // m * m


def _pad_lane(c):
    return _round_up(c, LANE)


# ----------------------------------------------------------------------------
# Pallas kernels
# ----------------------------------------------------------------------------
def _mm_bn_kernel(x_ref, w_ref, s_ref, b_ref, o_ref, acc_ref, *, relu):
    """Tiled matmul + folded BN (+ ReLU).  grid = (M tiles, K tiles), K innermost."""
    @pl.when(pl.program_id(1) == 0)
    def _init():
        acc_ref[...] = jnp.zeros_like(acc_ref)

    acc_ref[...] += jnp.dot(x_ref[...], w_ref[...], preferred_element_type=jnp.float32)

    @pl.when(pl.program_id(1) == pl.num_programs(1) - 1)
    def _epilogue():
        y = acc_ref[...] * s_ref[...] + b_ref[...]
        if relu:
            y = jnp.maximum(y, 0.0)
        o_ref[...] = y.astype(o_ref.dtype)


def _mm_bn_res_kernel(x_ref, w_ref, s_ref, b_ref, r_ref, o_ref, acc_ref):
    """Tiled matmul + folded BN + residual add + ReLU (bottleneck tail, ReLU after add)."""
    @pl.when(pl.program_id(1) == 0)
    def _init():
        acc_ref[...] = jnp.zeros_like(acc_ref)

    acc_ref[...] += jnp.dot(x_ref[...], w_ref[...], preferred_element_type=jnp.float32)

    @pl.when(pl.program_id(1) == pl.num_programs(1) - 1)
    def _epilogue():
        y = acc_ref[...] * s_ref[...] + b_ref[...] + r_ref[...].astype(jnp.float32)
        y = jnp.maximum(y, 0.0)
        o_ref[...] = y.astype(o_ref.dtype)


def _tap_conv_kernel(x_ref, w_ref, s_ref, b_ref, o_ref, *, k, stride, Wo, Mimg, relu):
    """k x k conv with the tap gather done in VMEM (no im2col tensor in HBM).

    x_ref: (stride*k, 1, Hph*Wo, Cin) f32 row-phase slab views of ONE image.
    w_ref: (k*k, Cin, Cout) bf16 per-tap weights.
    All slice offsets are multiples of 8 by construction (f32 tile aligned).
    """
    cout = o_ref.shape[-1]
    acc = jnp.zeros((Mimg, cout), jnp.float32)
    for di in range(k):
        for dj in range(k):
            v = (di % stride) * k + dj
            off = (di // stride) * Wo
            lhs = x_ref[v, 0, off:off + Mimg, :].astype(jnp.bfloat16)
            acc = acc + jnp.dot(lhs, w_ref[di * k + dj],
                                preferred_element_type=jnp.float32)
    y = acc * s_ref[...] + b_ref[...]
    if relu:
        y = jnp.maximum(y, 0.0)
    o_ref[0] = y.astype(o_ref.dtype)


def _maxpool_kernel(x_ref, o_ref, *, k, stride, Wo, Mimg):
    """3x3/s2 max-pool from row-phase slab views (no (k*k, M, C) stack in HBM)."""
    res = None
    for di in range(k):
        for dj in range(k):
            v = (di % stride) * k + dj
            off = (di // stride) * Wo
            t = x_ref[v, 0, off:off + Mimg, :]
            res = t if res is None else jnp.maximum(res, t)
    o_ref[0] = res.astype(o_ref.dtype)


# ----------------------------------------------------------------------------
# Pallas wrappers
# ----------------------------------------------------------------------------
def _compiler_params(sem):
    return pltpu.CompilerParams(dimension_semantics=sem,
                                vmem_limit_bytes=32 * 1024 * 1024)


def _fused_matmul(x2d, w2d, scale, bias, *, residual=None, relu=True,
                  out_dtype=jnp.bfloat16):
    """out = act((x2d @ w2d) * scale + bias [+ residual]); bf16 MXU operands, f32 epilogue."""
    M, K = x2d.shape
    Kw, Np = w2d.shape
    assert K == Kw and K % LANE == 0 and Np % LANE == 0

    if M > 128:
        Mp, TM = _round_up(M, 256), 256
    else:
        Mp = _round_up(M, SUBLANE)
        TM = Mp
    TK = 256 if K % 256 == 0 else LANE
    nk = K // TK

    if Mp != M:
        x2d = jnp.pad(x2d, ((0, Mp - M), (0, 0)))
        if residual is not None:
            residual = jnp.pad(residual, ((0, Mp - M), (0, 0)))

    in_specs = [
        pl.BlockSpec((TM, TK), lambda i, kk: (i, kk)),
        pl.BlockSpec((TK, Np), lambda i, kk: (kk, 0)),
        pl.BlockSpec((1, Np), lambda i, kk: (0, 0)),
        pl.BlockSpec((1, Np), lambda i, kk: (0, 0)),
    ]
    args = [x2d, w2d, scale, bias]
    if residual is not None:
        in_specs.append(pl.BlockSpec((TM, Np), lambda i, kk: (i, 0)))
        args.append(residual)
        kernel = _mm_bn_res_kernel
    else:
        kernel = functools.partial(_mm_bn_kernel, relu=relu)

    out = pl.pallas_call(
        kernel,
        grid=(Mp // TM, nk),
        in_specs=in_specs,
        out_specs=pl.BlockSpec((TM, Np), lambda i, kk: (i, 0)),
        out_shape=jax.ShapeDtypeStruct((Mp, Np), out_dtype),
        scratch_shapes=[pltpu.VMEM((TM, Np), jnp.float32)],
        compiler_params=_compiler_params(("parallel", "arbitrary")),
        cost_estimate=pl.CostEstimate(
            flops=2 * Mp * K * Np,
            transcendentals=0,
            bytes_accessed=Mp * K * 2 + K * Np * 2 + Mp * Np * 2),
    )(*args)
    return out[:M] if Mp != M else out


def _im2col(x, k, stride, pad):
    # Fallback patch extraction (stem + tiny/misaligned 3x3 convs only).
    n, h, w, c = x.shape
    xp = jnp.pad(x, ((0, 0), (pad, pad), (pad, pad), (0, 0)))
    ho = (h + 2 * pad - k) // stride + 1
    wo = (w + 2 * pad - k) // stride + 1
    cols = []
    for di in range(k):
        for dj in range(k):
            cols.append(xp[:, di:di + stride * (ho - 1) + 1:stride,
                           dj:dj + stride * (wo - 1) + 1:stride, :])
    patches = jnp.stack(cols, axis=3)          # (N, Ho, Wo, k*k, C)
    return patches.reshape(n * ho * wo, k * k * c), (n, ho, wo)


def _tap_views(x, k, stride, pad, ho, wo, pad_value=0.0):
    """Row-phase slab views (stride*k, N, Hph*Wo, C) f32 -- ~stride/k of im2col bytes.

    View (a, dj)[r, c_sp] == x_padded[a + stride*r, dj + stride*c_sp]; within the kernel each
    tap (di, dj) is the contiguous row window [ (di//stride)*Wo , +Ho*Wo ) of view (di%stride, dj).
    """
    n, h, w, c = x.shape
    xp = jnp.pad(x.astype(jnp.float32), ((0, 0), (pad, pad), (pad, pad), (0, 0)),
                 constant_values=pad_value)
    hph = ho + (k - 1) // stride
    views = []
    for a in range(stride):
        for dj in range(k):
            v = xp[:, a::stride, dj::stride, :][:, :hph, :wo, :]
            dh, dw = hph - v.shape[1], wo - v.shape[2]
            if dh > 0 or dw > 0:
                v = jnp.pad(v, ((0, 0), (0, max(dh, 0)), (0, max(dw, 0)), (0, 0)),
                            constant_values=pad_value)
            views.append(v.reshape(n, hph * wo, c))
    return jnp.stack(views, axis=0), hph


def conv1x1_bn(x, w, scale, bias, *, stride=1, relu=True, residual=None):
    # 1x1 conv = pure matmul; strided 1x1 subsamples spatially in glue (no im2col ever).
    if stride > 1:
        x = x[:, ::stride, ::stride, :]
    n, h, ww, c = x.shape
    cout = w.shape[1]
    r2d = None if residual is None else residual.reshape(n * h * ww, cout)
    y = _fused_matmul(x.reshape(n * h * ww, c), w, scale, bias,
                      residual=r2d, relu=relu)
    return y.reshape(n, h, ww, cout)


def conv3x3_bn(x, w_taps, scale, bias, *, stride=1, relu=True):
    n, h, ww, c = x.shape
    k, pad = 3, 1
    ho = (h + 2 * pad - k) // stride + 1
    wo = (ww + 2 * pad - k) // stride + 1
    cout = w_taps.shape[-1]
    mimg = ho * wo

    # Fast path: in-kernel tap gather (needs 8-aligned row windows & lane-dense channels).
    if wo % 8 == 0 and c % LANE == 0:
        xv, hph = _tap_views(x, k, stride, pad, ho, wo)
        kernel = functools.partial(_tap_conv_kernel, k=k, stride=stride,
                                   Wo=wo, Mimg=mimg, relu=relu)
        out = pl.pallas_call(
            kernel,
            grid=(n,),
            in_specs=[
                pl.BlockSpec((stride * k, 1, hph * wo, c), lambda b: (0, b, 0, 0)),
                pl.BlockSpec((k * k, c, cout), lambda b: (0, 0, 0)),
                pl.BlockSpec((1, cout), lambda b: (0, 0)),
                pl.BlockSpec((1, cout), lambda b: (0, 0)),
            ],
            out_specs=pl.BlockSpec((1, mimg, cout), lambda b: (b, 0, 0)),
            out_shape=jax.ShapeDtypeStruct((n, mimg, cout), x.dtype),
            compiler_params=_compiler_params(("parallel",)),
            cost_estimate=pl.CostEstimate(
                flops=2 * n * mimg * k * k * c * cout,
                transcendentals=0,
                bytes_accessed=xv.size * 4 + w_taps.size * 2 + n * mimg * cout * 2),
        )(xv, w_taps, scale, bias)
        return out.reshape(n, ho, wo, cout)

    # Fallback (tiny / strided activations here): glue im2col feeding the tiled matmul kernel.
    patches, _ = _im2col(x, k, stride, pad)
    y = _fused_matmul(patches, w_taps.reshape(k * k * c, cout), scale, bias, relu=relu)
    return y.reshape(n, ho, wo, cout)


def maxpool_3x3_s2(x):
    # MaxPool2d(kernel_size=3, stride=2, padding=1), x: NHWC (post-ReLU, lane-dense C)
    n, h, ww, c = x.shape
    k, stride, pad = 3, 2, 1
    ho = (h + 2 * pad - k) // stride + 1
    wo = (ww + 2 * pad - k) // stride + 1
    mimg = ho * wo
    # Holds for the stem output at these shapes; general halo tiling left as a TODO above.
    assert wo % 8 == 0 and c % LANE == 0
    xv, hph = _tap_views(x, k, stride, pad, ho, wo, pad_value=-jnp.inf)
    kernel = functools.partial(_maxpool_kernel, k=k, stride=stride, Wo=wo, Mimg=mimg)
    out = pl.pallas_call(
        kernel,
        grid=(n,),
        in_specs=[pl.BlockSpec((stride * k, 1, hph * wo, c), lambda b: (0, b, 0, 0))],
        out_specs=pl.BlockSpec((1, mimg, c), lambda b: (b, 0, 0)),
        out_shape=jax.ShapeDtypeStruct((n, mimg, c), x.dtype),
        compiler_params=_compiler_params(("parallel",)),
    )(xv)
    return out.reshape(n, ho, wo, c)


# ----------------------------------------------------------------------------
# Deterministic parameter init (synthetic; weights pre-padded/reshaped/cast ONCE)
# ----------------------------------------------------------------------------
def _fold_bn(key, c, c_pad, eps=1e-5):
    kg, kb, km, kv = jax.random.split(key, 4)
    gamma = 1.0 + 0.1 * jax.random.normal(kg, (c,), jnp.float32)
    beta = 0.1 * jax.random.normal(kb, (c,), jnp.float32)
    mean = 0.1 * jax.random.normal(km, (c,), jnp.float32)
    var = jax.random.uniform(kv, (c,), jnp.float32, minval=0.5, maxval=1.5)
    scale = gamma / jnp.sqrt(var + eps)     # eval-mode BN folded into scale/bias
    bias = beta - mean * scale
    sp = jnp.zeros((1, c_pad), jnp.float32).at[0, :c].set(scale)
    bp = jnp.zeros((1, c_pad), jnp.float32).at[0, :c].set(bias)
    return sp, bp


def _init_w1x1(key, cin, cout):
    w = jax.random.normal(key, (cin, cout), jnp.float32) * (cin ** -0.5)
    wp = jnp.zeros((_pad_lane(cin), _pad_lane(cout)), jnp.float32)
    wp = wp.at[:cin, :cout].set(w)
    return wp.astype(jnp.bfloat16)


def _init_w3x3(key, cin, cout):
    w = jax.random.normal(key, (3, 3, cin, cout), jnp.float32) * ((9 * cin) ** -0.5)
    wp = jnp.zeros((3, 3, _pad_lane(cin), _pad_lane(cout)), jnp.float32)
    wp = wp.at[:, :, :cin, :cout].set(w)
    return wp.reshape(9, _pad_lane(cin), _pad_lane(cout)).astype(jnp.bfloat16)


def _init_stem_w(key, cin, cout):
    k = 7
    w = jax.random.normal(key, (k, k, cin, cout), jnp.float32) * ((k * k * cin) ** -0.5)
    kk = k * k * cin
    wp = jnp.zeros((_round_up(kk, LANE), _pad_lane(cout)), jnp.float32)
    wp = wp.at[:kk, :cout].set(w.reshape(kk, cout))
    return wp.astype(jnp.bfloat16)


def init_bottleneck(key, inplanes, planes, stride, expansion=4):
    keys = jax.random.split(key, 8)
    p = {
        "w1": _init_w1x1(keys[0], inplanes, planes),
        "bn1": _fold_bn(keys[1], planes, _pad_lane(planes)),
        "w2": _init_w3x3(keys[2], planes, planes),
        "bn2": _fold_bn(keys[3], planes, _pad_lane(planes)),
        "w3": _init_w1x1(keys[4], planes, planes * expansion),
        "bn3": _fold_bn(keys[5], planes * expansion, _pad_lane(planes * expansion)),
        "stride": stride,   # static python int (params closed over, not traced)
    }
    if stride != 1 or inplanes != planes * expansion:
        p["wd"] = _init_w1x1(keys[6], inplanes, planes * expansion)
        p["bnd"] = _fold_bn(keys[7], planes * expansion, _pad_lane(planes * expansion))
    return p


def init_feature_extractor(key, in_ch=3, base=16, blocks=(3, 4, 6)):
    # ResNet-50 structure (Bottleneck x (3,4,6)) with scaled-down channel widths.
    expansion = 4
    keys = jax.random.split(key, 2 + len(blocks))
    params = {
        "conv1_w": _init_stem_w(keys[0], in_ch, base),              # (256, 128) bf16
        "bn1": _fold_bn(keys[1], base, _pad_lane(base)),
    }
    inplanes = base
    planes_list = tuple(base * (2 ** i) for i in range(len(blocks)))
    strides = (1, 2, 2)
    layers = []
    for li, (nblk, planes, stride) in enumerate(zip(blocks, planes_list, strides)):
        lkeys = jax.random.split(keys[2 + li], nblk)
        blks = []
        for bi in range(nblk):
            blks.append(init_bottleneck(lkeys[bi], inplanes, planes,
                                        stride if bi == 0 else 1))
            inplanes = planes * expansion
        layers.append(blks)
    params["layers"] = layers
    params["out_channels"] = tuple(p * expansion for p in planes_list)
    return params


# ----------------------------------------------------------------------------
# Forward pass (mirrors FeatureExtractor.forward)
# ----------------------------------------------------------------------------
def bottleneck_forward(x, p):
    s1, b1 = p["bn1"]
    s2, b2 = p["bn2"]
    s3, b3 = p["bn3"]
    out = conv1x1_bn(x, p["w1"], s1, b1, stride=1, relu=True)
    out = conv3x3_bn(out, p["w2"], s2, b2, stride=p["stride"], relu=True)
    if "wd" in p:
        sd, bd = p["bnd"]
        identity = conv1x1_bn(x, p["wd"], sd, bd, stride=p["stride"], relu=False)
    else:
        identity = x
    # conv3 + bn3 + residual add + relu fused in one tiled Pallas kernel
    return conv1x1_bn(out, p["w3"], s3, b3, stride=1, relu=True, residual=identity)


def feature_extractor_forward(params, x_nchw):
    # x: (N, C, H, W) like PyTorch; compute in NHWC/bf16; return NCHW f32 tuple (out1, out2, out3)
    x = jnp.transpose(x_nchw, (0, 2, 3, 1)).astype(jnp.bfloat16)
    # stem: conv 7x7/s2/p3 + bn + relu (glue im2col once; K padded to 256 to match init weight)
    patches, (n, ho, wo) = _im2col(x, 7, 2, 3)
    kp = params["conv1_w"].shape[0]
    patches = jnp.pad(patches, ((0, 0), (0, kp - patches.shape[1])))
    s1, b1 = params["bn1"]
    x = _fused_matmul(patches, params["conv1_w"], s1, b1, relu=True)
    x = x.reshape(n, ho, wo, -1)
    x = maxpool_3x3_s2(x)
    outs = []
    for blks in params["layers"]:                                   # layer1, layer2, layer3
        for p in blks:
            x = bottleneck_forward(x, p)
        outs.append(x)
    to_nchw = lambda t, c: jnp.transpose(t[..., :c].astype(jnp.float32), (0, 3, 1, 2))
    return tuple(to_nchw(t, c) for t, c in zip(outs, params["out_channels"]))


if __name__ == "__main__":
    key = jax.random.PRNGKey(0)
    pkey, xkey = jax.random.split(key)

    # Small, ResNet-50-shaped backbone: base width 16 (instead of 64), blocks (3, 4, 6).
    params = init_feature_extractor(pkey, in_ch=3, base=16, blocks=(3, 4, 6))

    x = jax.random.normal(xkey, (2, 3, 32, 32), jnp.float32)  # NCHW input

    fwd = jax.jit(functools.partial(feature_extractor_forward, params))
    out1, out2, out3 = fwd(x)
    jax.block_until_ready((out1, out2, out3))

    assert out1.shape == (2, 64, 8, 8), out1.shape    # layer1 output (stride 4)
    assert out2.shape == (2, 128, 4, 4), out2.shape   # layer2 output (stride 8)
    assert out3.shape == (2, 256, 2, 2), out3.shape   # layer3 output (stride 16)
    assert bool(jnp.all(jnp.isfinite(out1)))
    assert bool(jnp.all(jnp.isfinite(out2)))
    assert bool(jnp.all(jnp.isfinite(out3)))

    print("KERNEL_OK")
</pallas_src>

<mosaic_0001>
module attributes {stable_mosaic.version = 11 : i64} {
  func.func @_mm_bn_kernel(%arg0: i32, %arg1: i32, %arg2: memref<256x256xbf16, #tpu.memory_space<vmem>>, %arg3: memref<256x128xbf16, #tpu.memory_space<vmem>>, %arg4: memref<1x128xf32, #tpu.memory_space<vmem>>, %arg5: memref<1x128xf32, #tpu.memory_space<vmem>>, %arg6: memref<256x128xbf16, #tpu.memory_space<vmem>>, %arg7: memref<256x128xf32, #tpu.memory_space<vmem>>) attributes {dimension_semantics = [#tpu.dimension_semantics<parallel>, #tpu.dimension_semantics<arbitrary>], iteration_bounds = array<i64: 2, 1>, scalar_prefetch = 0 : i64, scratch_operands = 1 : i64, tpu.core_type = #tpu.core_type<tc>, window_params = [{transform_indices = @transform_0, window_bounds = array<i64: 256, 256>}, {transform_indices = @transform_1, window_bounds = array<i64: 256, 128>}, {pipeline_mode = #tpu.pipeline_mode<synchronous>, transform_indices = @transform_2, window_bounds = array<i64: 1, 128>}, {pipeline_mode = #tpu.pipeline_mode<synchronous>, transform_indices = @transform_3, window_bounds = array<i64: 1, 128>}, {transform_indices = @transform_4, window_bounds = array<i64: 256, 128>}]} {
    %c0_i32 = arith.constant 0 : i32
    %0 = arith.cmpi eq, %arg1, %c0_i32 : i32
    %1 = arith.extui %0 : i1 to i32
    %c0_i32_0 = arith.constant 0 : i32
    %2 = arith.cmpi ne, %1, %c0_i32_0 : i32
    scf.if %2 {
      %cst_10 = arith.constant 0.000000e+00 : f32
      %12 = vector.broadcast %cst_10 : f32 to vector<256x128xf32>
      %c0_11 = arith.constant 0 : index
      %c0_12 = arith.constant 0 : index
      %13 = vector.load %arg7[%c0_11, %c0_12] : memref<256x128xf32, #tpu.memory_space<vmem>>, vector<256x128xf32>
      tpu.vector_store %arg7[%c0_11, %c0_12], %12 {strides = array<i32>} : memref<256x128xf32, #tpu.memory_space<vmem>>, vector<256x128xf32>,
    } else {
    }
    %c0 = arith.constant 0 : index
    %c0_1 = arith.constant 0 : index
    %3 = vector.load %arg7[%c0, %c0_1] : memref<256x128xf32, #tpu.memory_space<vmem>>, vector<256x128xf32>
    %c0_2 = arith.constant 0 : index
    %c0_3 = arith.constant 0 : index
    %4 = vector.load %arg2[%c0_2, %c0_3] : memref<256x256xbf16, #tpu.memory_space<vmem>>, vector<256x256xbf16>
    %c0_4 = arith.constant 0 : index
    %c0_5 = arith.constant 0 : index
    %5 = vector.load %arg3[%c0_4, %c0_5] : memref<256x128xbf16, #tpu.memory_space<vmem>>, vector<256x128xbf16>
    %cst = arith.constant dense<0.000000e+00> : vector<256x128xf32>
    %6 = tpu.matmul %4, %5, %cst {dimension_numbers = #tpu.dot_dimension_numbers<[1], [0], [0], [1], [0, 0, 1, 1], [], []>} : vector<256x256xbf16>, vector<256x128xbf16>, vector<256x128xf32> -> vector<256x128xf32>
    %7 = arith.addf %3, %6 : vector<256x128xf32>
    %c0_6 = arith.constant 0 : index
    %c0_7 = arith.constant 0 : index
    %8 = vector.load %arg7[%c0_6, %c0_7] : memref<256x128xf32, #tpu.memory_space<vmem>>, vector<256x128xf32>
    tpu.vector_store %arg7[%c0_6, %c0_7], %7 {strides = array<i32>} : memref<256x128xf32, #tpu.memory_space<vmem>>, vector<256x128xf32>,
    %c0_i32_8 = arith.constant 0 : i32
    %9 = arith.cmpi eq, %arg1, %c0_i32_8 : i32
    %10 = arith.extui %9 : i1 to i32
    %c0_i32_9 = arith.constant 0 : i32
    %11 = arith.cmpi ne, %10, %c0_i32_9 : i32
    scf.if %11 {
      %c0_10 = arith.constant 0 : index
      %c0_11 = arith.constant 0 : index
      %12 = vector.load %arg7[%c0_10, %c0_11] : memref<256x128xf32, #tpu.memory_space<vmem>>, vector<256x128xf32>
      %c0_12 = arith.constant 0 : index
      %c0_13 = arith.constant 0 : index
      %13 = vector.load %arg4[%c0_12, %c0_13] : memref<1x128xf32, #tpu.memory_space<vmem>>, vector<1x128xf32>
      %14 = vector.broadcast %13 : vector<1x128xf32> to vector<256x128xf32>
      %15 = arith.mulf %12, %14 : vector<256x128xf32>
      %c0_14 = arith.constant 0 : index
      %c0_15 = arith.constant 0 : index
      %16 = vector.load %arg5[%c0_14, %c0_15] : memref<1x128xf32, #tpu.memory_space<vmem>>, vector<1x128xf32>
      %17 = vector.broadcast %16 : vector<1x128xf32> to vector<256x128xf32>
      %18 = arith.addf %15, %17 : vector<256x128xf32>
      %cst_16 = arith.constant 0.000000e+00 : f32
      %19 = vector.broadcast %cst_16 : f32 to vector<256x128xf32>
      %20 = arith.maximumf %18, %19 : vector<256x128xf32>
      %21 = arith.truncf %20 : vector<256x128xf32> to vector<256x128xbf16>
      %c0_17 = arith.constant 0 : index
      %c0_18 = arith.constant 0 : index
      %22 = vector.load %arg6[%c0_17, %c0_18] : memref<256x128xbf16, #tpu.memory_space<vmem>>, vector<256x128xbf16>
      tpu.vector_store %arg6[%c0_17, %c0_18], %21 {strides = array<i32>} : memref<256x128xbf16, #tpu.memory_space<vmem>>, vector<256x128xbf16>,
    } else {
    }
    return
  }
  func.func @transform_0(%arg0: i32, %arg1: i32) -> (i32, i32) {
    %c0_i32 = arith.constant 0 : i32
    return %arg0, %arg1 : i32, i32
  }
  func.func @transform_1(%arg0: i32, %arg1: i32) -> (i32, i32) {
    %c0_i32 = arith.constant 0 : i32
    %c0_i32_0 = arith.constant 0 : i32
    return %arg1, %c0_i32 : i32, i32
  }
  func.func @transform_2(%arg0: i32, %arg1: i32) -> (i32, i32) {
    %c0_i32 = arith.constant 0 : i32
    %c0_i32_0 = arith.constant 0 : i32
    %c0_i32_1 = arith.constant 0 : i32
    return %c0_i32, %c0_i32_0 : i32, i32
  }
  func.func @transform_3(%arg0: i32, %arg1: i32) -> (i32, i32) {
    %c0_i32 = arith.constant 0 : i32
    %c0_i32_0 = arith.constant 0 : i32
    %c0_i32_1 = arith.constant 0 : i32
    return %c0_i32, %c0_i32_0 : i32, i32
  }
  func.func @transform_4(%arg0: i32, %arg1: i32) -> (i32, i32) {
    %c0_i32 = arith.constant 0 : i32
    %c0_i32_0 = arith.constant 0 : i32
    return %arg0, %c0_i32 : i32, i32
  }
}

module attributes {stable_mosaic.version = 11 : i64} {
  func.func @_maxpool_kernel(%arg0: i32, %arg1: memref<6x1x72x128xf32, #tpu.memory_space<vmem>>, %arg2: memref<1x64x128xbf16, #tpu.memory_space<vmem>>) attributes {dimension_semantics = [#tpu.dimension_semantics<parallel>], iteration_bounds = array<i64: 2>, scalar_prefetch = 0 : i64, scratch_operands = 0 : i64, tpu.core_type = #tpu.core_type<tc>, window_params = [{transform_indices = @transform_0, window_bounds = array<i64: 6, 1, 72, 128>}, {transform_indices = @transform_1, window_bounds = array<i64: 1, 64, 128>}]} {
    %c0 = arith.constant 0 : index
    %c0_0 = arith.constant 0 : index
    %c0_1 = arith.constant 0 : index
    %c0_2 = arith.constant 0 : index
    %0 = vector.load %arg1[%c0, %c0_0, %c0_1, %c0_2] : memref<6x1x72x128xf32, #tpu.memory_space<vmem>>, vector<1x1x64x128xf32>
    %1 = vector.shape_cast %0 : vector<1x1x64x128xf32> to vector<64x128xf32>
    %c1 = arith.constant 1 : index
    %c0_3 = arith.constant 0 : index
    %c0_4 = arith.constant 0 : index
    %c0_5 = arith.constant 0 : index
    %2 = vector.load %arg1[%c1, %c0_3, %c0_4, %c0_5] : memref<6x1x72x128xf32, #tpu.memory_space<vmem>>, vector<1x1x64x128xf32>
    %3 = vector.shape_cast %2 : vector<1x1x64x128xf32> to vector<64x128xf32>
    %4 = arith.maximumf %1, %3 : vector<64x128xf32>
    %c2 = arith.constant 2 : index
    %c0_6 = arith.constant 0 : index
    %c0_7 = arith.constant 0 : index
    %c0_8 = arith.constant 0 : index
    %5 = vector.load %arg1[%c2, %c0_6, %c0_7, %c0_8] : memref<6x1x72x128xf32, #tpu.memory_space<vmem>>, vector<1x1x64x128xf32>
    %6 = vector.shape_cast %5 : vector<1x1x64x128xf32> to vector<64x128xf32>
    %7 = arith.maximumf %4, %6 : vector<64x128xf32>
    %c3 = arith.constant 3 : index
    %c0_9 = arith.constant 0 : index
    %c0_10 = arith.constant 0 : index
    %c0_11 = arith.constant 0 : index
    %8 = vector.load %arg1[%c3, %c0_9, %c0_10, %c0_11] : memref<6x1x72x128xf32, #tpu.memory_space<vmem>>, vector<1x1x64x128xf32>
    %9 = vector.shape_cast %8 : vector<1x1x64x128xf32> to vector<64x128xf32>
    %10 = arith.maximumf %7, %9 : vector<64x128xf32>
    %c4 = arith.constant 4 : index
    %c0_12 = arith.constant 0 : index
    %c0_13 = arith.constant 0 : index
    %c0_14 = arith.constant 0 : index
    %11 = vector.load %arg1[%c4, %c0_12, %c0_13, %c0_14] : memref<6x1x72x128xf32, #tpu.memory_space<vmem>>, vector<1x1x64x128xf32>
    %12 = vector.shape_cast %11 : vector<1x1x64x128xf32> to vector<64x128xf32>
    %13 = arith.maximumf %10, %12 : vector<64x128xf32>
    %c5 = arith.constant 5 : index
    %c0_15 = arith.constant 0 : index
    %c0_16 = arith.constant 0 : index
    %c0_17 = arith.constant 0 : index
    %14 = vector.load %arg1[%c5, %c0_15, %c0_16, %c0_17] : memref<6x1x72x128xf32, #tpu.memory_space<vmem>>, vector<1x1x64x128xf32>
    %15 = vector.shape_cast %14 : vector<1x1x64x128xf32> to vector<64x128xf32>
    %16 = arith.maximumf %13, %15 : vector<64x128xf32>
    %c0_18 = arith.constant 0 : index
    %c0_19 = arith.constant 0 : index
    %c8 = arith.constant 8 : index
    %c0_20 = arith.constant 0 : index
    %17 = vector.load %arg1[%c0_18, %c0_19, %c8, %c0_20] : memref<6x1x72x128xf32, #tpu.memory_space<vmem>>, vector<1x1x64x128xf32>
    %18 = vector.shape_cast %17 : vector<1x1x64x128xf32> to vector<64x128xf32>
    %19 = arith.maximumf %16, %18 : vector<64x128xf32>
    %c1_21 = arith.constant 1 : index
    %c0_22 = arith.constant 0 : index
    %c8_23 = arith.constant 8 : index
    %c0_24 = arith.constant 0 : index
    %20 = vector.load %arg1[%c1_21, %c0_22, %c8_23, %c0_24] : memref<6x1x72x128xf32, #tpu.memory_space<vmem>>, vector<1x1x64x128xf32>
    %21 = vector.shape_cast %20 : vector<1x1x64x128xf32> to vector<64x128xf32>
    %22 = arith.maximumf %19, %21 : vector<64x128xf32>
    %c2_25 = arith.constant 2 : index
    %c0_26 = arith.constant 0 : index
    %c8_27 = arith.constant 8 : index
    %c0_28 = arith.constant 0 : index
    %23 = vector.load %arg1[%c2_25, %c0_26, %c8_27, %c0_28] : memref<6x1x72x128xf32, #tpu.memory_space<vmem>>, vector<1x1x64x128xf32>
    %24 = vector.shape_cast %23 : vector<1x1x64x128xf32> to vector<64x128xf32>
    %25 = arith.maximumf %22, %24 : vector<64x128xf32>
    %26 = arith.truncf %25 : vector<64x128xf32> to vector<64x128xbf16>
    %c0_29 = arith.constant 0 : index
    %c0_30 = arith.constant 0 : index
    %c0_31 = arith.constant 0 : index
    %27 = vector.load %arg2[%c0_29, %c0_30, %c0_31] : memref<1x64x128xbf16, #tpu.memory_space<vmem>>, vector<1x64x128xbf16>
    %28 = vector.shape_cast %27 : vector<1x64x128xbf16> to vector<64x128xbf16>
    %29 = vector.shape_cast %26 : vector<64x128xbf16> to vector<1x64x128xbf16>
    tpu.vector_store %arg2[%c0_29, %c0_30, %c0_31], %29 {strides = array<i32>} : memref<1x64x128xbf16, #tpu.memory_space<vmem>>, vector<1x64x128xbf16>,
    return
  }
  func.func @transform_0(%arg0: i32) -> (i32, i32, i32, i32) {
    %c0_i32 = arith.constant 0 : i32
    %c0_i32_0 = arith.constant 0 : i32
    %c0_i32_1 = arith.constant 0 : i32
    %c0_i32_2 = arith.constant 0 : i32
    return %c0_i32, %arg0, %c0_i32_0, %c0_i32_1 : i32, i32, i32, i32
  }
  func.func @transform_1(%arg0: i32) -> (i32, i32, i32) {
    %c0_i32 = arith.constant 0 : i32
    %c0_i32_0 = arith.constant 0 : i32
    %c0_i32_1 = arith.constant 0 : i32
    return %arg0, %c0_i32, %c0_i32_0 : i32, i32, i32
  }
}

module attributes {stable_mosaic.version = 11 : i64} {
  func.func @_mm_bn_kernel(%arg0: i32, %arg1: i32, %arg2: memref<128x128xbf16, #tpu.memory_space<vmem>>, %arg3: memref<128x128xbf16, #tpu.memory_space<vmem>>, %arg4: memref<1x128xf32, #tpu.memory_space<vmem>>, %arg5: memref<1x128xf32, #tpu.memory_space<vmem>>, %arg6: memref<128x128xbf16, #tpu.memory_space<vmem>>, %arg7: memref<128x128xf32, #tpu.memory_space<vmem>>) attributes {dimension_semantics = [#tpu.dimension_semantics<parallel>, #tpu.dimension_semantics<arbitrary>], iteration_bounds = array<i64: 1, 1>, scalar_prefetch = 0 : i64, scratch_operands = 1 : i64, tpu.core_type = #tpu.core_type<tc>, window_params = [{transform_indices = @transform_0, window_bounds = array<i64: 128, 128>}, {transform_indices = @transform_1, window_bounds = array<i64: 128, 128>}, {pipeline_mode = #tpu.pipeline_mode<synchronous>, transform_indices = @transform_2, window_bounds = array<i64: 1, 128>}, {pipeline_mode = #tpu.pipeline_mode<synchronous>, transform_indices = @transform_3, window_bounds = array<i64: 1, 128>}, {transform_indices = @transform_4, window_bounds = array<i64: 128, 128>}]} {
    %c0_i32 = arith.constant 0 : i32
    %0 = arith.cmpi eq, %arg1, %c0_i32 : i32
    %1 = arith.extui %0 : i1 to i32
    %c0_i32_0 = arith.constant 0 : i32
    %2 = arith.cmpi ne, %1, %c0_i32_0 : i32
    scf.if %2 {
      %cst_10 = arith.constant 0.000000e+00 : f32
      %12 = vector.broadcast %cst_10 : f32 to vector<128x128xf32>
      %c0_11 = arith.constant 0 : index
      %c0_12 = arith.constant 0 : index
      %13 = vector.load %arg7[%c0_11, %c0_12] : memref<128x128xf32, #tpu.memory_space<vmem>>, vector<128x128xf32>
      tpu.vector_store %arg7[%c0_11, %c0_12], %12 {strides = array<i32>} : memref<128x128xf32, #tpu.memory_space<vmem>>, vector<128x128xf32>,
    } else {
    }
    %c0 = arith.constant 0 : index
    %c0_1 = arith.constant 0 : index
    %3 = vector.load %arg7[%c0, %c0_1] : memref<128x128xf32, #tpu.memory_space<vmem>>, vector<128x128xf32>
    %c0_2 = arith.constant 0 : index
    %c0_3 = arith.constant 0 : index
    %4 = vector.load %arg2[%c0_2, %c0_3] : memref<128x128xbf16, #tpu.memory_space<vmem>>, vector<128x128xbf16>
    %c0_4 = arith.constant 0 : index
    %c0_5 = arith.constant 0 : index
    %5 = vector.load %arg3[%c0_4, %c0_5] : memref<128x128xbf16, #tpu.memory_space<vmem>>, vector<128x128xbf16>
    %cst = arith.constant dense<0.000000e+00> : vector<128x128xf32>
    %6 = tpu.matmul %4, %5, %cst {dimension_numbers = #tpu.dot_dimension_numbers<[1], [0], [0], [1], [0, 0, 1, 1], [], []>} : vector<128x128xbf16>, vector<128x128xbf16>, vector<128x128xf32> -> vector<128x128xf32>
    %7 = arith.addf %3, %6 : vector<128x128xf32>
    %c0_6 = arith.constant 0 : index
    %c0_7 = arith.constant 0 : index
    %8 = vector.load %arg7[%c0_6, %c0_7] : memref<128x128xf32, #tpu.memory_space<vmem>>, vector<128x128xf32>
    tpu.vector_store %arg7[%c0_6, %c0_7], %7 {strides = array<i32>} : memref<128x128xf32, #tpu.memory_space<vmem>>, vector<128x128xf32>,
    %c0_i32_8 = arith.constant 0 : i32
    %9 = arith.cmpi eq, %arg1, %c0_i32_8 : i32
    %10 = arith.extui %9 : i1 to i32
    %c0_i32_9 = arith.constant 0 : i32
    %11 = arith.cmpi ne, %10, %c0_i32_9 : i32
    scf.if %11 {
      %c0_10 = arith.constant 0 : index
      %c0_11 = arith.constant 0 : index
      %12 = vector.load %arg7[%c0_10, %c0_11] : memref<128x128xf32, #tpu.memory_space<vmem>>, vector<128x128xf32>
      %c0_12 = arith.constant 0 : index
      %c0_13 = arith.constant 0 : index
      %13 = vector.load %arg4[%c0_12, %c0_13] : memref<1x128xf32, #tpu.memory_space<vmem>>, vector<1x128xf32>
      %14 = vector.broadcast %13 : vector<1x128xf32> to vector<128x128xf32>
      %15 = arith.mulf %12, %14 : vector<128x128xf32>
      %c0_14 = arith.constant 0 : index
      %c0_15 = arith.constant 0 : index
      %16 = vector.load %arg5[%c0_14, %c0_15] : memref<1x128xf32, #tpu.memory_space<vmem>>, vector<1x128xf32>
      %17 = vector.broadcast %16 : vector<1x128xf32> to vector<128x128xf32>
      %18 = arith.addf %15, %17 : vector<128x128xf32>
      %cst_16 = arith.constant 0.000000e+00 : f32
      %19 = vector.broadcast %cst_16 : f32 to vector<128x128xf32>
      %20 = arith.maximumf %18, %19 : vector<128x128xf32>
      %21 = arith.truncf %20 : vector<128x128xf32> to vector<128x128xbf16>
      %c0_17 = arith.constant 0 : index
      %c0_18 = arith.constant 0 : index
      %22 = vector.load %arg6[%c0_17, %c0_18] : memref<128x128xbf16, #tpu.memory_space<vmem>>, vector<128x128xbf16>
      tpu.vector_store %arg6[%c0_17, %c0_18], %21 {strides = array<i32>} : memref<128x128xbf16, #tpu.memory_space<vmem>>, vector<128x128xbf16>,
    } else {
    }
    return
  }
  func.func @transform_0(%arg0: i32, %arg1: i32) -> (i32, i32) {
    %c0_i32 = arith.constant 0 : i32
    return %arg0, %arg1 : i32, i32
  }
  func.func @transform_1(%arg0: i32, %arg1: i32) -> (i32, i32) {
    %c0_i32 = arith.constant 0 : i32
    %c0_i32_0 = arith.constant 0 : i32
    return %arg1, %c0_i32 : i32, i32
  }
  func.func @transform_2(%arg0: i32, %arg1: i32) -> (i32, i32) {
    %c0_i32 = arith.constant 0 : i32
    %c0_i32_0 = arith.constant 0 : i32
    %c0_i32_1 = arith.constant 0 : i32
    return %c0_i32, %c0_i32_0 : i32, i32
  }
  func.func @transform_3(%arg0: i32, %arg1: i32) -> (i32, i32) {
    %c0_i32 = arith.constant 0 : i32
    %c0_i32_0 = arith.constant 0 : i32
    %c0_i32_1 = arith.constant 0 : i32
    return %c0_i32, %c0_i32_0 : i32, i32
  }
  func.func @transform_4(%arg0: i32, %arg1: i32) -> (i32, i32) {
    %c0_i32 = arith.constant 0 : i32
    %c0_i32_0 = arith.constant 0 : i32
    return %arg0, %c0_i32 : i32, i32
  }
}

module attributes {stable_mosaic.version = 11 : i64} {
  func.func @_tap_conv_kernel(%arg0: i32, %arg1: memref<3x1x80x128xf32, #tpu.memory_space<vmem>>, %arg2: memref<9x128x128xbf16, #tpu.memory_space<vmem>>, %arg3: memref<1x128xf32, #tpu.memory_space<vmem>>, %arg4: memref<1x128xf32, #tpu.memory_space<vmem>>, %arg5: memref<1x64x128xbf16, #tpu.memory_space<vmem>>) attributes {dimension_semantics = [#tpu.dimension_semantics<parallel>], iteration_bounds = array<i64: 2>, scalar_prefetch = 0 : i64, scratch_operands = 0 : i64, tpu.core_type = #tpu.core_type<tc>, window_params = [{transform_indices = @transform_0, window_bounds = array<i64: 3, 1, 80, 128>}, {pipeline_mode = #tpu.pipeline_mode<synchronous>, transform_indices = @transform_1, window_bounds = array<i64: 9, 128, 128>}, {pipeline_mode = #tpu.pipeline_mode<synchronous>, transform_indices = @transform_2, window_bounds = array<i64: 1, 128>}, {pipeline_mode = #tpu.pipeline_mode<synchronous>, transform_indices = @transform_3, window_bounds = array<i64: 1, 128>}, {transform_indices = @transform_4, window_bounds = array<i64: 1, 64, 128>}]} {
    %cst = arith.constant 0.000000e+00 : f32
    %0 = vector.broadcast %cst : f32 to vector<64x128xf32>
    %c0 = arith.constant 0 : index
    %c0_0 = arith.constant 0 : index
    %c0_1 = arith.constant 0 : index
    %c0_2 = arith.constant 0 : index
    %1 = vector.load %arg1[%c0, %c0_0, %c0_1, %c0_2] : memref<3x1x80x128xf32, #tpu.memory_space<vmem>>, vector<1x1x64x128xf32>
    %2 = vector.shape_cast %1 : vector<1x1x64x128xf32> to vector<64x128xf32>
    %3 = arith.truncf %2 : vector<64x128xf32> to vector<64x128xbf16>
    %c0_3 = arith.constant 0 : index
    %c0_4 = arith.constant 0 : index
    %c0_5 = arith.constant 0 : index
    %4 = vector.load %arg2[%c0_3, %c0_4, %c0_5] : memref<9x128x128xbf16, #tpu.memory_space<vmem>>, vector<1x128x128xbf16>
    %5 = vector.shape_cast %4 : vector<1x128x128xbf16> to vector<128x128xbf16>
    %cst_6 = arith.constant dense<0.000000e+00> : vector<64x128xf32>
    %6 = tpu.matmul %3, %5, %cst_6 {dimension_numbers = #tpu.dot_dimension_numbers<[1], [0], [0], [1], [0, 0, 1, 1], [], []>} : vector<64x128xbf16>, vector<128x128xbf16>, vector<64x128xf32> -> vector<64x128xf32>
    %7 = arith.addf %0, %6 : vector<64x128xf32>
    %c1 = arith.constant 1 : index
    %c0_7 = arith.constant 0 : index
    %c0_8 = arith.constant 0 : index
    %c0_9 = arith.constant 0 : index
    %8 = vector.load %arg1[%c1, %c0_7, %c0_8, %c0_9] : memref<3x1x80x128xf32, #tpu.memory_space<vmem>>, vector<1x1x64x128xf32>
    %9 = vector.shape_cast %8 : vector<1x1x64x128xf32> to vector<64x128xf32>
    %10 = arith.truncf %9 : vector<64x128xf32> to vector<64x128xbf16>
    %c1_10 = arith.constant 1 : index
    %c0_11 = arith.constant 0 : index
    %c0_12 = arith.constant 0 : index
    %11 = vector.load %arg2[%c1_10, %c0_11, %c0_12] : memref<9x128x128xbf16, #tpu.memory_space<vmem>>, vector<1x128x128xbf16>
    %12 = vector.shape_cast %11 : vector<1x128x128xbf16> to vector<128x128xbf16>
    %cst_13 = arith.constant dense<0.000000e+00> : vector<64x128xf32>
    %13 = tpu.matmul %10, %12, %cst_13 {dimension_numbers = #tpu.dot_dimension_numbers<[1], [0], [0], [1], [0, 0, 1, 1], [], []>} : vector<64x128xbf16>, vector<128x128xbf16>, vector<64x128xf32> -> vector<64x128xf32>
    %14 = arith.addf %7, %13 : vector<64x128xf32>
    %c2 = arith.constant 2 : index
    %c0_14 = arith.constant 0 : index
    %c0_15 = arith.constant 0 : index
    %c0_16 = arith.constant 0 : index
    %15 = vector.load %arg1[%c2, %c0_14, %c0_15, %c0_16] : memref<3x1x80x128xf32, #tpu.memory_space<vmem>>, vector<1x1x64x128xf32>
    %16 = vector.shape_cast %15 : vector<1x1x64x128xf32> to vector<64x128xf32>
    %17 = arith.truncf %16 : vector<64x128xf32> to vector<64x128xbf16>
    %c2_17 = arith.constant 2 : index
    %c0_18 = arith.constant 0 : index
    %c0_19 = arith.constant 0 : index
    %18 = vector.load %arg2[%c2_17, %c0_18, %c0_19] : memref<9x128x128xbf16, #tpu.memory_space<vmem>>, vector<1x128x128xbf16>
    %19 = vector.shape_cast %18 : vector<1x128x128xbf16> to vector<128x128xbf16>
    %cst_20 = arith.constant dense<0.000000e+00> : vector<64x128xf32>
    %20 = tpu.matmul %17, %19, %cst_20 {dimension_numbers = #tpu.dot_dimension_numbers<[1], [0], [0], [1], [0, 0, 1, 1], [], []>} : vector<64x128xbf16>, vector<128x128xbf16>, vector<64x128xf32> -> vector<64x128xf32>
    %21 = arith.addf %14, %20 : vector<64x128xf32>
    %c0_21 = arith.constant 0 : index
    %c0_22 = arith.constant 0 : index
    %c8 = arith.constant 8 : index
    %c0_23 = arith.constant 0 : index
    %22 = vector.load %arg1[%c0_21, %c0_22, %c8, %c0_23] : memref<3x1x80x128xf32, #tpu.memory_space<vmem>>, vector<1x1x64x128xf32>
    %23 = vector.shape_cast %22 : vector<1x1x64x128xf32> to vector<64x128xf32>
    %24 = arith.truncf %23 : vector<64x128xf32> to vector<64x128xbf16>
    %c3 = arith.constant 3 : index
    %c0_24 = arith.constant 0 : index
    %c0_25 = arith.constant 0 : index
    %25 = vector.load %arg2[%c3, %c0_24, %c0_25] : memref<9x128x128xbf16, #tpu.memory_space<vmem>>, vector<1x128x128xbf16>
    %26 = vector.shape_cast %25 : vector<1x128x128xbf16> to vector<128x128xbf16>
    %cst_26 = arith.constant dense<0.000000e+00> : vector<64x128xf32>
    %27 = tpu.matmul %24, %26, %cst_26 {dimension_numbers = #tpu.dot_dimension_numbers<[1], [0], [0], [1], [0, 0, 1, 1], [], []>} : vector<64x128xbf16>, vector<128x128xbf16>, vector<64x128xf32> -> vector<64x128xf32>
    %28 = arith.addf %21, %27 : vector<64x128xf32>
    %c1_27 = arith.constant 1 : index
    %c0_28 = arith.constant 0 : index
    %c8_29 = arith.constant 8 : index
    %c0_30 = arith.constant 0 : index
    %29 = vector.load %arg1[%c1_27, %c0_28, %c8_29, %c0_30] : memref<3x1x80x128xf32, #tpu.memory_space<vmem>>, vector<1x1x64x128xf32>
    %30 = vector.shape_cast %29 : vector<1x1x64x128xf32> to vector<64x128xf32>
    %31 = arith.truncf %30 : vector<64x128xf32> to vector<64x128xbf16>
    %c4 = arith.constant 4 : index
    %c0_31 = arith.constant 0 : index
    %c0_32 = arith.constant 0 : index
    %32 = vector.load %arg2[%c4, %c0_31, %c0_32] : memref<9x128x128xbf16, #tpu.memory_space<vmem>>, vector<1x128x128xbf16>
    %33 = vector.shape_cast %32 : vector<1x128x128xbf16> to vector<128x128xbf16>
    %cst_33 = arith.constant dense<0.000000e+00> : vector<64x128xf32>
    %34 = tpu.matmul %31, %33, %cst_33 {dimension_numbers = #tpu.dot_dimension_numbers<[1], [0], [0], [1], [0, 0, 1, 1], [], []>} : vector<64x128xbf16>, vector<128x128xbf16>, vector<64x128xf32> -> vector<64x128xf32>
    %35 = arith.addf %28, %34 : vector<64x128xf32>
    %c2_34 = arith.constant 2 : index
    %c0_35 = arith.constant 0 : index
    %c8_36 = arith.constant 8 : index
    %c0_37 = arith.constant 0 : index
    %36 = vector.load %arg1[%c2_34, %c0_35, %c8_36, %c0_37] : memref<3x1x80x128xf32, #tpu.memory_space<vmem>>, vector<1x1x64x128xf32>
    %37 = vector.shape_cast %36 : vector<1x1x64x128xf32> to vector<64x128xf32>
    %38 = arith.truncf %37 : vector<64x128xf32> to vector<64x128xbf16>
    %c5 = arith.constant 5 : index
    %c0_38 = arith.constant 0 : index
    %c0_39 = arith.constant 0 : index
    %39 = vector.load %arg2[%c5, %c0_38, %c0_39] : memref<9x128x128xbf16, #tpu.memory_space<vmem>>, vector<1x128x128xbf16>
    %40 = vector.shape_cast %39 : vector<1x128x128xbf16> to vector<128x128xbf16>
    %cst_40 = arith.constant dense<0.000000e+00> : vector<64x128xf32>
    %41 = tpu.matmul %38, %40, %cst_40 {dimension_numbers = #tpu.dot_dimension_numbers<[1], [0], [0], [1], [0, 0, 1, 1], [], []>} : vector<64x128xbf16>, vector<128x128xbf16>, vector<64x128xf32> -> vector<64x128xf32>
    %42 = arith.addf %35, %41 : vector<64x128xf32>
    %c0_41 = arith.constant 0 : index
    %c0_42 = arith.constant 0 : index
    %c16 = arith.constant 16 : index
    %c0_43 = arith.constant 0 : index
    %43 = vector.load %arg1[%c0_41, %c0_42, %c16, %c0_43] : memref<3x1x80x128xf32, #tpu.memory_space<vmem>>, vector<1x1x64x128xf32>
    %44 = vector.shape_cast %43 : vector<1x1x64x128xf32> to vector<64x128xf32>
    %45 = arith.truncf %44 : vector<64x128xf32> to vector<64x128xbf16>
    %c6 = arith.constant 6 : index
    %c0_44 = arith.constant 0 : index
    %c0_45 = arith.constant 0 : index
    %46 = vector.load %arg2[%c6, %c0_44, %c0_45] : memref<9x128x128xbf16, #tpu.memory_space<vmem>>, vector<1x128x128xbf16>
    %47 = vector.shape_cast %46 : vector<1x128x128xbf16> to vector<128x128xbf16>
    %cst_46 = arith.constant dense<0.000000e+00> : vector<64x128xf32>
    %48 = tpu.matmul %45, %47, %cst_46 {dimension_numbers = #tpu.dot_dimension_numbers<[1], [0], [0], [1], [0, 0, 1, 1], [], []>} : vector<64x128xbf16>, vector<128x128xbf16>, vector<64x128xf32> -> vector<64x128xf32>
    %49 = arith.addf %42, %48 : vector<64x128xf32>
    %c1_47 = arith.constant 1 : index
    %c0_48 = arith.constant 0 : index
    %c16_49 = arith.constant 16 : index
    %c0_50 = arith.constant 0 : index
    %50 = vector.load %arg1[%c1_47, %c0_48, %c16_49, %c0_50] : memref<3x1x80x128xf32, #tpu.memory_space<vmem>>, vector<1x1x64x128xf32>
    %51 = vector.shape_cast %50 : vector<1x1x64x128xf32> to vector<64x128xf32>
    %52 = arith.truncf %51 : vector<64x128xf32> to vector<64x128xbf16>
    %c7 = arith.constant 7 : index
    %c0_51 = arith.constant 0 : index
    %c0_52 = arith.constant 0 : index
    %53 = vector.load %arg2[%c7, %c0_51, %c0_52] : memref<9x128x128xbf16, #tpu.memory_space<vmem>>, vector<1x128x128xbf16>
    %54 = vector.shape_cast %53 : vector<1x128x128xbf16> to vector<128x128xbf16>
    %cst_53 = arith.constant dense<0.000000e+00> : vector<64x128xf32>
    %55 = tpu.matmul %52, %54, %cst_53 {dimension_numbers = #tpu.dot_dimension_numbers<[1], [0], [0], [1], [0, 0, 1, 1], [], []>} : vector<64x128xbf16>, vector<128x128xbf16>, vector<64x128xf32> -> vector<64x128xf32>
    %56 = arith.addf %49, %55 : vector<64x128xf32>
    %c2_54 = arith.constant 2 : index
    %c0_55 = arith.constant 0 : index
    %c16_56 = arith.constant 16 : index
    %c0_57 = arith.constant 0 : index
    %57 = vector.load %arg1[%c2_54, %c0_55, %c16_56, %c0_57] : memref<3x1x80x128xf32, #tpu.memory_space<vmem>>, vector<1x1x64x128xf32>
    %58 = vector.shape_cast %57 : vector<1x1x64x128xf32> to vector<64x128xf32>
    %59 = arith.truncf %58 : vector<64x128xf32> to vector<64x128xbf16>
    %c8_58 = arith.constant 8 : index
    %c0_59 = arith.constant 0 : index
    %c0_60 = arith.constant 0 : index
    %60 = vector.load %arg2[%c8_58, %c0_59, %c0_60] : memref<9x128x128xbf16, #tpu.memory_space<vmem>>, vector<1x128x128xbf16>
    %61 = vector.shape_cast %60 : vector<1x128x128xbf16> to vector<128x128xbf16>
    %cst_61 = arith.constant dense<0.000000e+00> : vector<64x128xf32>
    %62 = tpu.matmul %59, %61, %cst_61 {dimension_numbers = #tpu.dot_dimension_numbers<[1], [0], [0], [1], [0, 0, 1, 1], [], []>} : vector<64x128xbf16>, vector<128x128xbf16>, vector<64x128xf32> -> vector<64x128xf32>
    %63 = arith.addf %56, %62 : vector<64x128xf32>
    %c0_62 = arith.constant 0 : index
    %c0_63 = arith.constant 0 : index
    %64 = vector.load %arg3[%c0_62, %c0_63] : memref<1x128xf32, #tpu.memory_space<vmem>>, vector<1x128xf32>
    %65 = vector.broadcast %64 : vector<1x128xf32> to vector<64x128xf32>
    %66 = arith.mulf %63, %65 : vector<64x128xf32>
    %c0_64 = arith.constant 0 : index
    %c0_65 = arith.constant 0 : index
    %67 = vector.load %arg4[%c0_64, %c0_65] : memref<1x128xf32, #tpu.memory_space<vmem>>, vector<1x128xf32>
    %68 = vector.broadcast %67 : vector<1x128xf32> to vector<64x128xf32>
    %69 = arith.addf %66, %68 : vector<64x128xf32>
    %cst_66 = arith.constant 0.000000e+00 : f32
    %70 = vector.broadcast %cst_66 : f32 to vector<64x128xf32>
    %71 = arith.maximumf %69, %70 : vector<64x128xf32>
    %72 = arith.truncf %71 : vector<64x128xf32> to vector<64x128xbf16>
    %c0_67 = arith.constant 0 : index
    %c0_68 = arith.constant 0 : index
    %c0_69 = arith.constant 0 : index
    %73 = vector.load %arg5[%c0_67, %c0_68, %c0_69] : memref<1x64x128xbf16, #tpu.memory_space<vmem>>, vector<1x64x128xbf16>
    %74 = vector.shape_cast %73 : vector<1x64x128xbf16> to vector<64x128xbf16>
    %75 = vector.shape_cast %72 : vector<64x128xbf16> to vector<1x64x128xbf16>
    tpu.vector_store %arg5[%c0_67, %c0_68, %c0_69], %75 {strides = array<i32>} : memref<1x64x128xbf16, #tpu.memory_space<vmem>>, vector<1x64x128xbf16>,
    return
  }
  func.func @transform_0(%arg0: i32) -> (i32, i32, i32, i32) {
    %c0_i32 = arith.constant 0 : i32
    %c0_i32_0 = arith.constant 0 : i32
    %c0_i32_1 = arith.constant 0 : i32
    %c0_i32_2 = arith.constant 0 : i32
    return %c0_i32, %arg0, %c0_i32_0, %c0_i32_1 : i32, i32, i32, i32
  }
  func.func @transform_1(%arg0: i32) -> (i32, i32, i32) {
    %c0_i32 = arith.constant 0 : i32
    %c0_i32_0 = arith.constant 0 : i32
    %c0_i32_1 = arith.constant 0 : i32
    %c0_i32_2 = arith.constant 0 : i32
    return %c0_i32, %c0_i32_0, %c0_i32_1 : i32, i32, i32
  }
  func.func @transform_2(%arg0: i32) -> (i32, i32) {
    %c0_i32 = arith.constant 0 : i32
    %c0_i32_0 = arith.constant 0 : i32
    %c0_i32_1 = arith.constant 0 : i32
    return %c0_i32, %c0_i32_0 : i32, i32
  }
  func.func @transform_3(%arg0: i32) -> (i32, i32) {
    %c0_i32 = arith.constant 0 : i32
    %c0_i32_0 = arith.constant 0 : i32
    %c0_i32_1 = arith.constant 0 : i32
    return %c0_i32, %c0_i32_0 : i32, i32
  }
  func.func @transform_4(%arg0: i32) -> (i32, i32, i32) {
    %c0_i32 = arith.constant 0 : i32
    %c0_i32_0 = arith.constant 0 : i32
    %c0_i32_1 = arith.constant 0 : i32
    return %arg0, %c0_i32, %c0_i32_0 : i32, i32, i32
  }
}

module attributes {stable_mosaic.version = 11 : i64} {
  func.func @_mm_bn_kernel(%arg0: i32, %arg1: i32, %arg2: memref<128x128xbf16, #tpu.memory_space<vmem>>, %arg3: memref<128x128xbf16, #tpu.memory_space<vmem>>, %arg4: memref<1x128xf32, #tpu.memory_space<vmem>>, %arg5: memref<1x128xf32, #tpu.memory_space<vmem>>, %arg6: memref<128x128xbf16, #tpu.memory_space<vmem>>, %arg7: memref<128x128xf32, #tpu.memory_space<vmem>>) attributes {dimension_semantics = [#tpu.dimension_semantics<parallel>, #tpu.dimension_semantics<arbitrary>], iteration_bounds = array<i64: 1, 1>, scalar_prefetch = 0 : i64, scratch_operands = 1 : i64, tpu.core_type = #tpu.core_type<tc>, window_params = [{transform_indices = @transform_0, window_bounds = array<i64: 128, 128>}, {transform_indices = @transform_1, window_bounds = array<i64: 128, 128>}, {pipeline_mode = #tpu.pipeline_mode<synchronous>, transform_indices = @transform_2, window_bounds = array<i64: 1, 128>}, {pipeline_mode = #tpu.pipeline_mode<synchronous>, transform_indices = @transform_3, window_bounds = array<i64: 1, 128>}, {transform_indices = @transform_4, window_bounds = array<i64: 128, 128>}]} {
    %c0_i32 = arith.constant 0 : i32
    %0 = arith.cmpi eq, %arg1, %c0_i32 : i32
    %1 = arith.extui %0 : i1 to i32
    %c0_i32_0 = arith.constant 0 : i32
    %2 = arith.cmpi ne, %1, %c0_i32_0 : i32
    scf.if %2 {
      %cst_10 = arith.constant 0.000000e+00 : f32
      %12 = vector.broadcast %cst_10 : f32 to vector<128x128xf32>
      %c0_11 = arith.constant 0 : index
      %c0_12 = arith.constant 0 : index
      %13 = vector.load %arg7[%c0_11, %c0_12] : memref<128x128xf32, #tpu.memory_space<vmem>>, vector<128x128xf32>
      tpu.vector_store %arg7[%c0_11, %c0_12], %12 {strides = array<i32>} : memref<128x128xf32, #tpu.memory_space<vmem>>, vector<128x128xf32>,
    } else {
    }
    %c0 = arith.constant 0 : index
    %c0_1 = arith.constant 0 : index
    %3 = vector.load %arg7[%c0, %c0_1] : memref<128x128xf32, #tpu.memory_space<vmem>>, vector<128x128xf32>
    %c0_2 = arith.constant 0 : index
    %c0_3 = arith.constant 0 : index
    %4 = vector.load %arg2[%c0_2, %c0_3] : memref<128x128xbf16, #tpu.memory_space<vmem>>, vector<128x128xbf16>
    %c0_4 = arith.constant 0 : index
    %c0_5 = arith.constant 0 : index
    %5 = vector.load %arg3[%c0_4, %c0_5] : memref<128x128xbf16, #tpu.memory_space<vmem>>, vector<128x128xbf16>
    %cst = arith.constant dense<0.000000e+00> : vector<128x128xf32>
    %6 = tpu.matmul %4, %5, %cst {dimension_numbers = #tpu.dot_dimension_numbers<[1], [0], [0], [1], [0, 0, 1, 1], [], []>} : vector<128x128xbf16>, vector<128x128xbf16>, vector<128x128xf32> -> vector<128x128xf32>
    %7 = arith.addf %3, %6 : vector<128x128xf32>
    %c0_6 = arith.constant 0 : index
    %c0_7 = arith.constant 0 : index
    %8 = vector.load %arg7[%c0_6, %c0_7] : memref<128x128xf32, #tpu.memory_space<vmem>>, vector<128x128xf32>
    tpu.vector_store %arg7[%c0_6, %c0_7], %7 {strides = array<i32>} : memref<128x128xf32, #tpu.memory_space<vmem>>, vector<128x128xf32>,
    %c0_i32_8 = arith.constant 0 : i32
    %9 = arith.cmpi eq, %arg1, %c0_i32_8 : i32
    %10 = arith.extui %9 : i1 to i32
    %c0_i32_9 = arith.constant 0 : i32
    %11 = arith.cmpi ne, %10, %c0_i32_9 : i32
    scf.if %11 {
      %c0_10 = arith.constant 0 : index
      %c0_11 = arith.constant 0 : index
      %12 = vector.load %arg7[%c0_10, %c0_11] : memref<128x128xf32, #tpu.memory_space<vmem>>, vector<128x128xf32>
      %c0_12 = arith.constant 0 : index
      %c0_13 = arith.constant 0 : index
      %13 = vector.load %arg4[%c0_12, %c0_13] : memref<1x128xf32, #tpu.memory_space<vmem>>, vector<1x128xf32>
      %14 = vector.broadcast %13 : vector<1x128xf32> to vector<128x128xf32>
      %15 = arith.mulf %12, %14 : vector<128x128xf32>
      %c0_14 = arith.constant 0 : index
      %c0_15 = arith.constant 0 : index
      %16 = vector.load %arg5[%c0_14, %c0_15] : memref<1x128xf32, #tpu.memory_space<vmem>>, vector<1x128xf32>
      %17 = vector.broadcast %16 : vector<1x128xf32> to vector<128x128xf32>
      %18 = arith.addf %15, %17 : vector<128x128xf32>
      %19 = arith.truncf %18 : vector<128x128xf32> to vector<128x128xbf16>
      %c0_16 = arith.constant 0 : index
      %c0_17 = arith.constant 0 : index
      %20 = vector.load %arg6[%c0_16, %c0_17] : memref<128x128xbf16, #tpu.memory_space<vmem>>, vector<128x128xbf16>
      tpu.vector_store %arg6[%c0_16, %c0_17], %19 {strides = array<i32>} : memref<128x128xbf16, #tpu.memory_space<vmem>>, vector<128x128xbf16>,
    } else {
    }
    return
  }
  func.func @transform_0(%arg0: i32, %arg1: i32) -> (i32, i32) {
    %c0_i32 = arith.constant 0 : i32
    return %arg0, %arg1 : i32, i32
  }
  func.func @transform_1(%arg0: i32, %arg1: i32) -> (i32, i32) {
    %c0_i32 = arith.constant 0 : i32
    %c0_i32_0 = arith.constant 0 : i32
    return %arg1, %c0_i32 : i32, i32
  }
  func.func @transform_2(%arg0: i32, %arg1: i32) -> (i32, i32) {
    %c0_i32 = arith.constant 0 : i32
    %c0_i32_0 = arith.constant 0 : i32
    %c0_i32_1 = arith.constant 0 : i32
    return %c0_i32, %c0_i32_0 : i32, i32
  }
  func.func @transform_3(%arg0: i32, %arg1: i32) -> (i32, i32) {
    %c0_i32 = arith.constant 0 : i32
    %c0_i32_0 = arith.constant 0 : i32
    %c0_i32_1 = arith.constant 0 : i32
    return %c0_i32, %c0_i32_0 : i32, i32
  }
  func.func @transform_4(%arg0: i32, %arg1: i32) -> (i32, i32) {
    %c0_i32 = arith.constant 0 : i32
    %c0_i32_0 = arith.constant 0 : i32
    return %arg0, %c0_i32 : i32, i32
  }
}

module attributes {stable_mosaic.version = 11 : i64} {
  func.func @_mm_bn_res_kernel(%arg0: i32, %arg1: i32, %arg2: memref<128x128xbf16, #tpu.memory_space<vmem>>, %arg3: memref<128x128xbf16, #tpu.memory_space<vmem>>, %arg4: memref<1x128xf32, #tpu.memory_space<vmem>>, %arg5: memref<1x128xf32, #tpu.memory_space<vmem>>, %arg6: memref<128x128xbf16, #tpu.memory_space<vmem>>, %arg7: memref<128x128xbf16, #tpu.memory_space<vmem>>, %arg8: memref<128x128xf32, #tpu.memory_space<vmem>>) attributes {dimension_semantics = [#tpu.dimension_semantics<parallel>, #tpu.dimension_semantics<arbitrary>], iteration_bounds = array<i64: 1, 1>, scalar_prefetch = 0 : i64, scratch_operands = 1 : i64, tpu.core_type = #tpu.core_type<tc>, window_params = [{transform_indices = @transform_0, window_bounds = array<i64: 128, 128>}, {transform_indices = @transform_1, window_bounds = array<i64: 128, 128>}, {pipeline_mode = #tpu.pipeline_mode<synchronous>, transform_indices = @transform_2, window_bounds = array<i64: 1, 128>}, {pipeline_mode = #tpu.pipeline_mode<synchronous>, transform_indices = @transform_3, window_bounds = array<i64: 1, 128>}, {transform_indices = @transform_4, window_bounds = array<i64: 128, 128>}, {transform_indices = @transform_5, window_bounds = array<i64: 128, 128>}]} {
    %c0_i32 = arith.constant 0 : i32
    %0 = arith.cmpi eq, %arg1, %c0_i32 : i32
    %1 = arith.extui %0 : i1 to i32
    %c0_i32_0 = arith.constant 0 : i32
    %2 = arith.cmpi ne, %1, %c0_i32_0 : i32
    scf.if %2 {
      %cst_10 = arith.constant 0.000000e+00 : f32
      %12 = vector.broadcast %cst_10 : f32 to vector<128x128xf32>
      %c0_11 = arith.constant 0 : index
      %c0_12 = arith.constant 0 : index
      %13 = vector.load %arg8[%c0_11, %c0_12] : memref<128x128xf32, #tpu.memory_space<vmem>>, vector<128x128xf32>
      tpu.vector_store %arg8[%c0_11, %c0_12], %12 {strides = array<i32>} : memref<128x128xf32, #tpu.memory_space<vmem>>, vector<128x128xf32>,
    } else {
    }
    %c0 = arith.constant 0 : index
    %c0_1 = arith.constant 0 : index
    %3 = vector.load %arg8[%c0, %c0_1] : memref<128x128xf32, #tpu.memory_space<vmem>>, vector<128x128xf32>
    %c0_2 = arith.constant 0 : index
    %c0_3 = arith.constant 0 : index
    %4 = vector.load %arg2[%c0_2, %c0_3] : memref<128x128xbf16, #tpu.memory_space<vmem>>, vector<128x128xbf16>
    %c0_4 = arith.constant 0 : index
    %c0_5 = arith.constant 0 : index
    %5 = vector.load %arg3[%c0_4, %c0_5] : memref<128x128xbf16, #tpu.memory_space<vmem>>, vector<128x128xbf16>
    %cst = arith.constant dense<0.000000e+00> : vector<128x128xf32>
    %6 = tpu.matmul %4, %5, %cst {dimension_numbers = #tpu.dot_dimension_numbers<[1], [0], [0], [1], [0, 0, 1, 1], [], []>} : vector<128x128xbf16>, vector<128x128xbf16>, vector<128x128xf32> -> vector<128x128xf32>
    %7 = arith.addf %3, %6 : vector<128x128xf32>
    %c0_6 = arith.constant 0 : index
    %c0_7 = arith.constant 0 : index
    %8 = vector.load %arg8[%c0_6, %c0_7] : memref<128x128xf32, #tpu.memory_space<vmem>>, vector<128x128xf32>
    tpu.vector_store %arg8[%c0_6, %c0_7], %7 {strides = array<i32>} : memref<128x128xf32, #tpu.memory_space<vmem>>, vector<128x128xf32>,
    %c0_i32_8 = arith.constant 0 : i32
    %9 = arith.cmpi eq, %arg1, %c0_i32_8 : i32
    %10 = arith.extui %9 : i1 to i32
    %c0_i32_9 = arith.constant 0 : i32
    %11 = arith.cmpi ne, %10, %c0_i32_9 : i32
    scf.if %11 {
      %c0_10 = arith.constant 0 : index
      %c0_11 = arith.constant 0 : index
      %12 = vector.load %arg8[%c0_10, %c0_11] : memref<128x128xf32, #tpu.memory_space<vmem>>, vector<128x128xf32>
      %c0_12 = arith.constant 0 : index
      %c0_13 = arith.constant 0 : index
      %13 = vector.load %arg4[%c0_12, %c0_13] : memref<1x128xf32, #tpu.memory_space<vmem>>, vector<1x128xf32>
      %14 = vector.broadcast %13 : vector<1x128xf32> to vector<128x128xf32>
      %15 = arith.mulf %12, %14 : vector<128x128xf32>
      %c0_14 = arith.constant 0 : index
      %c0_15 = arith.constant 0 : index
      %16 = vector.load %arg5[%c0_14, %c0_15] : memref<1x128xf32, #tpu.memory_space<vmem>>, vector<1x128xf32>
      %17 = vector.broadcast %16 : vector<1x128xf32> to vector<128x128xf32>
      %18 = arith.addf %15, %17 : vector<128x128xf32>
      %c0_16 = arith.constant 0 : index
      %c0_17 = arith.constant 0 : index
      %19 = vector.load %arg6[%c0_16, %c0_17] : memref<128x128xbf16, #tpu.memory_space<vmem>>, vector<128x128xbf16>
      %20 = arith.extf %19 : vector<128x128xbf16> to vector<128x128xf32>
      %21 = arith.addf %18, %20 : vector<128x128xf32>
      %cst_18 = arith.constant 0.000000e+00 : f32
      %22 = vector.broadcast %cst_18 : f32 to vector<128x128xf32>
      %23 = arith.maximumf %21, %22 : vector<128x128xf32>
      %24 = arith.truncf %23 : vector<128x128xf32> to vector<128x128xbf16>
      %c0_19 = arith.constant 0 : index
      %c0_20 = arith.constant 0 : index
      %25 = vector.load %arg7[%c0_19, %c0_20] : memref<128x128xbf16, #tpu.memory_space<vmem>>, vector<128x128xbf16>
      tpu.vector_store %arg7[%c0_19, %c0_20], %24 {strides = array<i32>} : memref<128x128xbf16, #tpu.memory_space<vmem>>, vector<128x128xbf16>,
    } else {
    }
    return
  }
  func.func @transform_0(%arg0: i32, %arg1: i32) -> (i32, i32) {
    %c0_i32 = arith.constant 0 : i32
    return %arg0, %arg1 : i32, i32
  }
  func.func @transform_1(%arg0: i32, %arg1: i32) -> (i32, i32) {
    %c0_i32 = arith.constant 0 : i32
    %c0_i32_0 = arith.constant 0 : i32
    return %arg1, %c0_i32 : i32, i32
  }
  func.func @transform_2(%arg0: i32, %arg1: i32) -> (i32, i32) {
    %c0_i32 = arith.constant 0 : i32
    %c0_i32_0 = arith.constant 0 : i32
    %c0_i32_1 = arith.constant 0 : i32
    return %c0_i32, %c0_i32_0 : i32, i32
  }
  func.func @transform_3(%arg0: i32, %arg1: i32) -> (i32, i32) {
    %c0_i32 = arith.constant 0 : i32
    %c0_i32_0 = arith.constant 0 : i32
    %c0_i32_1 = arith.constant 0 : i32
    return %c0_i32, %c0_i32_0 : i32, i32
  }
  func.func @transform_4(%arg0: i32, %arg1: i32) -> (i32, i32) {
    %c0_i32 = arith.constant 0 : i32
    %c0_i32_0 = arith.constant 0 : i32
    return %arg0, %c0_i32 : i32, i32
  }
  func.func @transform_5(%arg0: i32, %arg1: i32) -> (i32, i32) {
    %c0_i32 = arith.constant 0 : i32
    %c0_i32_0 = arith.constant 0 : i32
    return %arg0, %c0_i32 : i32, i32
  }
}

module attributes {stable_mosaic.version = 11 : i64} {
  func.func @_mm_bn_kernel(%arg0: i32, %arg1: i32, %arg2: memref<32x128xbf16, #tpu.memory_space<vmem>>, %arg3: memref<128x128xbf16, #tpu.memory_space<vmem>>, %arg4: memref<1x128xf32, #tpu.memory_space<vmem>>, %arg5: memref<1x128xf32, #tpu.memory_space<vmem>>, %arg6: memref<32x128xbf16, #tpu.memory_space<vmem>>, %arg7: memref<32x128xf32, #tpu.memory_space<vmem>>) attributes {dimension_semantics = [#tpu.dimension_semantics<parallel>, #tpu.dimension_semantics<arbitrary>], iteration_bounds = array<i64: 1, 1>, scalar_prefetch = 0 : i64, scratch_operands = 1 : i64, tpu.core_type = #tpu.core_type<tc>, window_params = [{transform_indices = @transform_0, window_bounds = array<i64: 32, 128>}, {transform_indices = @transform_1, window_bounds = array<i64: 128, 128>}, {pipeline_mode = #tpu.pipeline_mode<synchronous>, transform_indices = @transform_2, window_bounds = array<i64: 1, 128>}, {pipeline_mode = #tpu.pipeline_mode<synchronous>, transform_indices = @transform_3, window_bounds = array<i64: 1, 128>}, {transform_indices = @transform_4, window_bounds = array<i64: 32, 128>}]} {
    %c0_i32 = arith.constant 0 : i32
    %0 = arith.cmpi eq, %arg1, %c0_i32 : i32
    %1 = arith.extui %0 : i1 to i32
    %c0_i32_0 = arith.constant 0 : i32
    %2 = arith.cmpi ne, %1, %c0_i32_0 : i32
    scf.if %2 {
      %cst_10 = arith.constant 0.000000e+00 : f32
      %12 = vector.broadcast %cst_10 : f32 to vector<32x128xf32>
      %c0_11 = arith.constant 0 : index
      %c0_12 = arith.constant 0 : index
      %13 = vector.load %arg7[%c0_11, %c0_12] : memref<32x128xf32, #tpu.memory_space<vmem>>, vector<32x128xf32>
      tpu.vector_store %arg7[%c0_11, %c0_12], %12 {strides = array<i32>} : memref<32x128xf32, #tpu.memory_space<vmem>>, vector<32x128xf32>,
    } else {
    }
    %c0 = arith.constant 0 : index
    %c0_1 = arith.constant 0 : index
    %3 = vector.load %arg7[%c0, %c0_1] : memref<32x128xf32, #tpu.memory_space<vmem>>, vector<32x128xf32>
    %c0_2 = arith.constant 0 : index
    %c0_3 = arith.constant 0 : index
    %4 = vector.load %arg2[%c0_2, %c0_3] : memref<32x128xbf16, #tpu.memory_space<vmem>>, vector<32x128xbf16>
    %c0_4 = arith.constant 0 : index
    %c0_5 = arith.constant 0 : index
    %5 = vector.load %arg3[%c0_4, %c0_5] : memref<128x128xbf16, #tpu.memory_space<vmem>>, vector<128x128xbf16>
    %cst = arith.constant dense<0.000000e+00> : vector<32x128xf32>
    %6 = tpu.matmul %4, %5, %cst {dimension_numbers = #tpu.dot_dimension_numbers<[1], [0], [0], [1], [0, 0, 1, 1], [], []>} : vector<32x128xbf16>, vector<128x128xbf16>, vector<32x128xf32> -> vector<32x128xf32>
    %7 = arith.addf %3, %6 : vector<32x128xf32>
    %c0_6 = arith.constant 0 : index
    %c0_7 = arith.constant 0 : index
    %8 = vector.load %arg7[%c0_6, %c0_7] : memref<32x128xf32, #tpu.memory_space<vmem>>, vector<32x128xf32>
    tpu.vector_store %arg7[%c0_6, %c0_7], %7 {strides = array<i32>} : memref<32x128xf32, #tpu.memory_space<vmem>>, vector<32x128xf32>,
    %c0_i32_8 = arith.constant 0 : i32
    %9 = arith.cmpi eq, %arg1, %c0_i32_8 : i32
    %10 = arith.extui %9 : i1 to i32
    %c0_i32_9 = arith.constant 0 : i32
    %11 = arith.cmpi ne, %10, %c0_i32_9 : i32
    scf.if %11 {
      %c0_10 = arith.constant 0 : index
      %c0_11 = arith.constant 0 : index
      %12 = vector.load %arg7[%c0_10, %c0_11] : memref<32x128xf32, #tpu.memory_space<vmem>>, vector<32x128xf32>
      %c0_12 = arith.constant 0 : index
      %c0_13 = arith.constant 0 : index
      %13 = vector.load %arg4[%c0_12, %c0_13] : memref<1x128xf32, #tpu.memory_space<vmem>>, vector<1x128xf32>
      %14 = vector.broadcast %13 : vector<1x128xf32> to vector<32x128xf32>
      %15 = arith.mulf %12, %14 : vector<32x128xf32>
      %c0_14 = arith.constant 0 : index
      %c0_15 = arith.constant 0 : index
      %16 = vector.load %arg5[%c0_14, %c0_15] : memref<1x128xf32, #tpu.memory_space<vmem>>, vector<1x128xf32>
      %17 = vector.broadcast %16 : vector<1x128xf32> to vector<32x128xf32>
      %18 = arith.addf %15, %17 : vector<32x128xf32>
      %19 = arith.truncf %18 : vector<32x128xf32> to vector<32x128xbf16>
      %c0_16 = arith.constant 0 : index
      %c0_17 = arith.constant 0 : index
      %20 = vector.load %arg6[%c0_16, %c0_17] : memref<32x128xbf16, #tpu.memory_space<vmem>>, vector<32x128xbf16>
      tpu.vector_store %arg6[%c0_16, %c0_17], %19 {strides = array<i32>} : memref<32x128xbf16, #tpu.memory_space<vmem>>, vector<32x128xbf16>,
    } else {
    }
    return
  }
  func.func @transform_0(%arg0: i32, %arg1: i32) -> (i32, i32) {
    %c0_i32 = arith.constant 0 : i32
    return %arg0, %arg1 : i32, i32
  }
  func.func @transform_1(%arg0: i32, %arg1: i32) -> (i32, i32) {
    %c0_i32 = arith.constant 0 : i32
    %c0_i32_0 = arith.constant 0 : i32
    return %arg1, %c0_i32 : i32, i32
  }
  func.func @transform_2(%arg0: i32, %arg1: i32) -> (i32, i32) {
    %c0_i32 = arith.constant 0 : i32
    %c0_i32_0 = arith.constant 0 : i32
    %c0_i32_1 = arith.constant 0 : i32
    return %c0_i32, %c0_i32_0 : i32, i32
  }
  func.func @transform_3(%arg0: i32, %arg1: i32) -> (i32, i32) {
    %c0_i32 = arith.constant 0 : i32
    %c0_i32_0 = arith.constant 0 : i32
    %c0_i32_1 = arith.constant 0 : i32
    return %c0_i32, %c0_i32_0 : i32, i32
  }
  func.func @transform_4(%arg0: i32, %arg1: i32) -> (i32, i32) {
    %c0_i32 = arith.constant 0 : i32
    %c0_i32_0 = arith.constant 0 : i32
    return %arg0, %c0_i32 : i32, i32
  }
}

module attributes {stable_mosaic.version = 11 : i64} {
  func.func @_mm_bn_kernel(%arg0: i32, %arg1: i32, %arg2: memref<32x128xbf16, #tpu.memory_space<vmem>>, %arg3: memref<128x128xbf16, #tpu.memory_space<vmem>>, %arg4: memref<1x128xf32, #tpu.memory_space<vmem>>, %arg5: memref<1x128xf32, #tpu.memory_space<vmem>>, %arg6: memref<32x128xbf16, #tpu.memory_space<vmem>>, %arg7: memref<32x128xf32, #tpu.memory_space<vmem>>) attributes {dimension_semantics = [#tpu.dimension_semantics<parallel>, #tpu.dimension_semantics<arbitrary>], iteration_bounds = array<i64: 1, 9>, scalar_prefetch = 0 : i64, scratch_operands = 1 : i64, tpu.core_type = #tpu.core_type<tc>, window_params = [{transform_indices = @transform_0, window_bounds = array<i64: 32, 128>}, {transform_indices = @transform_1, window_bounds = array<i64: 128, 128>}, {pipeline_mode = #tpu.pipeline_mode<synchronous>, transform_indices = @transform_2, window_bounds = array<i64: 1, 128>}, {pipeline_mode = #tpu.pipeline_mode<synchronous>, transform_indices = @transform_3, window_bounds = array<i64: 1, 128>}, {transform_indices = @transform_4, window_bounds = array<i64: 32, 128>}]} {
    %c0_i32 = arith.constant 0 : i32
    %0 = arith.cmpi eq, %arg1, %c0_i32 : i32
    %1 = arith.extui %0 : i1 to i32
    %c0_i32_0 = arith.constant 0 : i32
    %2 = arith.cmpi ne, %1, %c0_i32_0 : i32
    scf.if %2 {
      %cst_9 = arith.constant 0.000000e+00 : f32
      %12 = vector.broadcast %cst_9 : f32 to vector<32x128xf32>
      %c0_10 = arith.constant 0 : index
      %c0_11 = arith.constant 0 : index
      %13 = vector.load %arg7[%c0_10, %c0_11] : memref<32x128xf32, #tpu.memory_space<vmem>>, vector<32x128xf32>
      tpu.vector_store %arg7[%c0_10, %c0_11], %12 {strides = array<i32>} : memref<32x128xf32, #tpu.memory_space<vmem>>, vector<32x128xf32>,
    } else {
    }
    %c0 = arith.constant 0 : index
    %c0_1 = arith.constant 0 : index
    %3 = vector.load %arg7[%c0, %c0_1] : memref<32x128xf32, #tpu.memory_space<vmem>>, vector<32x128xf32>
    %c0_2 = arith.constant 0 : index
    %c0_3 = arith.constant 0 : index
    %4 = vector.load %arg2[%c0_2, %c0_3] : memref<32x128xbf16, #tpu.memory_space<vmem>>, vector<32x128xbf16>
    %c0_4 = arith.constant 0 : index
    %c0_5 = arith.constant 0 : index
    %5 = vector.load %arg3[%c0_4, %c0_5] : memref<128x128xbf16, #tpu.memory_space<vmem>>, vector<128x128xbf16>
    %cst = arith.constant dense<0.000000e+00> : vector<32x128xf32>
    %6 = tpu.matmul %4, %5, %cst {dimension_numbers = #tpu.dot_dimension_numbers<[1], [0], [0], [1], [0, 0, 1, 1], [], []>} : vector<32x128xbf16>, vector<128x128xbf16>, vector<32x128xf32> -> vector<32x128xf32>
    %7 = arith.addf %3, %6 : vector<32x128xf32>
    %c0_6 = arith.constant 0 : index
    %c0_7 = arith.constant 0 : index
    %8 = vector.load %arg7[%c0_6, %c0_7] : memref<32x128xf32, #tpu.memory_space<vmem>>, vector<32x128xf32>
    tpu.vector_store %arg7[%c0_6, %c0_7], %7 {strides = array<i32>} : memref<32x128xf32, #tpu.memory_space<vmem>>, vector<32x128xf32>,
    %c8_i32 = arith.constant 8 : i32
    %9 = arith.cmpi eq, %arg1, %c8_i32 : i32
    %10 = arith.extui %9 : i1 to i32
    %c0_i32_8 = arith.constant 0 : i32
    %11 = arith.cmpi ne, %10, %c0_i32_8 : i32
    scf.if %11 {
      %c0_9 = arith.constant 0 : index
      %c0_10 = arith.constant 0 : index
      %12 = vector.load %arg7[%c0_9, %c0_10] : memref<32x128xf32, #tpu.memory_space<vmem>>, vector<32x128xf32>
      %c0_11 = arith.constant 0 : index
      %c0_12 = arith.constant 0 : index
      %13 = vector.load %arg4[%c0_11, %c0_12] : memref<1x128xf32, #tpu.memory_space<vmem>>, vector<1x128xf32>
      %14 = vector.broadcast %13 : vector<1x128xf32> to vector<32x128xf32>
      %15 = arith.mulf %12, %14 : vector<32x128xf32>
      %c0_13 = arith.constant 0 : index
      %c0_14 = arith.constant 0 : index
      %16 = vector.load %arg5[%c0_13, %c0_14] : memref<1x128xf32, #tpu.memory_space<vmem>>, vector<1x128xf32>
      %17 = vector.broadcast %16 : vector<1x128xf32> to vector<32x128xf32>
      %18 = arith.addf %15, %17 : vector<32x128xf32>
      %cst_15 = arith.constant 0.000000e+00 : f32
      %19 = vector.broadcast %cst_15 : f32 to vector<32x128xf32>
      %20 = arith.maximumf %18, %19 : vector<32x128xf32>
      %21 = arith.truncf %20 : vector<32x128xf32> to vector<32x128xbf16>
      %c0_16 = arith.constant 0 : index
      %c0_17 = arith.constant 0 : index
      %22 = vector.load %arg6[%c0_16, %c0_17] : memref<32x128xbf16, #tpu.memory_space<vmem>>, vector<32x128xbf16>
      tpu.vector_store %arg6[%c0_16, %c0_17], %21 {strides = array<i32>} : memref<32x128xbf16, #tpu.memory_space<vmem>>, vector<32x128xbf16>,
    } else {
    }
    return
  }
  func.func @transform_0(%arg0: i32, %arg1: i32) -> (i32, i32) {
    %c0_i32 = arith.constant 0 : i32
    return %arg0, %arg1 : i32, i32
  }
  func.func @transform_1(%arg0: i32, %arg1: i32) -> (i32, i32) {
    %c0_i32 = arith.constant 0 : i32
    %c0_i32_0 = arith.constant 0 : i32
    return %arg1, %c0_i32 : i32, i32
  }
  func.func @transform_2(%arg0: i32, %arg1: i32) -> (i32, i32) {
    %c0_i32 = arith.constant 0 : i32
    %c0_i32_0 = arith.constant 0 : i32
    %c0_i32_1 = arith.constant 0 : i32
    return %c0_i32, %c0_i32_0 : i32, i32
  }
  func.func @transform_3(%arg0: i32, %arg1: i32) -> (i32, i32) {
    %c0_i32 = arith.constant 0 : i32
    %c0_i32_0 = arith.constant 0 : i32
    %c0_i32_1 = arith.constant 0 : i32
    return %c0_i32, %c0_i32_0 : i32, i32
  }
  func.func @transform_4(%arg0: i32, %arg1: i32) -> (i32, i32) {
    %c0_i32 = arith.constant 0 : i32
    %c0_i32_0 = arith.constant 0 : i32
    return %arg0, %c0_i32 : i32, i32
  }
}

module attributes {stable_mosaic.version = 11 : i64} {
  func.func @_mm_bn_res_kernel(%arg0: i32, %arg1: i32, %arg2: memref<32x128xbf16, #tpu.memory_space<vmem>>, %arg3: memref<128x128xbf16, #tpu.memory_space<vmem>>, %arg4: memref<1x128xf32, #tpu.memory_space<vmem>>, %arg5: memref<1x128xf32, #tpu.memory_space<vmem>>, %arg6: memref<32x128xbf16, #tpu.memory_space<vmem>>, %arg7: memref<32x128xbf16, #tpu.memory_space<vmem>>, %arg8: memref<32x128xf32, #tpu.memory_space<vmem>>) attributes {dimension_semantics = [#tpu.dimension_semantics<parallel>, #tpu.dimension_semantics<arbitrary>], iteration_bounds = array<i64: 1, 1>, scalar_prefetch = 0 : i64, scratch_operands = 1 : i64, tpu.core_type = #tpu.core_type<tc>, window_params = [{transform_indices = @transform_0, window_bounds = array<i64: 32, 128>}, {transform_indices = @transform_1, window_bounds = array<i64: 128, 128>}, {pipeline_mode = #tpu.pipeline_mode<synchronous>, transform_indices = @transform_2, window_bounds = array<i64: 1, 128>}, {pipeline_mode = #tpu.pipeline_mode<synchronous>, transform_indices = @transform_3, window_bounds = array<i64: 1, 128>}, {transform_indices = @transform_4, window_bounds = array<i64: 32, 128>}, {transform_indices = @transform_5, window_bounds = array<i64: 32, 128>}]} {
    %c0_i32 = arith.constant 0 : i32
    %0 = arith.cmpi eq, %arg1, %c0_i32 : i32
    %1 = arith.extui %0 : i1 to i32
    %c0_i32_0 = arith.constant 0 : i32
    %2 = arith.cmpi ne, %1, %c0_i32_0 : i32
    scf.if %2 {
      %cst_10 = arith.constant 0.000000e+00 : f32
      %12 = vector.broadcast %cst_10 : f32 to vector<32x128xf32>
      %c0_11 = arith.constant 0 : index
      %c0_12 = arith.constant 0 : index
      %13 = vector.load %arg8[%c0_11, %c0_12] : memref<32x128xf32, #tpu.memory_space<vmem>>, vector<32x128xf32>
      tpu.vector_store %arg8[%c0_11, %c0_12], %12 {strides = array<i32>} : memref<32x128xf32, #tpu.memory_space<vmem>>, vector<32x128xf32>,
    } else {
    }
    %c0 = arith.constant 0 : index
    %c0_1 = arith.constant 0 : index
    %3 = vector.load %arg8[%c0, %c0_1] : memref<32x128xf32, #tpu.memory_space<vmem>>, vector<32x128xf32>
    %c0_2 = arith.constant 0 : index
    %c0_3 = arith.constant 0 : index
    %4 = vector.load %arg2[%c0_2, %c0_3] : memref<32x128xbf16, #tpu.memory_space<vmem>>, vector<32x128xbf16>
    %c0_4 = arith.constant 0 : index
    %c0_5 = arith.constant 0 : index
    %5 = vector.load %arg3[%c0_4, %c0_5] : memref<128x128xbf16, #tpu.memory_space<vmem>>, vector<128x128xbf16>
    %cst = arith.constant dense<0.000000e+00> : vector<32x128xf32>
    %6 = tpu.matmul %4, %5, %cst {dimension_numbers = #tpu.dot_dimension_numbers<[1], [0], [0], [1], [0, 0, 1, 1], [], []>} : vector<32x128xbf16>, vector<128x128xbf16>, vector<32x128xf32> -> vector<32x128xf32>
    %7 = arith.addf %3, %6 : vector<32x128xf32>
    %c0_6 = arith.constant 0 : index
    %c0_7 = arith.constant 0 : index
    %8 = vector.load %arg8[%c0_6, %c0_7] : memref<32x128xf32, #tpu.memory_space<vmem>>, vector<32x128xf32>
    tpu.vector_store %arg8[%c0_6, %c0_7], %7 {strides = array<i32>} : memref<32x128xf32, #tpu.memory_space<vmem>>, vector<32x128xf32>,
    %c0_i32_8 = arith.constant 0 : i32
    %9 = arith.cmpi eq, %arg1, %c0_i32_8 : i32
    %10 = arith.extui %9 : i1 to i32
    %c0_i32_9 = arith.constant 0 : i32
    %11 = arith.cmpi ne, %10, %c0_i32_9 : i32
    scf.if %11 {
      %c0_10 = arith.constant 0 : index
      %c0_11 = arith.constant 0 : index
      %12 = vector.load %arg8[%c0_10, %c0_11] : memref<32x128xf32, #tpu.memory_space<vmem>>, vector<32x128xf32>
      %c0_12 = arith.constant 0 : index
      %c0_13 = arith.constant 0 : index
      %13 = vector.load %arg4[%c0_12, %c0_13] : memref<1x128xf32, #tpu.memory_space<vmem>>, vector<1x128xf32>
      %14 = vector.broadcast %13 : vector<1x128xf32> to vector<32x128xf32>
      %15 = arith.mulf %12, %14 : vector<32x128xf32>
      %c0_14 = arith.constant 0 : index
      %c0_15 = arith.constant 0 : index
      %16 = vector.load %arg5[%c0_14, %c0_15] : memref<1x128xf32, #tpu.memory_space<vmem>>, vector<1x128xf32>
      %17 = vector.broadcast %16 : vector<1x128xf32> to vector<32x128xf32>
      %18 = arith.addf %15, %17 : vector<32x128xf32>
      %c0_16 = arith.constant 0 : index
      %c0_17 = arith.constant 0 : index
      %19 = vector.load %arg6[%c0_16, %c0_17] : memref<32x128xbf16, #tpu.memory_space<vmem>>, vector<32x128xbf16>
      %20 = arith.extf %19 : vector<32x128xbf16> to vector<32x128xf32>
      %21 = arith.addf %18, %20 : vector<32x128xf32>
      %cst_18 = arith.constant 0.000000e+00 : f32
      %22 = vector.broadcast %cst_18 : f32 to vector<32x128xf32>
      %23 = arith.maximumf %21, %22 : vector<32x128xf32>
      %24 = arith.truncf %23 : vector<32x128xf32> to vector<32x128xbf16>
      %c0_19 = arith.constant 0 : index
      %c0_20 = arith.constant 0 : index
      %25 = vector.load %arg7[%c0_19, %c0_20] : memref<32x128xbf16, #tpu.memory_space<vmem>>, vector<32x128xbf16>
      tpu.vector_store %arg7[%c0_19, %c0_20], %24 {strides = array<i32>} : memref<32x128xbf16, #tpu.memory_space<vmem>>, vector<32x128xbf16>,
    } else {
    }
    return
  }
  func.func @transform_0(%arg0: i32, %arg1: i32) -> (i32, i32) {
    %c0_i32 = arith.constant 0 : i32
    return %arg0, %arg1 : i32, i32
  }
  func.func @transform_1(%arg0: i32, %arg1: i32) -> (i32, i32) {
    %c0_i32 = arith.constant 0 : i32
    %c0_i32_0 = arith.constant 0 : i32
    return %arg1, %c0_i32 : i32, i32
  }
  func.func @transform_2(%arg0: i32, %arg1: i32) -> (i32, i32) {
    %c0_i32 = arith.constant 0 : i32
    %c0_i32_0 = arith.constant 0 : i32
    %c0_i32_1 = arith.constant 0 : i32
    return %c0_i32, %c0_i32_0 : i32, i32
  }
  func.func @transform_3(%arg0: i32, %arg1: i32) -> (i32, i32) {
    %c0_i32 = arith.constant 0 : i32
    %c0_i32_0 = arith.constant 0 : i32
    %c0_i32_1 = arith.constant 0 : i32
    return %c0_i32, %c0_i32_0 : i32, i32
  }
  func.func @transform_4(%arg0: i32, %arg1: i32) -> (i32, i32) {
    %c0_i32 = arith.constant 0 : i32
    %c0_i32_0 = arith.constant 0 : i32
    return %arg0, %c0_i32 : i32, i32
  }
  func.func @transform_5(%arg0: i32, %arg1: i32) -> (i32, i32) {
    %c0_i32 = arith.constant 0 : i32
    %c0_i32_0 = arith.constant 0 : i32
    return %arg0, %c0_i32 : i32, i32
  }
}

module attributes {stable_mosaic.version = 11 : i64} {
  func.func @_mm_bn_kernel(%arg0: i32, %arg1: i32, %arg2: memref<32x128xbf16, #tpu.memory_space<vmem>>, %arg3: memref<128x128xbf16, #tpu.memory_space<vmem>>, %arg4: memref<1x128xf32, #tpu.memory_space<vmem>>, %arg5: memref<1x128xf32, #tpu.memory_space<vmem>>, %arg6: memref<32x128xbf16, #tpu.memory_space<vmem>>, %arg7: memref<32x128xf32, #tpu.memory_space<vmem>>) attributes {dimension_semantics = [#tpu.dimension_semantics<parallel>, #tpu.dimension_semantics<arbitrary>], iteration_bounds = array<i64: 1, 1>, scalar_prefetch = 0 : i64, scratch_operands = 1 : i64, tpu.core_type = #tpu.core_type<tc>, window_params = [{transform_indices = @transform_0, window_bounds = array<i64: 32, 128>}, {transform_indices = @transform_1, window_bounds = array<i64: 128, 128>}, {pipeline_mode = #tpu.pipeline_mode<synchronous>, transform_indices = @transform_2, window_bounds = array<i64: 1, 128>}, {pipeline_mode = #tpu.pipeline_mode<synchronous>, transform_indices = @transform_3, window_bounds = array<i64: 1, 128>}, {transform_indices = @transform_4, window_bounds = array<i64: 32, 128>}]} {
    %c0_i32 = arith.constant 0 : i32
    %0 = arith.cmpi eq, %arg1, %c0_i32 : i32
    %1 = arith.extui %0 : i1 to i32
    %c0_i32_0 = arith.constant 0 : i32
    %2 = arith.cmpi ne, %1, %c0_i32_0 : i32
    scf.if %2 {
      %cst_10 = arith.constant 0.000000e+00 : f32
      %12 = vector.broadcast %cst_10 : f32 to vector<32x128xf32>
      %c0_11 = arith.constant 0 : index
      %c0_12 = arith.constant 0 : index
      %13 = vector.load %arg7[%c0_11, %c0_12] : memref<32x128xf32, #tpu.memory_space<vmem>>, vector<32x128xf32>
      tpu.vector_store %arg7[%c0_11, %c0_12], %12 {strides = array<i32>} : memref<32x128xf32, #tpu.memory_space<vmem>>, vector<32x128xf32>,
    } else {
    }
    %c0 = arith.constant 0 : index
    %c0_1 = arith.constant 0 : index
    %3 = vector.load %arg7[%c0, %c0_1] : memref<32x128xf32, #tpu.memory_space<vmem>>, vector<32x128xf32>
    %c0_2 = arith.constant 0 : index
    %c0_3 = arith.constant 0 : index
    %4 = vector.load %arg2[%c0_2, %c0_3] : memref<32x128xbf16, #tpu.memory_space<vmem>>, vector<32x128xbf16>
    %c0_4 = arith.constant 0 : index
    %c0_5 = arith.constant 0 : index
    %5 = vector.load %arg3[%c0_4, %c0_5] : memref<128x128xbf16, #tpu.memory_space<vmem>>, vector<128x128xbf16>
    %cst = arith.constant dense<0.000000e+00> : vector<32x128xf32>
    %6 = tpu.matmul %4, %5, %cst {dimension_numbers = #tpu.dot_dimension_numbers<[1], [0], [0], [1], [0, 0, 1, 1], [], []>} : vector<32x128xbf16>, vector<128x128xbf16>, vector<32x128xf32> -> vector<32x128xf32>
    %7 = arith.addf %3, %6 : vector<32x128xf32>
    %c0_6 = arith.constant 0 : index
    %c0_7 = arith.constant 0 : index
    %8 = vector.load %arg7[%c0_6, %c0_7] : memref<32x128xf32, #tpu.memory_space<vmem>>, vector<32x128xf32>
    tpu.vector_store %arg7[%c0_6, %c0_7], %7 {strides = array<i32>} : memref<32x128xf32, #tpu.memory_space<vmem>>, vector<32x128xf32>,
    %c0_i32_8 = arith.constant 0 : i32
    %9 = arith.cmpi eq, %arg1, %c0_i32_8 : i32
    %10 = arith.extui %9 : i1 to i32
    %c0_i32_9 = arith.constant 0 : i32
    %11 = arith.cmpi ne, %10, %c0_i32_9 : i32
    scf.if %11 {
      %c0_10 = arith.constant 0 : index
      %c0_11 = arith.constant 0 : index
      %12 = vector.load %arg7[%c0_10, %c0_11] : memref<32x128xf32, #tpu.memory_space<vmem>>, vector<32x128xf32>
      %c0_12 = arith.constant 0 : index
      %c0_13 = arith.constant 0 : index
      %13 = vector.load %arg4[%c0_12, %c0_13] : memref<1x128xf32, #tpu.memory_space<vmem>>, vector<1x128xf32>
      %14 = vector.broadcast %13 : vector<1x128xf32> to vector<32x128xf32>
      %15 = arith.mulf %12, %14 : vector<32x128xf32>
      %c0_14 = arith.constant 0 : index
      %c0_15 = arith.constant 0 : index
      %16 = vector.load %arg5[%c0_14, %c0_15] : memref<1x128xf32, #tpu.memory_space<vmem>>, vector<1x128xf32>
      %17 = vector.broadcast %16 : vector<1x128xf32> to vector<32x128xf32>
      %18 = arith.addf %15, %17 : vector<32x128xf32>
      %cst_16 = arith.constant 0.000000e+00 : f32
      %19 = vector.broadcast %cst_16 : f32 to vector<32x128xf32>
      %20 = arith.maximumf %18, %19 : vector<32x128xf32>
      %21 = arith.truncf %20 : vector<32x128xf32> to vector<32x128xbf16>
      %c0_17 = arith.constant 0 : index
      %c0_18 = arith.constant 0 : index
      %22 = vector.load %arg6[%c0_17, %c0_18] : memref<32x128xbf16, #tpu.memory_space<vmem>>, vector<32x128xbf16>
      tpu.vector_store %arg6[%c0_17, %c0_18], %21 {strides = array<i32>} : memref<32x128xbf16, #tpu.memory_space<vmem>>, vector<32x128xbf16>,
    } else {
    }
    return
  }
  func.func @transform_0(%arg0: i32, %arg1: i32) -> (i32, i32) {
    %c0_i32 = arith.constant 0 : i32
    return %arg0, %arg1 : i32, i32
  }
  func.func @transform_1(%arg0: i32, %arg1: i32) -> (i32, i32) {
    %c0_i32 = arith.constant 0 : i32
    %c0_i32_0 = arith.constant 0 : i32
    return %arg1, %c0_i32 : i32, i32
  }
  func.func @transform_2(%arg0: i32, %arg1: i32) -> (i32, i32) {
    %c0_i32 = arith.constant 0 : i32
    %c0_i32_0 = arith.constant 0 : i32
    %c0_i32_1 = arith.constant 0 : i32
    return %c0_i32, %c0_i32_0 : i32, i32
  }
  func.func @transform_3(%arg0: i32, %arg1: i32) -> (i32, i32) {
    %c0_i32 = arith.constant 0 : i32
    %c0_i32_0 = arith.constant 0 : i32
    %c0_i32_1 = arith.constant 0 : i32
    return %c0_i32, %c0_i32_0 : i32, i32
  }
  func.func @transform_4(%arg0: i32, %arg1: i32) -> (i32, i32) {
    %c0_i32 = arith.constant 0 : i32
    %c0_i32_0 = arith.constant 0 : i32
    return %arg0, %c0_i32 : i32, i32
  }
}

module attributes {stable_mosaic.version = 11 : i64} {
  func.func @_mm_bn_kernel(%arg0: i32, %arg1: i32, %arg2: memref<16x128xbf16, #tpu.memory_space<vmem>>, %arg3: memref<128x128xbf16, #tpu.memory_space<vmem>>, %arg4: memref<1x128xf32, #tpu.memory_space<vmem>>, %arg5: memref<1x128xf32, #tpu.memory_space<vmem>>, %arg6: memref<16x128xbf16, #tpu.memory_space<vmem>>, %arg7: memref<16x128xf32, #tpu.memory_space<vmem>>) attributes {dimension_semantics = [#tpu.dimension_semantics<parallel>, #tpu.dimension_semantics<arbitrary>], iteration_bounds = array<i64: 1, 9>, scalar_prefetch = 0 : i64, scratch_operands = 1 : i64, tpu.core_type = #tpu.core_type<tc>, window_params = [{transform_indices = @transform_0, window_bounds = array<i64: 16, 128>}, {transform_indices = @transform_1, window_bounds = array<i64: 128, 128>}, {pipeline_mode = #tpu.pipeline_mode<synchronous>, transform_indices = @transform_2, window_bounds = array<i64: 1, 128>}, {pipeline_mode = #tpu.pipeline_mode<synchronous>, transform_indices = @transform_3, window_bounds = array<i64: 1, 128>}, {transform_indices = @transform_4, window_bounds = array<i64: 16, 128>}]} {
    %c0_i32 = arith.constant 0 : i32
    %0 = arith.cmpi eq, %arg1, %c0_i32 : i32
    %1 = arith.extui %0 : i1 to i32
    %c0_i32_0 = arith.constant 0 : i32
    %2 = arith.cmpi ne, %1, %c0_i32_0 : i32
    scf.if %2 {
      %cst_9 = arith.constant 0.000000e+00 : f32
      %12 = vector.broadcast %cst_9 : f32 to vector<16x128xf32>
      %c0_10 = arith.constant 0 : index
      %c0_11 = arith.constant 0 : index
      %13 = vector.load %arg7[%c0_10, %c0_11] : memref<16x128xf32, #tpu.memory_space<vmem>>, vector<16x128xf32>
      tpu.vector_store %arg7[%c0_10, %c0_11], %12 {strides = array<i32>} : memref<16x128xf32, #tpu.memory_space<vmem>>, vector<16x128xf32>,
    } else {
    }
    %c0 = arith.constant 0 : index
    %c0_1 = arith.constant 0 : index
    %3 = vector.load %arg7[%c0, %c0_1] : memref<16x128xf32, #tpu.memory_space<vmem>>, vector<16x128xf32>
    %c0_2 = arith.constant 0 : index
    %c0_3 = arith.constant 0 : index
    %4 = vector.load %arg2[%c0_2, %c0_3] : memref<16x128xbf16, #tpu.memory_space<vmem>>, vector<16x128xbf16>
    %c0_4 = arith.constant 0 : index
    %c0_5 = arith.constant 0 : index
    %5 = vector.load %arg3[%c0_4, %c0_5] : memref<128x128xbf16, #tpu.memory_space<vmem>>, vector<128x128xbf16>
    %cst = arith.constant dense<0.000000e+00> : vector<16x128xf32>
    %6 = tpu.matmul %4, %5, %cst {dimension_numbers = #tpu.dot_dimension_numbers<[1], [0], [0], [1], [0, 0, 1, 1], [], []>} : vector<16x128xbf16>, vector<128x128xbf16>, vector<16x128xf32> -> vector<16x128xf32>
    %7 = arith.addf %3, %6 : vector<16x128xf32>
    %c0_6 = arith.constant 0 : index
    %c0_7 = arith.constant 0 : index
    %8 = vector.load %arg7[%c0_6, %c0_7] : memref<16x128xf32, #tpu.memory_space<vmem>>, vector<16x128xf32>
    tpu.vector_store %arg7[%c0_6, %c0_7], %7 {strides = array<i32>} : memref<16x128xf32, #tpu.memory_space<vmem>>, vector<16x128xf32>,
    %c8_i32 = arith.constant 8 : i32
    %9 = arith.cmpi eq, %arg1, %c8_i32 : i32
    %10 = arith.extui %9 : i1 to i32
    %c0_i32_8 = arith.constant 0 : i32
    %11 = arith.cmpi ne, %10, %c0_i32_8 : i32
    scf.if %11 {
      %c0_9 = arith.constant 0 : index
      %c0_10 = arith.constant 0 : index
      %12 = vector.load %arg7[%c0_9, %c0_10] : memref<16x128xf32, #tpu.memory_space<vmem>>, vector<16x128xf32>
      %c0_11 = arith.constant 0 : index
      %c0_12 = arith.constant 0 : index
      %13 = vector.load %arg4[%c0_11, %c0_12] : memref<1x128xf32, #tpu.memory_space<vmem>>, vector<1x128xf32>
      %14 = vector.broadcast %13 : vector<1x128xf32> to vector<16x128xf32>
      %15 = arith.mulf %12, %14 : vector<16x128xf32>
      %c0_13 = arith.constant 0 : index
      %c0_14 = arith.constant 0 : index
      %16 = vector.load %arg5[%c0_13, %c0_14] : memref<1x128xf32, #tpu.memory_space<vmem>>, vector<1x128xf32>
      %17 = vector.broadcast %16 : vector<1x128xf32> to vector<16x128xf32>
      %18 = arith.addf %15, %17 : vector<16x128xf32>
      %cst_15 = arith.constant 0.000000e+00 : f32
      %19 = vector.broadcast %cst_15 : f32 to vector<16x128xf32>
      %20 = arith.maximumf %18, %19 : vector<16x128xf32>
      %21 = arith.truncf %20 : vector<16x128xf32> to vector<16x128xbf16>
      %c0_16 = arith.constant 0 : index
      %c0_17 = arith.constant 0 : index
      %22 = vector.load %arg6[%c0_16, %c0_17] : memref<16x128xbf16, #tpu.memory_space<vmem>>, vector<16x128xbf16>
      tpu.vector_store %arg6[%c0_16, %c0_17], %21 {strides = array<i32>} : memref<16x128xbf16, #tpu.memory_space<vmem>>, vector<16x128xbf16>,
    } else {
    }
    return
  }
  func.func @transform_0(%arg0: i32, %arg1: i32) -> (i32, i32) {
    %c0_i32 = arith.constant 0 : i32
    return %arg0, %arg1 : i32, i32
  }
  func.func @transform_1(%arg0: i32, %arg1: i32) -> (i32, i32) {
    %c0_i32 = arith.constant 0 : i32
    %c0_i32_0 = arith.constant 0 : i32
    return %arg1, %c0_i32 : i32, i32
  }
  func.func @transform_2(%arg0: i32, %arg1: i32) -> (i32, i32) {
    %c0_i32 = arith.constant 0 : i32
    %c0_i32_0 = arith.constant 0 : i32
    %c0_i32_1 = arith.constant 0 : i32
    return %c0_i32, %c0_i32_0 : i32, i32
  }
  func.func @transform_3(%arg0: i32, %arg1: i32) -> (i32, i32) {
    %c0_i32 = arith.constant 0 : i32
    %c0_i32_0 = arith.constant 0 : i32
    %c0_i32_1 = arith.constant 0 : i32
    return %c0_i32, %c0_i32_0 : i32, i32
  }
  func.func @transform_4(%arg0: i32, %arg1: i32) -> (i32, i32) {
    %c0_i32 = arith.constant 0 : i32
    %c0_i32_0 = arith.constant 0 : i32
    return %arg0, %c0_i32 : i32, i32
  }
}

module attributes {stable_mosaic.version = 11 : i64} {
  func.func @_mm_bn_kernel(%arg0: i32, %arg1: i32, %arg2: memref<16x128xbf16, #tpu.memory_space<vmem>>, %arg3: memref<128x256xbf16, #tpu.memory_space<vmem>>, %arg4: memref<1x256xf32, #tpu.memory_space<vmem>>, %arg5: memref<1x256xf32, #tpu.memory_space<vmem>>, %arg6: memref<16x256xbf16, #tpu.memory_space<vmem>>, %arg7: memref<16x256xf32, #tpu.memory_space<vmem>>) attributes {dimension_semantics = [#tpu.dimension_semantics<parallel>, #tpu.dimension_semantics<arbitrary>], iteration_bounds = array<i64: 1, 1>, scalar_prefetch = 0 : i64, scratch_operands = 1 : i64, tpu.core_type = #tpu.core_type<tc>, window_params = [{transform_indices = @transform_0, window_bounds = array<i64: 16, 128>}, {transform_indices = @transform_1, window_bounds = array<i64: 128, 256>}, {pipeline_mode = #tpu.pipeline_mode<synchronous>, transform_indices = @transform_2, window_bounds = array<i64: 1, 256>}, {pipeline_mode = #tpu.pipeline_mode<synchronous>, transform_indices = @transform_3, window_bounds = array<i64: 1, 256>}, {transform_indices = @transform_4, window_bounds = array<i64: 16, 256>}]} {
    %c0_i32 = arith.constant 0 : i32
    %0 = arith.cmpi eq, %arg1, %c0_i32 : i32
    %1 = arith.extui %0 : i1 to i32
    %c0_i32_0 = arith.constant 0 : i32
    %2 = arith.cmpi ne, %1, %c0_i32_0 : i32
    scf.if %2 {
      %cst_10 = arith.constant 0.000000e+00 : f32
      %12 = vector.broadcast %cst_10 : f32 to vector<16x256xf32>
      %c0_11 = arith.constant 0 : index
      %c0_12 = arith.constant 0 : index
      %13 = vector.load %arg7[%c0_11, %c0_12] : memref<16x256xf32, #tpu.memory_space<vmem>>, vector<16x256xf32>
      tpu.vector_store %arg7[%c0_11, %c0_12], %12 {strides = array<i32>} : memref<16x256xf32, #tpu.memory_space<vmem>>, vector<16x256xf32>,
    } else {
    }
    %c0 = arith.constant 0 : index
    %c0_1 = arith.constant 0 : index
    %3 = vector.load %arg7[%c0, %c0_1] : memref<16x256xf32, #tpu.memory_space<vmem>>, vector<16x256xf32>
    %c0_2 = arith.constant 0 : index
    %c0_3 = arith.constant 0 : index
    %4 = vector.load %arg2[%c0_2, %c0_3] : memref<16x128xbf16, #tpu.memory_space<vmem>>, vector<16x128xbf16>
    %c0_4 = arith.constant 0 : index
    %c0_5 = arith.constant 0 : index
    %5 = vector.load %arg3[%c0_4, %c0_5] : memref<128x256xbf16, #tpu.memory_space<vmem>>, vector<128x256xbf16>
    %cst = arith.constant dense<0.000000e+00> : vector<16x256xf32>
    %6 = tpu.matmul %4, %5, %cst {dimension_numbers = #tpu.dot_dimension_numbers<[1], [0], [0], [1], [0, 0, 1, 1], [], []>} : vector<16x128xbf16>, vector<128x256xbf16>, vector<16x256xf32> -> vector<16x256xf32>
    %7 = arith.addf %3, %6 : vector<16x256xf32>
    %c0_6 = arith.constant 0 : index
    %c0_7 = arith.constant 0 : index
    %8 = vector.load %arg7[%c0_6, %c0_7] : memref<16x256xf32, #tpu.memory_space<vmem>>, vector<16x256xf32>
    tpu.vector_store %arg7[%c0_6, %c0_7], %7 {strides = array<i32>} : memref<16x256xf32, #tpu.memory_space<vmem>>, vector<16x256xf32>,
    %c0_i32_8 = arith.constant 0 : i32
    %9 = arith.cmpi eq, %arg1, %c0_i32_8 : i32
    %10 = arith.extui %9 : i1 to i32
    %c0_i32_9 = arith.constant 0 : i32
    %11 = arith.cmpi ne, %10, %c0_i32_9 : i32
    scf.if %11 {
      %c0_10 = arith.constant 0 : index
      %c0_11 = arith.constant 0 : index
      %12 = vector.load %arg7[%c0_10, %c0_11] : memref<16x256xf32, #tpu.memory_space<vmem>>, vector<16x256xf32>
      %c0_12 = arith.constant 0 : index
      %c0_13 = arith.constant 0 : index
      %13 = vector.load %arg4[%c0_12, %c0_13] : memref<1x256xf32, #tpu.memory_space<vmem>>, vector<1x256xf32>
      %14 = vector.broadcast %13 : vector<1x256xf32> to vector<16x256xf32>
      %15 = arith.mulf %12, %14 : vector<16x256xf32>
      %c0_14 = arith.constant 0 : index
      %c0_15 = arith.constant 0 : index
      %16 = vector.load %arg5[%c0_14, %c0_15] : memref<1x256xf32, #tpu.memory_space<vmem>>, vector<1x256xf32>
      %17 = vector.broadcast %16 : vector<1x256xf32> to vector<16x256xf32>
      %18 = arith.addf %15, %17 : vector<16x256xf32>
      %19 = arith.truncf %18 : vector<16x256xf32> to vector<16x256xbf16>
      %c0_16 = arith.constant 0 : index
      %c0_17 = arith.constant 0 : index
      %20 = vector.load %arg6[%c0_16, %c0_17] : memref<16x256xbf16, #tpu.memory_space<vmem>>, vector<16x256xbf16>
      tpu.vector_store %arg6[%c0_16, %c0_17], %19 {strides = array<i32>} : memref<16x256xbf16, #tpu.memory_space<vmem>>, vector<16x256xbf16>,
    } else {
    }
    return
  }
  func.func @transform_0(%arg0: i32, %arg1: i32) -> (i32, i32) {
    %c0_i32 = arith.constant 0 : i32
    return %arg0, %arg1 : i32, i32
  }
  func.func @transform_1(%arg0: i32, %arg1: i32) -> (i32, i32) {
    %c0_i32 = arith.constant 0 : i32
    %c0_i32_0 = arith.constant 0 : i32
    return %arg1, %c0_i32 : i32, i32
  }
  func.func @transform_2(%arg0: i32, %arg1: i32) -> (i32, i32) {
    %c0_i32 = arith.constant 0 : i32
    %c0_i32_0 = arith.constant 0 : i32
    %c0_i32_1 = arith.constant 0 : i32
    return %c0_i32, %c0_i32_0 : i32, i32
  }
  func.func @transform_3(%arg0: i32, %arg1: i32) -> (i32, i32) {
    %c0_i32 = arith.constant 0 : i32
    %c0_i32_0 = arith.constant 0 : i32
    %c0_i32_1 = arith.constant 0 : i32
    return %c0_i32, %c0_i32_0 : i32, i32
  }
  func.func @transform_4(%arg0: i32, %arg1: i32) -> (i32, i32) {
    %c0_i32 = arith.constant 0 : i32
    %c0_i32_0 = arith.constant 0 : i32
    return %arg0, %c0_i32 : i32, i32
  }
}

module attributes {stable_mosaic.version = 11 : i64} {
  func.func @_mm_bn_res_kernel(%arg0: i32, %arg1: i32, %arg2: memref<16x128xbf16, #tpu.memory_space<vmem>>, %arg3: memref<128x256xbf16, #tpu.memory_space<vmem>>, %arg4: memref<1x256xf32, #tpu.memory_space<vmem>>, %arg5: memref<1x256xf32, #tpu.memory_space<vmem>>, %arg6: memref<16x256xbf16, #tpu.memory_space<vmem>>, %arg7: memref<16x256xbf16, #tpu.memory_space<vmem>>, %arg8: memref<16x256xf32, #tpu.memory_space<vmem>>) attributes {dimension_semantics = [#tpu.dimension_semantics<parallel>, #tpu.dimension_semantics<arbitrary>], iteration_bounds = array<i64: 1, 1>, scalar_prefetch = 0 : i64, scratch_operands = 1 : i64, tpu.core_type = #tpu.core_type<tc>, window_params = [{transform_indices = @transform_0, window_bounds = array<i64: 16, 128>}, {transform_indices = @transform_1, window_bounds = array<i64: 128, 256>}, {pipeline_mode = #tpu.pipeline_mode<synchronous>, transform_indices = @transform_2, window_bounds = array<i64: 1, 256>}, {pipeline_mode = #tpu.pipeline_mode<synchronous>, transform_indices = @transform_3, window_bounds = array<i64: 1, 256>}, {transform_indices = @transform_4, window_bounds = array<i64: 16, 256>}, {transform_indices = @transform_5, window_bounds = array<i64: 16, 256>}]} {
    %c0_i32 = arith.constant 0 : i32
    %0 = arith.cmpi eq, %arg1, %c0_i32 : i32
    %1 = arith.extui %0 : i1 to i32
    %c0_i32_0 = arith.constant 0 : i32
    %2 = arith.cmpi ne, %1, %c0_i32_0 : i32
    scf.if %2 {
      %cst_10 = arith.constant 0.000000e+00 : f32
      %12 = vector.broadcast %cst_10 : f32 to vector<16x256xf32>
      %c0_11 = arith.constant 0 : index
      %c0_12 = arith.constant 0 : index
      %13 = vector.load %arg8[%c0_11, %c0_12] : memref<16x256xf32, #tpu.memory_space<vmem>>, vector<16x256xf32>
      tpu.vector_store %arg8[%c0_11, %c0_12], %12 {strides = array<i32>} : memref<16x256xf32, #tpu.memory_space<vmem>>, vector<16x256xf32>,
    } else {
    }
    %c0 = arith.constant 0 : index
    %c0_1 = arith.constant 0 : index
    %3 = vector.load %arg8[%c0, %c0_1] : memref<16x256xf32, #tpu.memory_space<vmem>>, vector<16x256xf32>
    %c0_2 = arith.constant 0 : index
    %c0_3 = arith.constant 0 : index
    %4 = vector.load %arg2[%c0_2, %c0_3] : memref<16x128xbf16, #tpu.memory_space<vmem>>, vector<16x128xbf16>
    %c0_4 = arith.constant 0 : index
    %c0_5 = arith.constant 0 : index
    %5 = vector.load %arg3[%c0_4, %c0_5] : memref<128x256xbf16, #tpu.memory_space<vmem>>, vector<128x256xbf16>
    %cst = arith.constant dense<0.000000e+00> : vector<16x256xf32>
    %6 = tpu.matmul %4, %5, %cst {dimension_numbers = #tpu.dot_dimension_numbers<[1], [0], [0], [1], [0, 0, 1, 1], [], []>} : vector<16x128xbf16>, vector<128x256xbf16>, vector<16x256xf32> -> vector<16x256xf32>
    %7 = arith.addf %3, %6 : vector<16x256xf32>
    %c0_6 = arith.constant 0 : index
    %c0_7 = arith.constant 0 : index
    %8 = vector.load %arg8[%c0_6, %c0_7] : memref<16x256xf32, #tpu.memory_space<vmem>>, vector<16x256xf32>
    tpu.vector_store %arg8[%c0_6, %c0_7], %7 {strides = array<i32>} : memref<16x256xf32, #tpu.memory_space<vmem>>, vector<16x256xf32>,
    %c0_i32_8 = arith.constant 0 : i32
    %9 = arith.cmpi eq, %arg1, %c0_i32_8 : i32
    %10 = arith.extui %9 : i1 to i32
    %c0_i32_9 = arith.constant 0 : i32
    %11 = arith.cmpi ne, %10, %c0_i32_9 : i32
    scf.if %11 {
      %c0_10 = arith.constant 0 : index
      %c0_11 = arith.constant 0 : index
      %12 = vector.load %arg8[%c0_10, %c0_11] : memref<16x256xf32, #tpu.memory_space<vmem>>, vector<16x256xf32>
      %c0_12 = arith.constant 0 : index
      %c0_13 = arith.constant 0 : index
      %13 = vector.load %arg4[%c0_12, %c0_13] : memref<1x256xf32, #tpu.memory_space<vmem>>, vector<1x256xf32>
      %14 = vector.broadcast %13 : vector<1x256xf32> to vector<16x256xf32>
      %15 = arith.mulf %12, %14 : vector<16x256xf32>
      %c0_14 = arith.constant 0 : index
      %c0_15 = arith.constant 0 : index
      %16 = vector.load %arg5[%c0_14, %c0_15] : memref<1x256xf32, #tpu.memory_space<vmem>>, vector<1x256xf32>
      %17 = vector.broadcast %16 : vector<1x256xf32> to vector<16x256xf32>
      %18 = arith.addf %15, %17 : vector<16x256xf32>
      %c0_16 = arith.constant 0 : index
      %c0_17 = arith.constant 0 : index
      %19 = vector.load %arg6[%c0_16, %c0_17] : memref<16x256xbf16, #tpu.memory_space<vmem>>, vector<16x256xbf16>
      %20 = arith.extf %19 : vector<16x256xbf16> to vector<16x256xf32>
      %21 = arith.addf %18, %20 : vector<16x256xf32>
      %cst_18 = arith.constant 0.000000e+00 : f32
      %22 = vector.broadcast %cst_18 : f32 to vector<16x256xf32>
      %23 = arith.maximumf %21, %22 : vector<16x256xf32>
      %24 = arith.truncf %23 : vector<16x256xf32> to vector<16x256xbf16>
      %c0_19 = arith.constant 0 : index
      %c0_20 = arith.constant 0 : index
      %25 = vector.load %arg7[%c0_19, %c0_20] : memref<16x256xbf16, #tpu.memory_space<vmem>>, vector<16x256xbf16>
      tpu.vector_store %arg7[%c0_19, %c0_20], %24 {strides = array<i32>} : memref<16x256xbf16, #tpu.memory_space<vmem>>, vector<16x256xbf16>,
    } else {
    }
    return
  }
  func.func @transform_0(%arg0: i32, %arg1: i32) -> (i32, i32) {
    %c0_i32 = arith.constant 0 : i32
    return %arg0, %arg1 : i32, i32
  }
  func.func @transform_1(%arg0: i32, %arg1: i32) -> (i32, i32) {
    %c0_i32 = arith.constant 0 : i32
    %c0_i32_0 = arith.constant 0 : i32
    return %arg1, %c0_i32 : i32, i32
  }
  func.func @transform_2(%arg0: i32, %arg1: i32) -> (i32, i32) {
    %c0_i32 = arith.constant 0 : i32
    %c0_i32_0 = arith.constant 0 : i32
    %c0_i32_1 = arith.constant 0 : i32
    return %c0_i32, %c0_i32_0 : i32, i32
  }
  func.func @transform_3(%arg0: i32, %arg1: i32) -> (i32, i32) {
    %c0_i32 = arith.constant 0 : i32
    %c0_i32_0 = arith.constant 0 : i32
    %c0_i32_1 = arith.constant 0 : i32
    return %c0_i32, %c0_i32_0 : i32, i32
  }
  func.func @transform_4(%arg0: i32, %arg1: i32) -> (i32, i32) {
    %c0_i32 = arith.constant 0 : i32
    %c0_i32_0 = arith.constant 0 : i32
    return %arg0, %c0_i32 : i32, i32
  }
  func.func @transform_5(%arg0: i32, %arg1: i32) -> (i32, i32) {
    %c0_i32 = arith.constant 0 : i32
    %c0_i32_0 = arith.constant 0 : i32
    return %arg0, %c0_i32 : i32, i32
  }
}

module attributes {stable_mosaic.version = 11 : i64} {
  func.func @_mm_bn_kernel(%arg0: i32, %arg1: i32, %arg2: memref<16x256xbf16, #tpu.memory_space<vmem>>, %arg3: memref<256x128xbf16, #tpu.memory_space<vmem>>, %arg4: memref<1x128xf32, #tpu.memory_space<vmem>>, %arg5: memref<1x128xf32, #tpu.memory_space<vmem>>, %arg6: memref<16x128xbf16, #tpu.memory_space<vmem>>, %arg7: memref<16x128xf32, #tpu.memory_space<vmem>>) attributes {dimension_semantics = [#tpu.dimension_semantics<parallel>, #tpu.dimension_semantics<arbitrary>], iteration_bounds = array<i64: 1, 1>, scalar_prefetch = 0 : i64, scratch_operands = 1 : i64, tpu.core_type = #tpu.core_type<tc>, window_params = [{transform_indices = @transform_0, window_bounds = array<i64: 16, 256>}, {transform_indices = @transform_1, window_bounds = array<i64: 256, 128>}, {pipeline_mode = #tpu.pipeline_mode<synchronous>, transform_indices = @transform_2, window_bounds = array<i64: 1, 128>}, {pipeline_mode = #tpu.pipeline_mode<synchronous>, transform_indices = @transform_3, window_bounds = array<i64: 1, 128>}, {transform_indices = @transform_4, window_bounds = array<i64: 16, 128>}]} {
    %c0_i32 = arith.constant 0 : i32
    %0 = arith.cmpi eq, %arg1, %c0_i32 : i32
    %1 = arith.extui %0 : i1 to i32
    %c0_i32_0 = arith.constant 0 : i32
    %2 = arith.cmpi ne, %1, %c0_i32_0 : i32
    scf.if %2 {
      %cst_10 = arith.constant 0.000000e+00 : f32
      %12 = vector.broadcast %cst_10 : f32 to vector<16x128xf32>
      %c0_11 = arith.constant 0 : index
      %c0_12 = arith.constant 0 : index
      %13 = vector.load %arg7[%c0_11, %c0_12] : memref<16x128xf32, #tpu.memory_space<vmem>>, vector<16x128xf32>
      tpu.vector_store %arg7[%c0_11, %c0_12], %12 {strides = array<i32>} : memref<16x128xf32, #tpu.memory_space<vmem>>, vector<16x128xf32>,
    } else {
    }
    %c0 = arith.constant 0 : index
    %c0_1 = arith.constant 0 : index
    %3 = vector.load %arg7[%c0, %c0_1] : memref<16x128xf32, #tpu.memory_space<vmem>>, vector<16x128xf32>
    %c0_2 = arith.constant 0 : index
    %c0_3 = arith.constant 0 : index
    %4 = vector.load %arg2[%c0_2, %c0_3] : memref<16x256xbf16, #tpu.memory_space<vmem>>, vector<16x256xbf16>
    %c0_4 = arith.constant 0 : index
    %c0_5 = arith.constant 0 : index
    %5 = vector.load %arg3[%c0_4, %c0_5] : memref<256x128xbf16, #tpu.memory_space<vmem>>, vector<256x128xbf16>
    %cst = arith.constant dense<0.000000e+00> : vector<16x128xf32>
    %6 = tpu.matmul %4, %5, %cst {dimension_numbers = #tpu.dot_dimension_numbers<[1], [0], [0], [1], [0, 0, 1, 1], [], []>} : vector<16x256xbf16>, vector<256x128xbf16>, vector<16x128xf32> -> vector<16x128xf32>
    %7 = arith.addf %3, %6 : vector<16x128xf32>
    %c0_6 = arith.constant 0 : index
    %c0_7 = arith.constant 0 : index
    %8 = vector.load %arg7[%c0_6, %c0_7] : memref<16x128xf32, #tpu.memory_space<vmem>>, vector<16x128xf32>
    tpu.vector_store %arg7[%c0_6, %c0_7], %7 {strides = array<i32>} : memref<16x128xf32, #tpu.memory_space<vmem>>, vector<16x128xf32>,
    %c0_i32_8 = arith.constant 0 : i32
    %9 = arith.cmpi eq, %arg1, %c0_i32_8 : i32
    %10 = arith.extui %9 : i1 to i32
    %c0_i32_9 = arith.constant 0 : i32
    %11 = arith.cmpi ne, %10, %c0_i32_9 : i32
    scf.if %11 {
      %c0_10 = arith.constant 0 : index
      %c0_11 = arith.constant 0 : index
      %12 = vector.load %arg7[%c0_10, %c0_11] : memref<16x128xf32, #tpu.memory_space<vmem>>, vector<16x128xf32>
      %c0_12 = arith.constant 0 : index
      %c0_13 = arith.constant 0 : index
      %13 = vector.load %arg4[%c0_12, %c0_13] : memref<1x128xf32, #tpu.memory_space<vmem>>, vector<1x128xf32>
      %14 = vector.broadcast %13 : vector<1x128xf32> to vector<16x128xf32>
      %15 = arith.mulf %12, %14 : vector<16x128xf32>
      %c0_14 = arith.constant 0 : index
      %c0_15 = arith.constant 0 : index
      %16 = vector.load %arg5[%c0_14, %c0_15] : memref<1x128xf32, #tpu.memory_space<vmem>>, vector<1x128xf32>
      %17 = vector.broadcast %16 : vector<1x128xf32> to vector<16x128xf32>
      %18 = arith.addf %15, %17 : vector<16x128xf32>
      %cst_16 = arith.constant 0.000000e+00 : f32
      %19 = vector.broadcast %cst_16 : f32 to vector<16x128xf32>
      %20 = arith.maximumf %18, %19 : vector<16x128xf32>
      %21 = arith.truncf %20 : vector<16x128xf32> to vector<16x128xbf16>
      %c0_17 = arith.constant 0 : index
      %c0_18 = arith.constant 0 : index
      %22 = vector.load %arg6[%c0_17, %c0_18] : memref<16x128xbf16, #tpu.memory_space<vmem>>, vector<16x128xbf16>
      tpu.vector_store %arg6[%c0_17, %c0_18], %21 {strides = array<i32>} : memref<16x128xbf16, #tpu.memory_space<vmem>>, vector<16x128xbf16>,
    } else {
    }
    return
  }
  func.func @transform_0(%arg0: i32, %arg1: i32) -> (i32, i32) {
    %c0_i32 = arith.constant 0 : i32
    return %arg0, %arg1 : i32, i32
  }
  func.func @transform_1(%arg0: i32, %arg1: i32) -> (i32, i32) {
    %c0_i32 = arith.constant 0 : i32
    %c0_i32_0 = arith.constant 0 : i32
    return %arg1, %c0_i32 : i32, i32
  }
  func.func @transform_2(%arg0: i32, %arg1: i32) -> (i32, i32) {
    %c0_i32 = arith.constant 0 : i32
    %c0_i32_0 = arith.constant 0 : i32
    %c0_i32_1 = arith.constant 0 : i32
    return %c0_i32, %c0_i32_0 : i32, i32
  }
  func.func @transform_3(%arg0: i32, %arg1: i32) -> (i32, i32) {
    %c0_i32 = arith.constant 0 : i32
    %c0_i32_0 = arith.constant 0 : i32
    %c0_i32_1 = arith.constant 0 : i32
    return %c0_i32, %c0_i32_0 : i32, i32
  }
  func.func @transform_4(%arg0: i32, %arg1: i32) -> (i32, i32) {
    %c0_i32 = arith.constant 0 : i32
    %c0_i32_0 = arith.constant 0 : i32
    return %arg0, %c0_i32 : i32, i32
  }
}

module attributes {stable_mosaic.version = 11 : i64} {
  func.func @_mm_bn_kernel(%arg0: i32, %arg1: i32, %arg2: memref<16x256xbf16, #tpu.memory_space<vmem>>, %arg3: memref<256x128xbf16, #tpu.memory_space<vmem>>, %arg4: memref<1x128xf32, #tpu.memory_space<vmem>>, %arg5: memref<1x128xf32, #tpu.memory_space<vmem>>, %arg6: memref<16x128xbf16, #tpu.memory_space<vmem>>, %arg7: memref<16x128xf32, #tpu.memory_space<vmem>>) attributes {dimension_semantics = [#tpu.dimension_semantics<parallel>, #tpu.dimension_semantics<arbitrary>], iteration_bounds = array<i64: 1, 1>, scalar_prefetch = 0 : i64, scratch_operands = 1 : i64, tpu.core_type = #tpu.core_type<tc>, window_params = [{transform_indices = @transform_0, window_bounds = array<i64: 16, 256>}, {transform_indices = @transform_1, window_bounds = array<i64: 256, 128>}, {pipeline_mode = #tpu.pipeline_mode<synchronous>, transform_indices = @transform_2, window_bounds = array<i64: 1, 128>}, {pipeline_mode = #tpu.pipeline_mode<synchronous>, transform_indices = @transform_3, window_bounds = array<i64: 1, 128>}, {transform_indices = @transform_4, window_bounds = array<i64: 16, 128>}]} {
    %c0_i32 = arith.constant 0 : i32
    %0 = arith.cmpi eq, %arg1, %c0_i32 : i32
    %1 = arith.extui %0 : i1 to i32
    %c0_i32_0 = arith.constant 0 : i32
    %2 = arith.cmpi ne, %1, %c0_i32_0 : i32
    scf.if %2 {
      %cst_10 = arith.constant 0.000000e+00 : f32
      %12 = vector.broadcast %cst_10 : f32 to vector<16x128xf32>
      %c0_11 = arith.constant 0 : index
      %c0_12 = arith.constant 0 : index
      %13 = vector.load %arg7[%c0_11, %c0_12] : memref<16x128xf32, #tpu.memory_space<vmem>>, vector<16x128xf32>
      tpu.vector_store %arg7[%c0_11, %c0_12], %12 {strides = array<i32>} : memref<16x128xf32, #tpu.memory_space<vmem>>, vector<16x128xf32>,
    } else {
    }
    %c0 = arith.constant 0 : index
    %c0_1 = arith.constant 0 : index
    %3 = vector.load %arg7[%c0, %c0_1] : memref<16x128xf32, #tpu.memory_space<vmem>>, vector<16x128xf32>
    %c0_2 = arith.constant 0 : index
    %c0_3 = arith.constant 0 : index
    %4 = vector.load %arg2[%c0_2, %c0_3] : memref<16x256xbf16, #tpu.memory_space<vmem>>, vector<16x256xbf16>
    %c0_4 = arith.constant 0 : index
    %c0_5 = arith.constant 0 : index
    %5 = vector.load %arg3[%c0_4, %c0_5] : memref<256x128xbf16, #tpu.memory_space<vmem>>, vector<256x128xbf16>
    %cst = arith.constant dense<0.000000e+00> : vector<16x128xf32>
    %6 = tpu.matmul %4, %5, %cst {dimension_numbers = #tpu.dot_dimension_numbers<[1], [0], [0], [1], [0, 0, 1, 1], [], []>} : vector<16x256xbf16>, vector<256x128xbf16>, vector<16x128xf32> -> vector<16x128xf32>
    %7 = arith.addf %3, %6 : vector<16x128xf32>
    %c0_6 = arith.constant 0 : index
    %c0_7 = arith.constant 0 : index
    %8 = vector.load %arg7[%c0_6, %c0_7] : memref<16x128xf32, #tpu.memory_space<vmem>>, vector<16x128xf32>
    tpu.vector_store %arg7[%c0_6, %c0_7], %7 {strides = array<i32>} : memref<16x128xf32, #tpu.memory_space<vmem>>, vector<16x128xf32>,
    %c0_i32_8 = arith.constant 0 : i32
    %9 = arith.cmpi eq, %arg1, %c0_i32_8 : i32
    %10 = arith.extui %9 : i1 to i32
    %c0_i32_9 = arith.constant 0 : i32
    %11 = arith.cmpi ne, %10, %c0_i32_9 : i32
    scf.if %11 {
      %c0_10 = arith.constant 0 : index
      %c0_11 = arith.constant 0 : index
      %12 = vector.load %arg7[%c0_10, %c0_11] : memref<16x128xf32, #tpu.memory_space<vmem>>, vector<16x128xf32>
      %c0_12 = arith.constant 0 : index
      %c0_13 = arith.constant 0 : index
      %13 = vector.load %arg4[%c0_12, %c0_13] : memref<1x128xf32, #tpu.memory_space<vmem>>, vector<1x128xf32>
      %14 = vector.broadcast %13 : vector<1x128xf32> to vector<16x128xf32>
      %15 = arith.mulf %12, %14 : vector<16x128xf32>
      %c0_14 = arith.constant 0 : index
      %c0_15 = arith.constant 0 : index
      %16 = vector.load %arg5[%c0_14, %c0_15] : memref<1x128xf32, #tpu.memory_space<vmem>>, vector<1x128xf32>
      %17 = vector.broadcast %16 : vector<1x128xf32> to vector<16x128xf32>
      %18 = arith.addf %15, %17 : vector<16x128xf32>
      %cst_16 = arith.constant 0.000000e+00 : f32
      %19 = vector.broadcast %cst_16 : f32 to vector<16x128xf32>
      %20 = arith.maximumf %18, %19 : vector<16x128xf32>
      %21 = arith.truncf %20 : vector<16x128xf32> to vector<16x128xbf16>
      %c0_17 = arith.constant 0 : index
      %c0_18 = arith.constant 0 : index
      %22 = vector.load %arg6[%c0_17, %c0_18] : memref<16x128xbf16, #tpu.memory_space<vmem>>, vector<16x128xbf16>
      tpu.vector_store %arg6[%c0_17, %c0_18], %21 {strides = array<i32>} : memref<16x128xbf16, #tpu.memory_space<vmem>>, vector<16x128xbf16>,
    } else {
    }
    return
  }
  func.func @transform_0(%arg0: i32, %arg1: i32) -> (i32, i32) {
    %c0_i32 = arith.constant 0 : i32
    return %arg0, %arg1 : i32, i32
  }
  func.func @transform_1(%arg0: i32, %arg1: i32) -> (i32, i32) {
    %c0_i32 = arith.constant 0 : i32
    %c0_i32_0 = arith.constant 0 : i32
    return %arg1, %c0_i32 : i32, i32
  }
  func.func @transform_2(%arg0: i32, %arg1: i32) -> (i32, i32) {
    %c0_i32 = arith.constant 0 : i32
    %c0_i32_0 = arith.constant 0 : i32
    %c0_i32_1 = arith.constant 0 : i32
    return %c0_i32, %c0_i32_0 : i32, i32
  }
  func.func @transform_3(%arg0: i32, %arg1: i32) -> (i32, i32) {
    %c0_i32 = arith.constant 0 : i32
    %c0_i32_0 = arith.constant 0 : i32
    %c0_i32_1 = arith.constant 0 : i32
    return %c0_i32, %c0_i32_0 : i32, i32
  }
  func.func @transform_4(%arg0: i32, %arg1: i32) -> (i32, i32) {
    %c0_i32 = arith.constant 0 : i32
    %c0_i32_0 = arith.constant 0 : i32
    return %arg0, %c0_i32 : i32, i32
  }
}

module attributes {stable_mosaic.version = 11 : i64} {
  func.func @_mm_bn_kernel(%arg0: i32, %arg1: i32, %arg2: memref<16x128xbf16, #tpu.memory_space<vmem>>, %arg3: memref<128x128xbf16, #tpu.memory_space<vmem>>, %arg4: memref<1x128xf32, #tpu.memory_space<vmem>>, %arg5: memref<1x128xf32, #tpu.memory_space<vmem>>, %arg6: memref<16x128xbf16, #tpu.memory_space<vmem>>, %arg7: memref<16x128xf32, #tpu.memory_space<vmem>>) attributes {dimension_semantics = [#tpu.dimension_semantics<parallel>, #tpu.dimension_semantics<arbitrary>], iteration_bounds = array<i64: 1, 9>, scalar_prefetch = 0 : i64, scratch_operands = 1 : i64, tpu.core_type = #tpu.core_type<tc>, window_params = [{transform_indices = @transform_0, window_bounds = array<i64: 16, 128>}, {transform_indices = @transform_1, window_bounds = array<i64: 128, 128>}, {pipeline_mode = #tpu.pipeline_mode<synchronous>, transform_indices = @transform_2, window_bounds = array<i64: 1, 128>}, {pipeline_mode = #tpu.pipeline_mode<synchronous>, transform_indices = @transform_3, window_bounds = array<i64: 1, 128>}, {transform_indices = @transform_4, window_bounds = array<i64: 16, 128>}]} {
    %c0_i32 = arith.constant 0 : i32
    %0 = arith.cmpi eq, %arg1, %c0_i32 : i32
    %1 = arith.extui %0 : i1 to i32
    %c0_i32_0 = arith.constant 0 : i32
    %2 = arith.cmpi ne, %1, %c0_i32_0 : i32
    scf.if %2 {
      %cst_9 = arith.constant 0.000000e+00 : f32
      %12 = vector.broadcast %cst_9 : f32 to vector<16x128xf32>
      %c0_10 = arith.constant 0 : index
      %c0_11 = arith.constant 0 : index
      %13 = vector.load %arg7[%c0_10, %c0_11] : memref<16x128xf32, #tpu.memory_space<vmem>>, vector<16x128xf32>
      tpu.vector_store %arg7[%c0_10, %c0_11], %12 {strides = array<i32>} : memref<16x128xf32, #tpu.memory_space<vmem>>, vector<16x128xf32>,
    } else {
    }
    %c0 = arith.constant 0 : index
    %c0_1 = arith.constant 0 : index
    %3 = vector.load %arg7[%c0, %c0_1] : memref<16x128xf32, #tpu.memory_space<vmem>>, vector<16x128xf32>
    %c0_2 = arith.constant 0 : index
    %c0_3 = arith.constant 0 : index
    %4 = vector.load %arg2[%c0_2, %c0_3] : memref<16x128xbf16, #tpu.memory_space<vmem>>, vector<16x128xbf16>
    %c0_4 = arith.constant 0 : index
    %c0_5 = arith.constant 0 : index
    %5 = vector.load %arg3[%c0_4, %c0_5] : memref<128x128xbf16, #tpu.memory_space<vmem>>, vector<128x128xbf16>
    %cst = arith.constant dense<0.000000e+00> : vector<16x128xf32>
    %6 = tpu.matmul %4, %5, %cst {dimension_numbers = #tpu.dot_dimension_numbers<[1], [0], [0], [1], [0, 0, 1, 1], [], []>} : vector<16x128xbf16>, vector<128x128xbf16>, vector<16x128xf32> -> vector<16x128xf32>
    %7 = arith.addf %3, %6 : vector<16x128xf32>
    %c0_6 = arith.constant 0 : index
    %c0_7 = arith.constant 0 : index
    %8 = vector.load %arg7[%c0_6, %c0_7] : memref<16x128xf32, #tpu.memory_space<vmem>>, vector<16x128xf32>
    tpu.vector_store %arg7[%c0_6, %c0_7], %7 {strides = array<i32>} : memref<16x128xf32, #tpu.memory_space<vmem>>, vector<16x128xf32>,
    %c8_i32 = arith.constant 8 : i32
    %9 = arith.cmpi eq, %arg1, %c8_i32 : i32
    %10 = arith.extui %9 : i1 to i32
    %c0_i32_8 = arith.constant 0 : i32
    %11 = arith.cmpi ne, %10, %c0_i32_8 : i32
    scf.if %11 {
      %c0_9 = arith.constant 0 : index
      %c0_10 = arith.constant 0 : index
      %12 = vector.load %arg7[%c0_9, %c0_10] : memref<16x128xf32, #tpu.memory_space<vmem>>, vector<16x128xf32>
      %c0_11 = arith.constant 0 : index
      %c0_12 = arith.constant 0 : index
      %13 = vector.load %arg4[%c0_11, %c0_12] : memref<1x128xf32, #tpu.memory_space<vmem>>, vector<1x128xf32>
      %14 = vector.broadcast %13 : vector<1x128xf32> to vector<16x128xf32>
      %15 = arith.mulf %12, %14 : vector<16x128xf32>
      %c0_13 = arith.constant 0 : index
      %c0_14 = arith.constant 0 : index
      %16 = vector.load %arg5[%c0_13, %c0_14] : memref<1x128xf32, #tpu.memory_space<vmem>>, vector<1x128xf32>
      %17 = vector.broadcast %16 : vector<1x128xf32> to vector<16x128xf32>
      %18 = arith.addf %15, %17 : vector<16x128xf32>
      %cst_15 = arith.constant 0.000000e+00 : f32
      %19 = vector.broadcast %cst_15 : f32 to vector<16x128xf32>
      %20 = arith.maximumf %18, %19 : vector<16x128xf32>
      %21 = arith.truncf %20 : vector<16x128xf32> to vector<16x128xbf16>
      %c0_16 = arith.constant 0 : index
      %c0_17 = arith.constant 0 : index
      %22 = vector.load %arg6[%c0_16, %c0_17] : memref<16x128xbf16, #tpu.memory_space<vmem>>, vector<16x128xbf16>
      tpu.vector_store %arg6[%c0_16, %c0_17], %21 {strides = array<i32>} : memref<16x128xbf16, #tpu.memory_space<vmem>>, vector<16x128xbf16>,
    } else {
    }
    return
  }
  func.func @transform_0(%arg0: i32, %arg1: i32) -> (i32, i32) {
    %c0_i32 = arith.constant 0 : i32
    return %arg0, %arg1 : i32, i32
  }
  func.func @transform_1(%arg0: i32, %arg1: i32) -> (i32, i32) {
    %c0_i32 = arith.constant 0 : i32
    %c0_i32_0 = arith.constant 0 : i32
    return %arg1, %c0_i32 : i32, i32
  }
  func.func @transform_2(%arg0: i32, %arg1: i32) -> (i32, i32) {
    %c0_i32 = arith.constant 0 : i32
    %c0_i32_0 = arith.constant 0 : i32
    %c0_i32_1 = arith.constant 0 : i32
    return %c0_i32, %c0_i32_0 : i32, i32
  }
  func.func @transform_3(%arg0: i32, %arg1: i32) -> (i32, i32) {
    %c0_i32 = arith.constant 0 : i32
    %c0_i32_0 = arith.constant 0 : i32
    %c0_i32_1 = arith.constant 0 : i32
    return %c0_i32, %c0_i32_0 : i32, i32
  }
  func.func @transform_4(%arg0: i32, %arg1: i32) -> (i32, i32) {
    %c0_i32 = arith.constant 0 : i32
    %c0_i32_0 = arith.constant 0 : i32
    return %arg0, %c0_i32 : i32, i32
  }
}

</mosaic_0001>

<bundles_post_ra>
// kernel: feature_extractor_forward.44
= control target key start
LH: loop header
LB: loop body
LE: loop exit
PB: predicated region body
PF: predicated region fallthrough
CT: control target
= control target key end

     0   :  { %s1613_s15 = smov 0   ;;  %s1615_s16 = smov 0   ;;  %s1859_s0 = inlined_call_operand.vmem [shape: bf16[512,256], index: 0, kind: input, shape index: {}]   ;;  %s1860_s1 = inlined_call_operand.vmem [shape: bf16[256,128], index: 1, kind: input, shape index: {}]   ;;  %s1861_s2 = inlined_call_operand.vmem [shape: f32[1,128], index: 2, kind: input, shape index: {}]   ;;  %s1862_s3 = inlined_call_operand.vmem [shape: f32[1,128], index: 3, kind: input, shape index: {}]   ;;  %s1863_s4 = inlined_call_operand.vmem [shape: bf16[512,128], index: 4, kind: output, shape index: {}]  }
   0x1   :  { %s1617_s17 = smov 0  }
   0x2 LB: > { %s26_s18 = sadd.s32 1, %s1582_s16  ;;  %p1178_p0 = scmp.ge.s32.totalorder %s1586_s17, 1  ;;  %s1586_s17 = sphi %s1617_s17, %s14_s17   ;;  %s1582_s16 = sphi %s1615_s16, %s1865_s16   ;;  %s1578_s15 = sphi %s1613_s15, %s1864_s15  }
   0x3   : > { %p28_p1 = scmp.ge.s32.totalorder %s26_s18, 2  ;;  %p194_p2 = scmp.lt.s32.totalorder %s1586_s17, 3 }
   0x5   : > { %s1867_s18 = smov (%p28_p1, %s26_s18), 0  ;;  %p195_p3 = pnand %p1178_p0, %p194_p2 }
   0x6   : > { %s1179_s5 = sshll.u32 (!%p195_p3), %s1578_s15, 5 }
   0x7   : > { %198 = sbr.rel (%p195_p3) target bundleno = 308 (0x134), region = 36  ;;  %p232_p4 = scmp.lt.s32.totalorder (!%p195_p3), %s1179_s5, 63 }
   0xc   : > { %v1418_v0 = vld [vmem:[%s1860_s1 + $0x38] sm:$0xff]  ;;  %v1417_v2 = vld [vmem:[%s1860_s1 + $0x30] sm:$0xff]  ;;  %v1416_v4 = vld [vmem:[%s1860_s1 + $0x28] sm:$0xff]  ;;  %s1869_s5 = smov (!%p232_p4, %s1179_s5), 63 }
   0xd   : > { %v1426_v1 = vld [vmem:[%s1860_s1 + $0x78] sm:$0xff]  ;;  %642 = vmatpush.bf16.msra.mxu0 %v1418_v0  ;;  %1522 = vmatpush.bf16.msra.mxu2 %v1418_v0  ;;  %v1425_v3 = vld [vmem:[%s1860_s1 + $0x70] sm:$0xff]  ;;  %v1424_v5 = vld [vmem:[%s1860_s1 + $0x68] sm:$0xff]  ;;  %s1378_s21 = sshll.u32 %s1869_s5, 3  ;;  %s1183_s12 = sshll.u32 %s1869_s5, 2 }
   0xe   : > { %731 = vmatpush.bf16.msra.mxu1 %v1426_v1  ;;  %1530 = vmatpush.bf16.msra.mxu3 %v1426_v1  ;;  %v1415_v6 = vld [vmem:[%s1860_s1 + $0x20] sm:$0xff]  ;;  %v1414_v8 = vld [vmem:[%s1860_s1 + $0x18] sm:$0xff]  ;;  %v1413_v10 = vld [vmem:[%s1860_s1 + $0x10] sm:$0xff]  ;;  %s1679_s26 = scalar_lea.vmem %s1859_s0, %s1378_s21  ;;  %s1773_s15 = scalar_lea.vmem %s1863_s4, %s1183_s12 }
   0xf   : > { %v1423_v7 = vld [vmem:[%s1860_s1 + $0x60] sm:$0xff]  ;;  %v1422_v9 = vld [vmem:[%s1860_s1 + $0x58] sm:$0xff]  ;;  %v1421_v11 = vld [vmem:[%s1860_s1 + $0x50] sm:$0xff] }
  0x10   : > { %v1412_v12 = vld [vmem:[%s1860_s1 + $0x8] sm:$0xff]  ;;  %v1411_v14 = vld [vmem:[%s1860_s1] sm:$0xff]  ;;  %v1194_v28 = vld [vmem:[%s1679_s26 + $0x10] sm:$0xf] }
  0x11   : > { %643 = vmatpush.bf16.msra.mxu0 %v1417_v2  ;;  %1523 = vmatpush.bf16.msra.mxu2 %v1417_v2  ;;  %v1420_v13 = vld [vmem:[%s1860_s1 + $0x48] sm:$0xff]  ;;  %v1419_v15 = vld [vmem:[%s1860_s1 + $0x40] sm:$0xff]  ;;  %v1382_v29 = vld [vmem:[%s1679_s26 + $0x14] sm:$0xf0] }
  0x12   : > { %732 = vmatpush.bf16.msra.mxu1 %v1425_v3  ;;  %1531 = vmatpush.bf16.msra.mxu3 %v1425_v3  ;;  %v1186_v16 = vld [vmem:[%s1679_s26] sm:$0xf]  ;;  %v1380_v17 = vld [vmem:[%s1679_s26 + $0x4] sm:$0xf0]  ;;  %v1379_v20 = vld [vmem:[%s1679_s26 + $0x4] sm:$0xf]  ;;  %v1195_v36 = vor.u32 %v1382_v29, %v1194_v28 }
  0x13   : > { %v1250_v18 = vld [vmem:[%s1679_s26 + $0x80] sm:$0xf]  ;;  %v1396_v19 = vld [vmem:[%s1679_s26 + $0x84] sm:$0xf0]  ;;  %v1188_v21 = vld [vmem:[%s1679_s26 + $0x8] sm:$0xf0]  ;;  %v1187_v24 = vor.u32 %v1380_v17, %v1186_v16 }
  0x14   : > { %v1395_v22 = vld [vmem:[%s1679_s26 + $0x84] sm:$0xf]  ;;  %v1252_v23 = vld [vmem:[%s1679_s26 + $0x88] sm:$0xf0]  ;;  %v1251_v25 = vor.u32 %v1396_v19, %v1250_v18  ;;  %v1191_v26 = vor.u32 %v1379_v20, %v1188_v21  ;;  %v1258_v30 = vld [vmem:[%s1679_s26 + $0x90] sm:$0xf] }
  0x15   : > { %644 = vmatpush.bf16.msra.mxu0 %v1416_v4  ;;  %1524 = vmatpush.bf16.msra.mxu2 %v1416_v4  ;;  %v1255_v27 = vor.u32 %v1395_v22, %v1252_v23  ;;  %v1398_v31 = vld [vmem:[%s1679_s26 + $0x94] sm:$0xf0]  ;;  %v1381_v32 = vld [vmem:[%s1679_s26 + $0x14] sm:$0xf]  ;;  %v1196_v33 = vld [vmem:[%s1679_s26 + $0x18] sm:$0xf0] }
  0x16   : > { %733 = vmatpush.bf16.msra.mxu1 %v1424_v5  ;;  %1532 = vmatpush.bf16.msra.mxu3 %v1424_v5  ;;  %v1397_v34 = vld [vmem:[%s1679_s26 + $0x94] sm:$0xf]  ;;  %v1260_v35 = vld [vmem:[%s1679_s26 + $0x98] sm:$0xf0]  ;;  %v1259_v37 = vor.u32 %v1398_v31, %v1258_v30  ;;  %v1199_v38 = vor.u32 %v1381_v32, %v1196_v33  ;;  %v1202_v40 = vld [vmem:[%s1679_s26 + $0x20] sm:$0xf] }
  0x17   : > { %v1263_v39 = vor.u32 %v1397_v34, %v1260_v35  ;;  %v1384_v41 = vld [vmem:[%s1679_s26 + $0x24] sm:$0xf0]  ;;  %v1266_v42 = vld [vmem:[%s1679_s26 + $0xa0] sm:$0xf]  ;;  %v1383_v44 = vld [vmem:[%s1679_s26 + $0x24] sm:$0xf] }
  0x18   : > { %v1400_v43 = vld [vmem:[%s1679_s26 + $0xa4] sm:$0xf0]  ;;  %v1204_v45 = vld [vmem:[%s1679_s26 + $0x28] sm:$0xf0]  ;;  %v1399_v46 = vld [vmem:[%s1679_s26 + $0xa4] sm:$0xf]  ;;  %v1203_v48 = vor.u32 %v1384_v41, %v1202_v40 }
  0x19   : > { %645 = vmatpush.bf16.msra.mxu0 %v1415_v6  ;;  %1525 = vmatpush.bf16.msra.mxu2 %v1415_v6  ;;  %v1268_v47 = vld [vmem:[%s1679_s26 + $0xa8] sm:$0xf0]  ;;  %v1267_v49 = vor.u32 %v1400_v43, %v1266_v42  ;;  %v1207_v50 = vor.u32 %v1383_v44, %v1204_v45  ;;  %v1210_v52 = vld [vmem:[%s1679_s26 + $0x30] sm:$0xf]  ;;  %v1386_v53 = vld [vmem:[%s1679_s26 + $0x34] sm:$0xf0] }
  0x1a   : > { %734 = vmatpush.bf16.msra.mxu1 %v1423_v7  ;;  %1533 = vmatpush.bf16.msra.mxu3 %v1423_v7  ;;  %v1271_v51 = vor.u32 %v1399_v46, %v1268_v47  ;;  %v1274_v54 = vld [vmem:[%s1679_s26 + $0xb0] sm:$0xf]  ;;  %v1402_v55 = vld [vmem:[%s1679_s26 + $0xb4] sm:$0xf0]  ;;  %v1385_v56 = vld [vmem:[%s1679_s26 + $0x34] sm:$0xf]  ;;  %v1211_v60 = vor.u32 %v1386_v53, %v1210_v52 }
  0x1b   : > { %v1212_v57 = vld [vmem:[%s1679_s26 + $0x38] sm:$0xf0]  ;;  %v1401_v58 = vld [vmem:[%s1679_s26 + $0xb4] sm:$0xf]  ;;  %v1275_v61 = vor.u32 %v1402_v55, %v1274_v54  ;;  %v1218_v0 = vld [vmem:[%s1679_s26 + $0x40] sm:$0xf] }
  0x1c   : > { %v1276_v59 = vld [vmem:[%s1679_s26 + $0xb8] sm:$0xf0]  ;;  %v1215_v62 = vor.u32 %v1385_v56, %v1212_v57  ;;  %v1388_v1 = vld [vmem:[%s1679_s26 + $0x44] sm:$0xf0]  ;;  %v1282_v2 = vld [vmem:[%s1679_s26 + $0xc0] sm:$0xf] }
  0x1d   : > { %646 = vmatpush.bf16.msra.mxu0 %v1414_v8  ;;  %1526 = vmatpush.bf16.msra.mxu2 %v1414_v8  ;;  %v1279_v63 = vor.u32 %v1401_v58, %v1276_v59  ;;  %v1404_v3 = vld [vmem:[%s1679_s26 + $0xc4] sm:$0xf0]  ;;  %v1387_v4 = vld [vmem:[%s1679_s26 + $0x44] sm:$0xf]  ;;  %v1220_v5 = vld [vmem:[%s1679_s26 + $0x48] sm:$0xf0]  ;;  %v1219_v8 = vor.u32 %v1388_v1, %v1218_v0 }
  0x1e   : > { %735 = vmatpush.bf16.msra.mxu1 %v1422_v9  ;;  %1534 = vmatpush.bf16.msra.mxu3 %v1422_v9  ;;  %v1403_v6 = vld [vmem:[%s1679_s26 + $0xc4] sm:$0xf]  ;;  %v1284_v7 = vld [vmem:[%s1679_s26 + $0xc8] sm:$0xf0]  ;;  %v1283_v9 = vor.u32 %v1404_v3, %v1282_v2  ;;  %v1389_v16 = vld [vmem:[%s1679_s26 + $0x54] sm:$0xf] }
  0x1f   : > { %v1228_v17 = vld [vmem:[%s1679_s26 + $0x58] sm:$0xf0]  ;;  %v1405_v18 = vld [vmem:[%s1679_s26 + $0xd4] sm:$0xf]  ;;  %v1391_v28 = vld [vmem:[%s1679_s26 + $0x64] sm:$0xf] }
  0x20   : > { %v1292_v19 = vld [vmem:[%s1679_s26 + $0xd8] sm:$0xf0]  ;;  %v1231_v22 = vor.u32 %v1389_v16, %v1228_v17  ;;  %v1236_v29 = vld [vmem:[%s1679_s26 + $0x68] sm:$0xf0]  ;;  %v1407_v30 = vld [vmem:[%s1679_s26 + $0xe4] sm:$0xf] }
  0x21   : > { %647 = vmatpush.bf16.msra.mxu0 %v1413_v10  ;;  %1527 = vmatpush.bf16.msra.mxu2 %v1413_v10  ;;  %v1223_v10 = vor.u32 %v1387_v4, %v1220_v5  ;;  %v1295_v23 = vor.u32 %v1405_v18, %v1292_v19  ;;  %v1300_v31 = vld [vmem:[%s1679_s26 + $0xe8] sm:$0xf0]  ;;  %v1239_v34 = vor.u32 %v1391_v28, %v1236_v29  ;;  %v1393_v40 = vld [vmem:[%s1679_s26 + $0x74] sm:$0xf]  ;;  %v1244_v41 = vld [vmem:[%s1679_s26 + $0x78] sm:$0xf0] }
  0x22   : > { %736 = vmatpush.bf16.msra.mxu1 %v1421_v11  ;;  %1535 = vmatpush.bf16.msra.mxu3 %v1421_v11  ;;  %v1287_v11 = vor.u32 %v1403_v6, %v1284_v7  ;;  %v1303_v35 = vor.u32 %v1407_v30, %v1300_v31  ;;  %v1409_v42 = vld [vmem:[%s1679_s26 + $0xf4] sm:$0xf]  ;;  %v1308_v43 = vld [vmem:[%s1679_s26 + $0xf8] sm:$0xf0]  ;;  %v1247_v46 = vor.u32 %v1393_v40, %v1244_v41  ;;  %v1763_v55 = vld [vmem:[%s1862_s3] ss:$0 sm:$0xff] }
  0x23   : > { %v1311_v47 = vor.u32 %v1409_v42, %v1308_v43 }
  0x25   : > { %648 = vmatpush.bf16.msra.mxu0 %v1412_v12  ;;  %1528 = vmatpush.bf16.msra.mxu2 %v1412_v12  ;;  %v1226_v12 = vld [vmem:[%s1679_s26 + $0x50] sm:$0xf] }
  0x26   : > { %737 = vmatpush.bf16.msra.mxu1 %v1420_v13  ;;  %1536 = vmatpush.bf16.msra.mxu3 %v1420_v13  ;;  %v1390_v13 = vld [vmem:[%s1679_s26 + $0x54] sm:$0xf0] }
  0x27   : > { %v1227_v20 = vor.u32 %v1390_v13, %v1226_v12 }
  0x29   : > { %649 = vmatpush.bf16.msra.mxu0 %v1411_v14  ;;  %1529 = vmatpush.bf16.msra.mxu2 %v1411_v14  ;;  %v1290_v14 = vld [vmem:[%s1679_s26 + $0xd0] sm:$0xf] }
  0x2a   : > { %738 = vmatpush.bf16.msra.mxu1 %v1419_v15  ;;  %1537 = vmatpush.bf16.msra.mxu3 %v1419_v15  ;;  %v1406_v15 = vld [vmem:[%s1679_s26 + $0xd4] sm:$0xf0] }
  0x2b   : > { %v1291_v21 = vor.u32 %v1406_v15, %v1290_v14 }
  0x2c   : > { %650 = vmatmul.bf16.vlgmr.msra.gmra.mxu0 %v1187_v24  ;;  %690 = vmatmul.bf16.vlgmr.msra.gmra.mxu2 %v1251_v25  ;;  %v1234_v24 = vld [vmem:[%s1679_s26 + $0x60] sm:$0xf]  ;;  %v1392_v25 = vld [vmem:[%s1679_s26 + $0x64] sm:$0xf0] }
  0x2d   : > { %739 = vmatmul.bf16.vlgmr.msra.gmra.mxu1 %v1191_v26  ;;  %779 = vmatmul.bf16.vlgmr.msra.gmra.mxu3 %v1255_v27  ;;  %v1298_v26 = vld [vmem:[%s1679_s26 + $0xe0] sm:$0xf]  ;;  %v1408_v27 = vld [vmem:[%s1679_s26 + $0xe4] sm:$0xf0]  ;;  %v1235_v32 = vor.u32 %v1392_v25, %v1234_v24 }
  0x2e   : > { %v1299_v33 = vor.u32 %v1408_v27, %v1298_v26 }
  0x3c   : > { %655 = vmatmul.bf16.gmra.mxu0 %v1195_v36  ;;  %695 = vmatmul.bf16.gmra.mxu2 %v1259_v37  ;;  %v1242_v36 = vld [vmem:[%s1679_s26 + $0x70] sm:$0xf]  ;;  %v1394_v37 = vld [vmem:[%s1679_s26 + $0x74] sm:$0xf0] }
  0x3d   : > { %744 = vmatmul.bf16.gmra.mxu1 %v1199_v38  ;;  %784 = vmatmul.bf16.gmra.mxu3 %v1263_v39  ;;  %v1306_v38 = vld [vmem:[%s1679_s26 + $0xf0] sm:$0xf]  ;;  %v1410_v39 = vld [vmem:[%s1679_s26 + $0xf4] sm:$0xf0]  ;;  %v1243_v44 = vor.u32 %v1394_v37, %v1242_v36 }
  0x3e   : > { %v1307_v45 = vor.u32 %v1410_v39, %v1306_v38 }
  0x4c   : > { %660 = vmatmul.bf16.gmra.mxu0 %v1203_v48  ;;  %700 = vmatmul.bf16.gmra.mxu2 %v1267_v49 }
  0x4d   : > { %749 = vmatmul.bf16.gmra.mxu1 %v1207_v50  ;;  %789 = vmatmul.bf16.gmra.mxu3 %v1271_v51  ;;  %v1757_v51 = vld [vmem:[%s1861_s2] ss:$0 sm:$0xff] }
  0x5c   : > { %665 = vmatmul.bf16.gmra.mxu0 %v1211_v60  ;;  %705 = vmatmul.bf16.gmra.mxu2 %v1275_v61 }
  0x5d   : > { %754 = vmatmul.bf16.gmra.mxu1 %v1215_v62  ;;  %794 = vmatmul.bf16.gmra.mxu3 %v1279_v63 }
  0x6c   : > { %670 = vmatmul.bf16.gmra.mxu0 %v1219_v8  ;;  %710 = vmatmul.bf16.gmra.mxu2 %v1283_v9 }
  0x6d   : > { %759 = vmatmul.bf16.gmra.mxu1 %v1223_v10  ;;  %799 = vmatmul.bf16.gmra.mxu3 %v1287_v11 }
  0x7c   : > { %675 = vmatmul.bf16.gmra.mxu0 %v1227_v20  ;;  %715 = vmatmul.bf16.gmra.mxu2 %v1291_v21 }
  0x7d   : > { %764 = vmatmul.bf16.gmra.mxu1 %v1231_v22  ;;  %804 = vmatmul.bf16.gmra.mxu3 %v1295_v23 }
  0x8c   : > { %680 = vmatmul.bf16.gmra.mxu0 %v1235_v32  ;;  %720 = vmatmul.bf16.gmra.mxu2 %v1299_v33 }
  0x8d   : > { %769 = vmatmul.bf16.gmra.mxu1 %v1239_v34  ;;  %809 = vmatmul.bf16.gmra.mxu3 %v1303_v35 }
  0x9c   : > { %685 = vmatmul.bf16.gmra.mxu0 %v1243_v44  ;;  %725 = vmatmul.bf16.gmra.mxu2 %v1307_v45 }
  0x9d   : > { %774 = vmatmul.bf16.gmra.mxu1 %v1247_v46  ;;  %814 = vmatmul.bf16.gmra.mxu3 %v1311_v47 }
  0xa9   : > { %v651_v48 = vpop.f32.mrf.mxu0 }
  0xaa   : > { %v740_v49 = vpop.f32.mrf.mxu1 }
  0xab   : > { %v741_v50 = vadd.f32 %v740_v49, %v651_v48 }
  0xad   : > { %v923_v54 = vmul.f32 %v1757_v51, %v741_v50 }
  0xaf   : > { %v691_v52 = vpop.f32.mrf.mxu2  ;;  %v959_v60 = vadd.f32 %v1763_v55, %v923_v54 }
  0xb0   : > { %v780_v53 = vpop.f32.mrf.mxu3 }
  0xb1   : > { %v653_v56 = vpop.f32.mrf.mxu0  ;;  %v781_v58 = vadd.f32 %v780_v53, %v691_v52  ;;  %v991_v2 = vmax.f32 %v959_v60, 0.0 }
  0xb2   : > { %v742_v57 = vpop.f32.mrf.mxu1 }
  0xb3   : > { %v743_v59 = vadd.f32 %v742_v57, %v653_v56  ;;  %v939_v62 = vmul.f32 %v1757_v51, %v781_v58 }
  0xb5   : > { %v924_v61 = vmul.f32 %v1757_v51, %v743_v59  ;;  %v975_v7 = vadd.f32 %v1763_v55, %v939_v62 }
  0xb7   : > { %v960_v63 = vadd.f32 %v1763_v55, %v924_v61  ;;  %v693_v0 = vpop.f32.mrf.mxu2  ;;  %v1007_v12 = vmax.f32 %v975_v7, 0.0 }
  0xb8   : > { %v782_v1 = vpop.f32.mrf.mxu3 }
  0xb9   : > { %v992_v3 = vmax.f32 %v960_v63, 0.0  ;;  %v783_v4 = vadd.f32 %v782_v1, %v693_v0  ;;  %v656_v5 = vpop.f32.mrf.mxu0 }
  0xba   : > { %v745_v6 = vpop.f32.mrf.mxu1 }
  0xbb   : > { %v1430_v8 = vpack.c.bf16 %v992_v3, %v991_v2  ;;  %v940_v9 = vmul.f32 %v1757_v51, %v783_v4  ;;  %v746_v11 = vadd.f32 %v745_v6, %v656_v5 }
  0xbd   : > { %1431 = vst [vmem:[%s1773_s15] sm:$0xff] %v1430_v8   ;;  %v976_v10 = vadd.f32 %v1763_v55, %v940_v9  ;;  %v925_v17 = vmul.f32 %v1757_v51, %v746_v11 }
  0xbf   : > { %v1008_v13 = vmax.f32 %v976_v10, 0.0  ;;  %v696_v14 = vpop.f32.mrf.mxu2  ;;  %v961_v22 = vadd.f32 %v1763_v55, %v925_v17 }
  0xc0   : > { %v785_v15 = vpop.f32.mrf.mxu3 }
  0xc1   : > { %v1470_v16 = vpack.c.bf16 %v1008_v13, %v1007_v12  ;;  %v658_v18 = vpop.f32.mrf.mxu0  ;;  %v786_v20 = vadd.f32 %v785_v15, %v696_v14  ;;  %v993_v28 = vmax.f32 %v961_v22, 0.0 }
  0xc2   : > { %v747_v19 = vpop.f32.mrf.mxu1 }
  0xc3   : > { %1514 = vst [vmem:[%s1773_s15 + $0x40] sm:$0xff] %v1470_v16   ;;  %v748_v21 = vadd.f32 %v747_v19, %v658_v18  ;;  %v941_v24 = vmul.f32 %v1757_v51, %v786_v20 }
  0xc5   : > { %v926_v23 = vmul.f32 %v1757_v51, %v748_v21  ;;  %v977_v33 = vadd.f32 %v1763_v55, %v941_v24 }
  0xc7   : > { %v962_v25 = vadd.f32 %v1763_v55, %v926_v23  ;;  %v698_v26 = vpop.f32.mrf.mxu2  ;;  %v1009_v38 = vmax.f32 %v977_v33, 0.0 }
  0xc8   : > { %v787_v27 = vpop.f32.mrf.mxu3 }
  0xc9   : > { %v994_v29 = vmax.f32 %v962_v25, 0.0  ;;  %v788_v30 = vadd.f32 %v787_v27, %v698_v26  ;;  %v661_v31 = vpop.f32.mrf.mxu0 }
  0xca   : > { %v750_v32 = vpop.f32.mrf.mxu1 }
  0xcb   : > { %v1435_v34 = vpack.c.bf16 %v994_v29, %v993_v28  ;;  %v942_v35 = vmul.f32 %v1757_v51, %v788_v30  ;;  %v751_v37 = vadd.f32 %v750_v32, %v661_v31 }
  0xcd   : > { %1507 = vst [vmem:[%s1773_s15 + $0x8] sm:$0xff] %v1435_v34   ;;  %v978_v36 = vadd.f32 %v1763_v55, %v942_v35  ;;  %v927_v43 = vmul.f32 %v1757_v51, %v751_v37 }
  0xcf   : > { %v1010_v39 = vmax.f32 %v978_v36, 0.0  ;;  %v701_v40 = vpop.f32.mrf.mxu2  ;;  %v963_v48 = vadd.f32 %v1763_v55, %v927_v43 }
  0xd0   : > { %v790_v41 = vpop.f32.mrf.mxu3 }
  0xd1   : > { %v1475_v42 = vpack.c.bf16 %v1010_v39, %v1009_v38  ;;  %v663_v44 = vpop.f32.mrf.mxu0  ;;  %v791_v46 = vadd.f32 %v790_v41, %v701_v40  ;;  %v995_v56 = vmax.f32 %v963_v48, 0.0 }
  0xd2   : > { %v752_v45 = vpop.f32.mrf.mxu1 }
  0xd3   : > { %1515 = vst [vmem:[%s1773_s15 + $0x48] sm:$0xff] %v1475_v42   ;;  %v753_v47 = vadd.f32 %v752_v45, %v663_v44  ;;  %v943_v50 = vmul.f32 %v1757_v51, %v791_v46 }
  0xd5   : > { %v928_v49 = vmul.f32 %v1757_v51, %v753_v47  ;;  %v979_v61 = vadd.f32 %v1763_v55, %v943_v50 }
  0xd7   : > { %v964_v52 = vadd.f32 %v1763_v55, %v928_v49  ;;  %v703_v53 = vpop.f32.mrf.mxu2  ;;  %v1011_v2 = vmax.f32 %v979_v61, 0.0 }
  0xd8   : > { %v792_v54 = vpop.f32.mrf.mxu3 }
  0xd9   : > { %v996_v57 = vmax.f32 %v964_v52, 0.0  ;;  %v793_v58 = vadd.f32 %v792_v54, %v703_v53  ;;  %v666_v59 = vpop.f32.mrf.mxu0 }
  0xda   : > { %v755_v60 = vpop.f32.mrf.mxu1 }
  0xdb   : > { %v1440_v62 = vpack.c.bf16 %v996_v57, %v995_v56  ;;  %v944_v63 = vmul.f32 %v1757_v51, %v793_v58  ;;  %v756_v1 = vadd.f32 %v755_v60, %v666_v59 }
  0xdd   : > { %1508 = vst [vmem:[%s1773_s15 + $0x10] sm:$0xff] %v1440_v62   ;;  %v980_v0 = vadd.f32 %v1763_v55, %v944_v63  ;;  %v929_v7 = vmul.f32 %v1757_v51, %v756_v1 }
  0xdf   : > { %v1012_v3 = vmax.f32 %v980_v0, 0.0  ;;  %v706_v4 = vpop.f32.mrf.mxu2  ;;  %v965_v12 = vadd.f32 %v1763_v55, %v929_v7 }
  0xe0   : > { %v795_v5 = vpop.f32.mrf.mxu3 }
  0xe1   : > { %v1480_v6 = vpack.c.bf16 %v1012_v3, %v1011_v2  ;;  %v668_v8 = vpop.f32.mrf.mxu0  ;;  %v796_v10 = vadd.f32 %v795_v5, %v706_v4  ;;  %v997_v18 = vmax.f32 %v965_v12, 0.0 }
  0xe2   : > { %v757_v9 = vpop.f32.mrf.mxu1 }
  0xe3   : > { %1516 = vst [vmem:[%s1773_s15 + $0x50] sm:$0xff] %v1480_v6   ;;  %v758_v11 = vadd.f32 %v757_v9, %v668_v8  ;;  %v945_v14 = vmul.f32 %v1757_v51, %v796_v10 }
  0xe5   : > { %v930_v13 = vmul.f32 %v1757_v51, %v758_v11  ;;  %v981_v23 = vadd.f32 %v1763_v55, %v945_v14 }
  0xe7   : > { %v966_v15 = vadd.f32 %v1763_v55, %v930_v13  ;;  %v708_v16 = vpop.f32.mrf.mxu2  ;;  %v1013_v28 = vmax.f32 %v981_v23, 0.0 }
  0xe8   : > { %v797_v17 = vpop.f32.mrf.mxu3 }
  0xe9   : > { %v998_v19 = vmax.f32 %v966_v15, 0.0  ;;  %v798_v20 = vadd.f32 %v797_v17, %v708_v16  ;;  %v671_v21 = vpop.f32.mrf.mxu0 }
  0xea   : > { %v760_v22 = vpop.f32.mrf.mxu1 }
  0xeb   : > { %v1445_v24 = vpack.c.bf16 %v998_v19, %v997_v18  ;;  %v946_v25 = vmul.f32 %v1757_v51, %v798_v20  ;;  %v761_v27 = vadd.f32 %v760_v22, %v671_v21 }
  0xed   : > { %1509 = vst [vmem:[%s1773_s15 + $0x18] sm:$0xff] %v1445_v24   ;;  %v982_v26 = vadd.f32 %v1763_v55, %v946_v25  ;;  %v931_v33 = vmul.f32 %v1757_v51, %v761_v27 }
  0xef   : > { %v1014_v29 = vmax.f32 %v982_v26, 0.0  ;;  %v711_v30 = vpop.f32.mrf.mxu2  ;;  %v967_v38 = vadd.f32 %v1763_v55, %v931_v33 }
  0xf0   : > { %v800_v31 = vpop.f32.mrf.mxu3 }
  0xf1   : > { %v1485_v32 = vpack.c.bf16 %v1014_v29, %v1013_v28  ;;  %v673_v34 = vpop.f32.mrf.mxu0  ;;  %v801_v36 = vadd.f32 %v800_v31, %v711_v30  ;;  %v999_v44 = vmax.f32 %v967_v38, 0.0 }
  0xf2   : > { %v762_v35 = vpop.f32.mrf.mxu1 }
  0xf3   : > { %1517 = vst [vmem:[%s1773_s15 + $0x58] sm:$0xff] %v1485_v32   ;;  %v763_v37 = vadd.f32 %v762_v35, %v673_v34  ;;  %v947_v40 = vmul.f32 %v1757_v51, %v801_v36 }
  0xf5   : > { %v932_v39 = vmul.f32 %v1757_v51, %v763_v37  ;;  %v983_v49 = vadd.f32 %v1763_v55, %v947_v40 }
  0xf7   : > { %v968_v41 = vadd.f32 %v1763_v55, %v932_v39  ;;  %v713_v42 = vpop.f32.mrf.mxu2  ;;  %v1015_v56 = vmax.f32 %v983_v49, 0.0 }
  0xf8   : > { %v802_v43 = vpop.f32.mrf.mxu3 }
  0xf9   : > { %v1000_v45 = vmax.f32 %v968_v41, 0.0  ;;  %v803_v46 = vadd.f32 %v802_v43, %v713_v42  ;;  %v676_v47 = vpop.f32.mrf.mxu0 }
  0xfa   : > { %v765_v48 = vpop.f32.mrf.mxu1 }
  0xfb   : > { %v1450_v50 = vpack.c.bf16 %v1000_v45, %v999_v44  ;;  %v948_v52 = vmul.f32 %v1757_v51, %v803_v46  ;;  %v766_v54 = vadd.f32 %v765_v48, %v676_v47 }
  0xfd   : > { %1510 = vst [vmem:[%s1773_s15 + $0x20] sm:$0xff] %v1450_v50   ;;  %v984_v53 = vadd.f32 %v1763_v55, %v948_v52  ;;  %v933_v61 = vmul.f32 %v1757_v51, %v766_v54 }
  0xff   : > { %v1016_v57 = vmax.f32 %v984_v53, 0.0  ;;  %v716_v58 = vpop.f32.mrf.mxu2  ;;  %v969_v2 = vadd.f32 %v1763_v55, %v933_v61 }
 0x100   : > { %v805_v59 = vpop.f32.mrf.mxu3 }
 0x101   : > { %v1490_v60 = vpack.c.bf16 %v1016_v57, %v1015_v56  ;;  %v678_v62 = vpop.f32.mrf.mxu0  ;;  %v806_v0 = vadd.f32 %v805_v59, %v716_v58  ;;  %v1001_v8 = vmax.f32 %v969_v2, 0.0 }
 0x102   : > { %v767_v63 = vpop.f32.mrf.mxu1 }
 0x103   : > { %1518 = vst [vmem:[%s1773_s15 + $0x60] sm:$0xff] %v1490_v60   ;;  %v768_v1 = vadd.f32 %v767_v63, %v678_v62  ;;  %v949_v4 = vmul.f32 %v1757_v51, %v806_v0 }
 0x105   : > { %v934_v3 = vmul.f32 %v1757_v51, %v768_v1  ;;  %v985_v13 = vadd.f32 %v1763_v55, %v949_v4 }
 0x107   : > { %v970_v5 = vadd.f32 %v1763_v55, %v934_v3  ;;  %v718_v6 = vpop.f32.mrf.mxu2  ;;  %v1017_v18 = vmax.f32 %v985_v13, 0.0 }
 0x108   : > { %v807_v7 = vpop.f32.mrf.mxu3 }
 0x109   : > { %v1002_v9 = vmax.f32 %v970_v5, 0.0  ;;  %v808_v10 = vadd.f32 %v807_v7, %v718_v6  ;;  %v681_v11 = vpop.f32.mrf.mxu0 }
 0x10a   : > { %v770_v12 = vpop.f32.mrf.mxu1 }
 0x10b   : > { %v1455_v14 = vpack.c.bf16 %v1002_v9, %v1001_v8  ;;  %v950_v15 = vmul.f32 %v1757_v51, %v808_v10  ;;  %v771_v17 = vadd.f32 %v770_v12, %v681_v11 }
 0x10d   : > { %1511 = vst [vmem:[%s1773_s15 + $0x28] sm:$0xff] %v1455_v14   ;;  %v986_v16 = vadd.f32 %v1763_v55, %v950_v15  ;;  %v935_v23 = vmul.f32 %v1757_v51, %v771_v17 }
 0x10f   : > { %v1018_v19 = vmax.f32 %v986_v16, 0.0  ;;  %v721_v20 = vpop.f32.mrf.mxu2  ;;  %v971_v28 = vadd.f32 %v1763_v55, %v935_v23 }
 0x110   : > { %v810_v21 = vpop.f32.mrf.mxu3 }
 0x111   : > { %v1495_v22 = vpack.c.bf16 %v1018_v19, %v1017_v18  ;;  %v683_v24 = vpop.f32.mrf.mxu0  ;;  %v811_v26 = vadd.f32 %v810_v21, %v721_v20  ;;  %v1003_v34 = vmax.f32 %v971_v28, 0.0 }
 0x112   : > { %v772_v25 = vpop.f32.mrf.mxu1 }
 0x113   : > { %1519 = vst [vmem:[%s1773_s15 + $0x68] sm:$0xff] %v1495_v22   ;;  %v773_v27 = vadd.f32 %v772_v25, %v683_v24  ;;  %v951_v30 = vmul.f32 %v1757_v51, %v811_v26 }
 0x115   : > { %v936_v29 = vmul.f32 %v1757_v51, %v773_v27  ;;  %v987_v39 = vadd.f32 %v1763_v55, %v951_v30 }
 0x117   : > { %v972_v31 = vadd.f32 %v1763_v55, %v936_v29  ;;  %v723_v32 = vpop.f32.mrf.mxu2  ;;  %v1019_v44 = vmax.f32 %v987_v39, 0.0 }
 0x118   : > { %v812_v33 = vpop.f32.mrf.mxu3 }
 0x119   : > { %v1004_v35 = vmax.f32 %v972_v31, 0.0  ;;  %v813_v36 = vadd.f32 %v812_v33, %v723_v32  ;;  %v686_v37 = vpop.f32.mrf.mxu0 }
 0x11a   : > { %v775_v38 = vpop.f32.mrf.mxu1 }
 0x11b   : > { %v1460_v40 = vpack.c.bf16 %v1004_v35, %v1003_v34  ;;  %v952_v41 = vmul.f32 %v1757_v51, %v813_v36  ;;  %v776_v43 = vadd.f32 %v775_v38, %v686_v37 }
 0x11d   : > { %1512 = vst [vmem:[%s1773_s15 + $0x30] sm:$0xff] %v1460_v40   ;;  %v988_v42 = vadd.f32 %v1763_v55, %v952_v41  ;;  %v937_v49 = vmul.f32 %v1757_v51, %v776_v43 }
 0x11f   : > { %v1020_v45 = vmax.f32 %v988_v42, 0.0  ;;  %v726_v46 = vpop.f32.mrf.mxu2  ;;  %v973_v56 = vadd.f32 %v1763_v55, %v937_v49 }
 0x120   : > { %v815_v47 = vpop.f32.mrf.mxu3 }
 0x121   : > { %v1500_v48 = vpack.c.bf16 %v1020_v45, %v1019_v44  ;;  %v688_v50 = vpop.f32.mrf.mxu0  ;;  %v816_v53 = vadd.f32 %v815_v47, %v726_v46  ;;  %v1005_v62 = vmax.f32 %v973_v56, 0.0 }
 0x122   : > { %v777_v52 = vpop.f32.mrf.mxu1 }
 0x123   : > { %1520 = vst [vmem:[%s1773_s15 + $0x70] sm:$0xff] %v1500_v48   ;;  %v778_v54 = vadd.f32 %v777_v52, %v688_v50  ;;  %v953_v58 = vmul.f32 %v1757_v51, %v816_v53 }
 0x125   : > { %v938_v57 = vmul.f32 %v1757_v51, %v778_v54  ;;  %v989_v1 = vadd.f32 %v1763_v55, %v953_v58 }
 0x127   : > { %v974_v59 = vadd.f32 %v1763_v55, %v938_v57  ;;  %v728_v60 = vpop.f32.mrf.mxu2  ;;  %v1021_v5 = vmax.f32 %v989_v1, 0.0 }
 0x128   : > { %v817_v61 = vpop.f32.mrf.mxu3 }
 0x129   : > { %v1006_v63 = vmax.f32 %v974_v59, 0.0  ;;  %v818_v0 = vadd.f32 %v817_v61, %v728_v60 }
 0x12b   : > { %v1465_v2 = vpack.c.bf16 %v1006_v63, %v1005_v62  ;;  %v954_v3 = vmul.f32 %v1757_v51, %v818_v0 }
 0x12d   : > { %1513 = vst [vmem:[%s1773_s15 + $0x38] sm:$0xff] %v1465_v2   ;;  %v990_v4 = vadd.f32 %v1763_v55, %v954_v3 }
 0x12f   : > { %v1022_v6 = vmax.f32 %v990_v4, 0.0 }
 0x131   : > { %v1505_v7 = vpack.c.bf16 %v1022_v6, %v1021_v5 }
 0x133   : > { %1521 = vst [vmem:[%s1773_s15 + $0x78] sm:$0xff] %v1505_v7  }
 0x134 PF: > { %s14_s17 = sadd.s32 1, %s1586_s17   ;;  %s1864_s15 = smov %s1582_s16 }
 0x135   : > { %p11_p5 = scmp.ge.s32.totalorder %s14_s17, 4   ;;  %s1865_s16 = smov %s1867_s18 }
 0x137   :  { %13 = sbr.rel (!%p11_p5) target bundleno = 2 (0x2), region = 77 }

// kernel: feature_extractor_forward.45
= control target key start
LH: loop header
LB: loop body
LE: loop exit
PB: predicated region body
PF: predicated region fallthrough
CT: control target
= control target key end

     0   :  { %s699_s6 = smov 0   ;;  %s701_s7 = smov 0   ;;  %s965_s0 = inlined_call_operand.vmem [shape: f32[6,2,72,128], index: 0, kind: input, shape index: {}]   ;;  %s966_s1 = inlined_call_operand.vmem [shape: bf16[2,64,128], index: 1, kind: output, shape index: {}]  }
   0x1   :  { %s703_s8 = smov 0  }
   0x2 LB: > { %s562_s9 = sadd.s32 4294967295, %s687_s8   ;;  %s716_s10 = sadd.s32 1, %s687_s8   ;;  %s687_s8 = sphi %s703_s8, %s970_s8   ;;  %s683_s7 = sphi %s701_s7, %s969_s7   ;;  %s679_s6 = sphi %s699_s6, %s968_s6  }
   0x3   : > { %s15_s11 = ssub.s32 %s687_s8, %s716_s10  ;;  %s18_s12 = sadd.s32 1, %s683_s7 }
   0x4   : > { %p16_p0 = scmp.eq.s32.totalorder %s15_s11, 0  ;;  %p25_p1 = scmp.ne.s32.totalorder %s683_s7, %s679_s6 }
   0x5   : > { %p26_p2 = scmp.eq.s32.totalorder %s687_s8, 0  ;;  %p565_p4 = scmp.ge.s32.totalorder %s687_s8, 2 }
   0x6   : > { %s725_s13 = scalar_select %p16_p0, %s683_s7, %s18_s12  }
   0x7   : > { %p27_p3 = por %p26_p2, %p25_p1  ;;  %77 = sbr.rel (%p565_p4) target bundleno = 71 (0x47), region = 16 }
   0xc   : > { %80 = sbr.rel (!%p27_p3) target bundleno = 71 (0x47), region = 20  ;;  %s82_s14 = sand.u32 (%p27_p3), 1, %s683_s7  }
   0xd   : > { %s639_s15 = smul.u32 (%p27_p3), 72, %s687_s8 }
   0xe   : > { %s638_s16 = smul.u32 (%p27_p3), 432, %s82_s14 }
   0xf   : > { %s733_s19 = scalar_lea.vmem (%p27_p3), %s965_s0, %s639_s15 }
  0x10   : > { %v222_v0 = vld [vmem:[%s733_s19] sm:$0xff] (%p27_p3)  ;;  %v224_v1 = vld [vmem:[%s733_s19 + $0x8] sm:$0xff] (%p27_p3)  ;;  %v226_v2 = vld [vmem:[%s733_s19 + $0x10] sm:$0xff] (%p27_p3)  ;;  %s738_s20 = scalar_lea.vmem (%p27_p3), [#allocation2], %s638_s16 }
  0x11   : > { %223 = vst [vmem:[%s738_s20] sm:$0xff] %v222_v0  ;;  %v228_v3 = vld [vmem:[%s733_s19 + $0x18] sm:$0xff]  ;;  %v230_v4 = vld [vmem:[%s733_s19 + $0x20] sm:$0xff]  ;;  %v232_v5 = vld [vmem:[%s733_s19 + $0x28] sm:$0xff] }
  0x12   : > { %225 = vst [vmem:[%s738_s20 + $0x8] sm:$0xff] %v224_v1  ;;  %v234_v6 = vld [vmem:[%s733_s19 + $0x30] sm:$0xff]  ;;  %v236_v7 = vld [vmem:[%s733_s19 + $0x38] sm:$0xff]  ;;  %v238_v8 = vld [vmem:[%s733_s19 + $0x40] sm:$0xff] }
  0x13   : > { %227 = vst [vmem:[%s738_s20 + $0x10] sm:$0xff] %v226_v2  ;;  %v240_v9 = vld [vmem:[%s733_s19 + $0x90] sm:$0xff]  ;;  %v242_v10 = vld [vmem:[%s733_s19 + $0x98] sm:$0xff]  ;;  %v244_v11 = vld [vmem:[%s733_s19 + $0xa0] sm:$0xff] }
  0x14   : > { %229 = vst [vmem:[%s738_s20 + $0x18] sm:$0xff] %v228_v3  ;;  %v246_v12 = vld [vmem:[%s733_s19 + $0xa8] sm:$0xff]  ;;  %v248_v13 = vld [vmem:[%s733_s19 + $0xb0] sm:$0xff]  ;;  %v250_v14 = vld [vmem:[%s733_s19 + $0xb8] sm:$0xff] }
  0x15   : > { %231 = vst [vmem:[%s738_s20 + $0x20] sm:$0xff] %v230_v4  ;;  %v252_v15 = vld [vmem:[%s733_s19 + $0xc0] sm:$0xff]  ;;  %v254_v16 = vld [vmem:[%s733_s19 + $0xc8] sm:$0xff]  ;;  %v256_v17 = vld [vmem:[%s733_s19 + $0xd0] sm:$0xff] }
  0x16   : > { %233 = vst [vmem:[%s738_s20 + $0x28] sm:$0xff] %v232_v5  ;;  %v258_v18 = vld [vmem:[%s733_s19 + $0x120] sm:$0xff]  ;;  %v260_v19 = vld [vmem:[%s733_s19 + $0x128] sm:$0xff]  ;;  %v262_v20 = vld [vmem:[%s733_s19 + $0x130] sm:$0xff] }
  0x17   : > { %235 = vst [vmem:[%s738_s20 + $0x30] sm:$0xff] %v234_v6  ;;  %v264_v21 = vld [vmem:[%s733_s19 + $0x138] sm:$0xff]  ;;  %v266_v22 = vld [vmem:[%s733_s19 + $0x140] sm:$0xff]  ;;  %v268_v23 = vld [vmem:[%s733_s19 + $0x148] sm:$0xff] }
  0x18   : > { %237 = vst [vmem:[%s738_s20 + $0x38] sm:$0xff] %v236_v7  ;;  %v270_v24 = vld [vmem:[%s733_s19 + $0x150] sm:$0xff]  ;;  %v272_v25 = vld [vmem:[%s733_s19 + $0x158] sm:$0xff]  ;;  %v274_v26 = vld [vmem:[%s733_s19 + $0x160] sm:$0xff] }
  0x19   : > { %239 = vst [vmem:[%s738_s20 + $0x40] sm:$0xff] %v238_v8  ;;  %v276_v27 = vld [vmem:[%s733_s19 + $0x1b0] sm:$0xff]  ;;  %v278_v28 = vld [vmem:[%s733_s19 + $0x1b8] sm:$0xff]  ;;  %v280_v29 = vld [vmem:[%s733_s19 + $0x1c0] sm:$0xff] }
  0x1a   : > { %241 = vst [vmem:[%s738_s20 + $0x48] sm:$0xff] %v240_v9  ;;  %v282_v30 = vld [vmem:[%s733_s19 + $0x1c8] sm:$0xff]  ;;  %v284_v31 = vld [vmem:[%s733_s19 + $0x1d0] sm:$0xff]  ;;  %v286_v32 = vld [vmem:[%s733_s19 + $0x1d8] sm:$0xff] }
  0x1b   : > { %243 = vst [vmem:[%s738_s20 + $0x50] sm:$0xff] %v242_v10  ;;  %v288_v33 = vld [vmem:[%s733_s19 + $0x1e0] sm:$0xff]  ;;  %v290_v34 = vld [vmem:[%s733_s19 + $0x1e8] sm:$0xff]  ;;  %v292_v35 = vld [vmem:[%s733_s19 + $0x1f0] sm:$0xff] }
  0x1c   : > { %245 = vst [vmem:[%s738_s20 + $0x58] sm:$0xff] %v244_v11  ;;  %v294_v36 = vld [vmem:[%s733_s19 + $0x240] sm:$0xff]  ;;  %v296_v37 = vld [vmem:[%s733_s19 + $0x248] sm:$0xff]  ;;  %v298_v38 = vld [vmem:[%s733_s19 + $0x250] sm:$0xff] }
  0x1d   : > { %247 = vst [vmem:[%s738_s20 + $0x60] sm:$0xff] %v246_v12  ;;  %v300_v39 = vld [vmem:[%s733_s19 + $0x258] sm:$0xff]  ;;  %v302_v40 = vld [vmem:[%s733_s19 + $0x260] sm:$0xff]  ;;  %v304_v41 = vld [vmem:[%s733_s19 + $0x268] sm:$0xff] }
  0x1e   : > { %249 = vst [vmem:[%s738_s20 + $0x68] sm:$0xff] %v248_v13  ;;  %v306_v42 = vld [vmem:[%s733_s19 + $0x270] sm:$0xff]  ;;  %v308_v43 = vld [vmem:[%s733_s19 + $0x278] sm:$0xff]  ;;  %v310_v44 = vld [vmem:[%s733_s19 + $0x280] sm:$0xff] }
  0x1f   : > { %251 = vst [vmem:[%s738_s20 + $0x70] sm:$0xff] %v250_v14  ;;  %v312_v45 = vld [vmem:[%s733_s19 + $0x2d0] sm:$0xff]  ;;  %v314_v46 = vld [vmem:[%s733_s19 + $0x2d8] sm:$0xff]  ;;  %v316_v47 = vld [vmem:[%s733_s19 + $0x2e0] sm:$0xff] }
  0x20   : > { %253 = vst [vmem:[%s738_s20 + $0x78] sm:$0xff] %v252_v15  ;;  %v318_v48 = vld [vmem:[%s733_s19 + $0x2e8] sm:$0xff]  ;;  %v320_v49 = vld [vmem:[%s733_s19 + $0x2f0] sm:$0xff]  ;;  %v322_v50 = vld [vmem:[%s733_s19 + $0x2f8] sm:$0xff] }
  0x21   : > { %255 = vst [vmem:[%s738_s20 + $0x80] sm:$0xff] %v254_v16  ;;  %v324_v51 = vld [vmem:[%s733_s19 + $0x300] sm:$0xff]  ;;  %v326_v52 = vld [vmem:[%s733_s19 + $0x308] sm:$0xff]  ;;  %v328_v53 = vld [vmem:[%s733_s19 + $0x310] sm:$0xff] }
  0x22   : > { %257 = vst [vmem:[%s738_s20 + $0x88] sm:$0xff] %v256_v17 }
  0x23   : > { %259 = vst [vmem:[%s738_s20 + $0x90] sm:$0xff] %v258_v18 }
  0x24   : > { %261 = vst [vmem:[%s738_s20 + $0x98] sm:$0xff] %v260_v19 }
  0x25   : > { %263 = vst [vmem:[%s738_s20 + $0xa0] sm:$0xff] %v262_v20 }
  0x26   : > { %265 = vst [vmem:[%s738_s20 + $0xa8] sm:$0xff] %v264_v21 }
  0x27   : > { %267 = vst [vmem:[%s738_s20 + $0xb0] sm:$0xff] %v266_v22 }
  0x28   : > { %269 = vst [vmem:[%s738_s20 + $0xb8] sm:$0xff] %v268_v23 }
  0x29   : > { %271 = vst [vmem:[%s738_s20 + $0xc0] sm:$0xff] %v270_v24 }
  0x2a   : > { %273 = vst [vmem:[%s738_s20 + $0xc8] sm:$0xff] %v272_v25 }
  0x2b   : > { %275 = vst [vmem:[%s738_s20 + $0xd0] sm:$0xff] %v274_v26 }
  0x2c   : > { %277 = vst [vmem:[%s738_s20 + $0xd8] sm:$0xff] %v276_v27 }
  0x2d   : > { %279 = vst [vmem:[%s738_s20 + $0xe0] sm:$0xff] %v278_v28 }
  0x2e   : > { %281 = vst [vmem:[%s738_s20 + $0xe8] sm:$0xff] %v280_v29 }
  0x2f   : > { %283 = vst [vmem:[%s738_s20 + $0xf0] sm:$0xff] %v282_v30 }
  0x30   : > { %285 = vst [vmem:[%s738_s20 + $0xf8] sm:$0xff] %v284_v31 }
  0x31   : > { %287 = vst [vmem:[%s738_s20 + $0x100] sm:$0xff] %v286_v32 }
  0x32   : > { %289 = vst [vmem:[%s738_s20 + $0x108] sm:$0xff] %v288_v33 }
  0x33   : > { %291 = vst [vmem:[%s738_s20 + $0x110] sm:$0xff] %v290_v34 }
  0x34   : > { %293 = vst [vmem:[%s738_s20 + $0x118] sm:$0xff] %v292_v35 }
  0x35   : > { %295 = vst [vmem:[%s738_s20 + $0x120] sm:$0xff] %v294_v36 }
  0x36   : > { %297 = vst [vmem:[%s738_s20 + $0x128] sm:$0xff] %v296_v37 }
  0x37   : > { %299 = vst [vmem:[%s738_s20 + $0x130] sm:$0xff] %v298_v38 }
  0x38   : > { %301 = vst [vmem:[%s738_s20 + $0x138] sm:$0xff] %v300_v39 }
  0x39   : > { %303 = vst [vmem:[%s738_s20 + $0x140] sm:$0xff] %v302_v40 }
  0x3a   : > { %305 = vst [vmem:[%s738_s20 + $0x148] sm:$0xff] %v304_v41 }
  0x3b   : > { %307 = vst [vmem:[%s738_s20 + $0x150] sm:$0xff] %v306_v42 }
  0x3c   : > { %309 = vst [vmem:[%s738_s20 + $0x158] sm:$0xff] %v308_v43 }
  0x3d   : > { %311 = vst [vmem:[%s738_s20 + $0x160] sm:$0xff] %v310_v44 }
  0x3e   : > { %313 = vst [vmem:[%s738_s20 + $0x168] sm:$0xff] %v312_v45 }
  0x3f   : > { %315 = vst [vmem:[%s738_s20 + $0x170] sm:$0xff] %v314_v46 }
  0x40   : > { %317 = vst [vmem:[%s738_s20 + $0x178] sm:$0xff] %v316_v47 }
  0x41   : > { %319 = vst [vmem:[%s738_s20 + $0x180] sm:$0xff] %v318_v48 }
  0x42   : > { %321 = vst [vmem:[%s738_s20 + $0x188] sm:$0xff] %v320_v49 }
  0x43   : > { %323 = vst [vmem:[%s738_s20 + $0x190] sm:$0xff] %v322_v50 }
  0x44   : > { %325 = vst [vmem:[%s738_s20 + $0x198] sm:$0xff] %v324_v51 }
  0x45   : > { %327 = vst [vmem:[%s738_s20 + $0x1a0] sm:$0xff] %v326_v52 }
  0x46   : > { %329 = vst [vmem:[%s738_s20 + $0x1a8] sm:$0xff] %v328_v53 }
  0x47 PF: > { %p567_p5 = scmp.ge.s32.totalorder %s687_s8, 1  ;;  %p334_p6 = scmp.lt.s32.totalorder %s687_s8, 3 }
  0x49   : > { %p335_p7 = pnand %p567_p5, %p334_p6 }
  0x4a   : > { %s341_s21 = sand.u32 (!%p335_p7), 1, %s679_s6   ;;  %p881_p8 = scmp.lt.s32.totalorder (!%p335_p7), %s562_s9, 1 }
  0x4b   : > { %338 = sbr.rel (%p335_p7) target bundleno = 113 (0x71), region = 58 }
  0x4c   : > { %s640_s22 = smul.u32 (!%p335_p7), 432, %s341_s21 }
  0x4e   : > { %s848_s23 = scalar_lea.vmem (!%p335_p7), [#allocation2], %s640_s22 }
  0x50   : > { %v365_v54 = vld [vmem:[%s848_s23] sm:$0xff]  ;;  %v366_v55 = vld [vmem:[%s848_s23 + $0x8] sm:$0xff]  ;;  %v367_v56 = vld [vmem:[%s848_s23 + $0x10] sm:$0xff]  ;;  %s972_s9 = smov (!%p881_p8, %s562_s9), 1 }
  0x51   : > { %v570_v57 = vld [vmem:[%s848_s23 + $0x48] sm:$0xff]  ;;  %v855_v58 = vld [vmem:[%s848_s23 + $0x50] sm:$0xff]  ;;  %v858_v59 = vld [vmem:[%s848_s23 + $0x58] sm:$0xff]  ;;  %s614_s25 = sshll.u32 %s972_s9, 5 }
  0x52   : > { %v382_v60 = vmax.f32 %v365_v54, %v570_v57  ;;  %v383_v61 = vmax.f32 %v366_v55, %v855_v58  ;;  %v384_v62 = vmax.f32 %v367_v56, %v858_v59  ;;  %v578_v63 = vld [vmem:[%s848_s23 + $0x90] sm:$0xff]  ;;  %v864_v0 = vld [vmem:[%s848_s23 + $0x98] sm:$0xff]  ;;  %v867_v1 = vld [vmem:[%s848_s23 + $0xa0] sm:$0xff]  ;;  %s940_s28 = scalar_lea.vmem %s966_s1, %s614_s25 }
  0x53   : > { %v586_v2 = vld [vmem:[%s848_s23 + $0xd8] sm:$0xff]  ;;  %v587_v3 = vld [vmem:[%s848_s23 + $0xe0] sm:$0xff]  ;;  %v588_v4 = vld [vmem:[%s848_s23 + $0xe8] sm:$0xff] }
  0x54   : > { %v399_v5 = vmax.f32 %v382_v60, %v578_v63  ;;  %v400_v6 = vmax.f32 %v383_v61, %v864_v0  ;;  %v401_v7 = vmax.f32 %v384_v62, %v867_v1  ;;  %v594_v8 = vld [vmem:[%s848_s23 + $0x120] sm:$0xff]  ;;  %v595_v9 = vld [vmem:[%s848_s23 + $0x128] sm:$0xff]  ;;  %v596_v10 = vld [vmem:[%s848_s23 + $0x130] sm:$0xff] }
  0x55   : > { %v602_v11 = vld [vmem:[%s848_s23 + $0x168] sm:$0xff]  ;;  %v368_v12 = vld [vmem:[%s848_s23 + $0x18] sm:$0xff]  ;;  %v369_v16 = vld [vmem:[%s848_s23 + $0x20] sm:$0xff] }
  0x56   : > { %v416_v13 = vmax.f32 %v399_v5, %v586_v2  ;;  %v417_v14 = vmax.f32 %v400_v6, %v587_v3  ;;  %v418_v15 = vmax.f32 %v401_v7, %v588_v4  ;;  %v887_v17 = vld [vmem:[%s848_s23 + $0x60] sm:$0xff]  ;;  %v890_v18 = vld [vmem:[%s848_s23 + $0x68] sm:$0xff]  ;;  %v603_v19 = vld [vmem:[%s848_s23 + $0x170] sm:$0xff] }
  0x57   : > { %v385_v20 = vmax.f32 %v368_v12, %v887_v17  ;;  %v386_v21 = vmax.f32 %v369_v16, %v890_v18  ;;  %v581_v22 = vld [vmem:[%s848_s23 + $0xa8] sm:$0xff]  ;;  %v897_v23 = vld [vmem:[%s848_s23 + $0xb0] sm:$0xff]  ;;  %v590_v28 = vld [vmem:[%s848_s23 + $0xf8] sm:$0xff] }
  0x58   : > { %v433_v24 = vmax.f32 %v416_v13, %v594_v8  ;;  %v434_v25 = vmax.f32 %v417_v14, %v595_v9  ;;  %v435_v26 = vmax.f32 %v418_v15, %v596_v10  ;;  %v589_v27 = vld [vmem:[%s848_s23 + $0xf0] sm:$0xff]  ;;  %v597_v29 = vld [vmem:[%s848_s23 + $0x138] sm:$0xff]  ;;  %v598_v32 = vld [vmem:[%s848_s23 + $0x140] sm:$0xff] }
  0x59   : > { %v402_v30 = vmax.f32 %v385_v20, %v581_v22  ;;  %v403_v31 = vmax.f32 %v386_v21, %v897_v23  ;;  %v604_v33 = vld [vmem:[%s848_s23 + $0x178] sm:$0xff]  ;;  %v370_v34 = vld [vmem:[%s848_s23 + $0x28] sm:$0xff]  ;;  %v371_v38 = vld [vmem:[%s848_s23 + $0x30] sm:$0xff] }
  0x5a   : > { %v450_v35 = vmax.f32 %v433_v24, %v602_v11  ;;  %v451_v36 = vmax.f32 %v434_v25, %v603_v19  ;;  %v452_v37 = vmax.f32 %v435_v26, %v604_v33  ;;  %v575_v39 = vld [vmem:[%s848_s23 + $0x70] sm:$0xff]  ;;  %v915_v40 = vld [vmem:[%s848_s23 + $0x78] sm:$0xff]  ;;  %v584_v46 = vld [vmem:[%s848_s23 + $0xc0] sm:$0xff] }
  0x5b   : > { %v419_v41 = vmax.f32 %v402_v30, %v589_v27  ;;  %v420_v42 = vmax.f32 %v403_v31, %v590_v28  ;;  %v387_v43 = vmax.f32 %v370_v34, %v575_v39  ;;  %v388_v44 = vmax.f32 %v371_v38, %v915_v40  ;;  %v583_v45 = vld [vmem:[%s848_s23 + $0xb8] sm:$0xff]  ;;  %v605_v49 = vld [vmem:[%s848_s23 + $0x180] sm:$0xff]  ;;  %v592_v52 = vld [vmem:[%s848_s23 + $0x108] sm:$0xff] }
  0x5c   : > { %v459_v47 = vmax.f32 %v450_v35, %v366_v55  ;;  %v460_v48 = vmax.f32 %v451_v36, %v367_v56  ;;  %v461_v50 = vmax.f32 %v452_v37, %v368_v12  ;;  %v591_v51 = vld [vmem:[%s848_s23 + $0x100] sm:$0xff]  ;;  %v606_v61 = vld [vmem:[%s848_s23 + $0x188] sm:$0xff]  ;;  %v372_v62 = vld [vmem:[%s848_s23 + $0x38] sm:$0xff] }
  0x5d   : > { %v436_v53 = vmax.f32 %v419_v41, %v597_v29  ;;  %v437_v54 = vmax.f32 %v420_v42, %v598_v32  ;;  %v404_v57 = vmax.f32 %v387_v43, %v583_v45  ;;  %v405_v60 = vmax.f32 %v388_v44, %v584_v46  ;;  %v599_v2 = vld [vmem:[%s848_s23 + $0x148] sm:$0xff]  ;;  %v600_v3 = vld [vmem:[%s848_s23 + $0x150] sm:$0xff]  ;;  %v577_v4 = vld [vmem:[%s848_s23 + $0x80] sm:$0xff] }
  0x5e   : > { %v468_v55 = vmax.f32 %v459_v47, %v855_v58  ;;  %v469_v56 = vmax.f32 %v460_v48, %v858_v59  ;;  %v470_v63 = vmax.f32 %v461_v50, %v887_v17  ;;  %v585_v9 = vld [vmem:[%s848_s23 + $0xc8] sm:$0xff]  ;;  %v607_v12 = vld [vmem:[%s848_s23 + $0x190] sm:$0xff]  ;;  %v389_v58 = vmax.f32 %v372_v62, %v577_v4  ;;  %v608_v13 = vld [vmem:[%s848_s23 + $0x198] sm:$0xff] }
  0x5f   : > { %v453_v5 = vmax.f32 %v436_v53, %v605_v49  ;;  %v421_v6 = vmax.f32 %v404_v57, %v591_v51  ;;  %v422_v7 = vmax.f32 %v405_v60, %v592_v52  ;;  %v454_v8 = vmax.f32 %v437_v54, %v606_v61  ;;  %v593_v19 = vld [vmem:[%s848_s23 + $0x110] sm:$0xff]  ;;  %v601_v26 = vld [vmem:[%s848_s23 + $0x158] sm:$0xff]  ;;  %v609_v30 = vld [vmem:[%s848_s23 + $0x1a0] sm:$0xff] }
  0x60   : > { %v477_v10 = vmax.f32 %v468_v55, %v864_v0  ;;  %v478_v11 = vmax.f32 %v469_v56, %v867_v1  ;;  %v479_v0 = vmax.f32 %v470_v63, %v581_v22  ;;  %v406_v21 = vmax.f32 %v389_v58, %v585_v9 }
  0x61   : > { %v462_v59 = vmax.f32 %v453_v5, %v369_v16  ;;  %v438_v14 = vmax.f32 %v421_v6, %v599_v2  ;;  %v439_v15 = vmax.f32 %v422_v7, %v600_v3  ;;  %v463_v17 = vmax.f32 %v454_v8, %v370_v34  ;;  %v458_v34 = vld [vmem:[%s848_s23 + $0x40] sm:$0xff] }
  0x62   : > { %v618_v20 = vpack.c.bf16 %v478_v11, %v477_v10  ;;  %v423_v28 = vmax.f32 %v406_v21, %v593_v19 }
  0x63   : > { %v471_v1 = vmax.f32 %v462_v59, %v890_v18  ;;  %v455_v24 = vmax.f32 %v438_v14, %v607_v12  ;;  %v472_v25 = vmax.f32 %v463_v17, %v575_v39  ;;  %v456_v27 = vmax.f32 %v439_v15, %v608_v13  ;;  %v610_v39 = vld [vmem:[%s848_s23 + $0x88] sm:$0xff] }
  0x64   : > { %619 = vst [vmem:[%s940_s28] sm:$0xff] %v618_v20   ;;  %v440_v22 = vmax.f32 %v423_v28, %v601_v26 }
  0x65   : > { %v480_v16 = vmax.f32 %v471_v1, %v897_v23  ;;  %v464_v29 = vmax.f32 %v455_v24, %v371_v38  ;;  %v465_v31 = vmax.f32 %v456_v27, %v372_v62  ;;  %v481_v18 = vmax.f32 %v472_v25, %v583_v45  ;;  %v611_v23 = vld [vmem:[%s848_s23 + $0xd0] sm:$0xff] }
  0x66   : > { %v457_v35 = vmax.f32 %v440_v22, %v609_v30 }
  0x67   : > { %v623_v32 = vpack.c.bf16 %v480_v16, %v479_v0  ;;  %v473_v33 = vmax.f32 %v464_v29, %v915_v40  ;;  %v474_v36 = vmax.f32 %v465_v31, %v577_v4 }
  0x68   : > { %v466_v41 = vmax.f32 %v457_v35, %v458_v34 }
  0x69   : > { %635 = vst [vmem:[%s940_s28 + $0x8] sm:$0xff] %v623_v32   ;;  %v482_v37 = vmax.f32 %v473_v33, %v584_v46  ;;  %v483_v38 = vmax.f32 %v474_v36, %v585_v9 }
  0x6a   : > { %v475_v43 = vmax.f32 %v466_v41, %v610_v39 }
  0x6b   : > { %v628_v42 = vpack.c.bf16 %v482_v37, %v481_v18 }
  0x6c   : > { %v484_v44 = vmax.f32 %v475_v43, %v611_v23 }
  0x6d   : > { %636 = vst [vmem:[%s940_s28 + $0x10] sm:$0xff] %v628_v42  }
  0x6e   : > { %v633_v47 = vpack.c.bf16 %v484_v44, %v483_v38 }
  0x70   : > { %637 = vst [vmem:[%s940_s28 + $0x18] sm:$0xff] %v633_v47  }
  0x71 PF: > { %p8_p9 = scmp.ge.s32.totalorder %s716_s10, 4   ;;  %s968_s6 = smov %s683_s7 }
  0x72   : > { %s969_s7 = smov %s725_s13  ;;  %s970_s8 = smov %s716_s10 }
  0x73   :  { %10 = sbr.rel (!%p8_p9) target bundleno = 2 (0x2), region = 102 }

// kernel: feature_extractor_forward.46
= control target key start
LH: loop header
LB: loop body
LE: loop exit
PB: predicated region body
PF: predicated region fallthrough
CT: control target
= control target key end

     0   :  { %s665_s1 = inlined_call_operand.vmem [shape: bf16[128,128], index: 1, kind: input, shape index: {}]   ;;  %s666_s2 = inlined_call_operand.vmem [shape: f32[1,128], index: 2, kind: input, shape index: {}]   ;;  %s667_s3 = inlined_call_operand.vmem [shape: f32[1,128], index: 3, kind: input, shape index: {}]   ;;  %s668_s0 = inlined_call_operand.vmem [shape: bf16[128,128], index: 0, kind: input, shape index: {}]   ;;  %s669_s4 = inlined_call_operand.vmem [shape: bf16[128,128], index: 4, kind: output, shape index: {}]  }
   0x1   :  { %v452_v0 = vld [vmem:[%s665_s1 + $0x38] sm:$0xff]  ;;  %v451_v1 = vld [vmem:[%s665_s1 + $0x30] sm:$0xff]  ;;  %v450_v2 = vld [vmem:[%s665_s1 + $0x28] sm:$0xff] }
   0x2   :  { %181 = vmatpush.bf16.msra.mxu0 %v452_v0  ;;  %500 = vmatpush.bf16.msra.mxu1 %v452_v0  ;;  %v449_v3 = vld [vmem:[%s665_s1 + $0x20] sm:$0xff]  ;;  %v448_v4 = vld [vmem:[%s665_s1 + $0x18] sm:$0xff]  ;;  %v447_v5 = vld [vmem:[%s665_s1 + $0x10] sm:$0xff] }
   0x3   :  { %501 = vmatpush.bf16.msra.mxu2 %v452_v0  ;;  %502 = vmatpush.bf16.msra.mxu3 %v452_v0  ;;  %v446_v6 = vld [vmem:[%s665_s1 + $0x8] sm:$0xff]  ;;  %v445_v7 = vld [vmem:[%s665_s1] sm:$0xff]  ;;  %v439_v9 = vld [vmem:[%s668_s0 + $0x10] sm:$0xff] }
   0x4   :  { %v437_v8 = vld [vmem:[%s668_s0] sm:$0xff]  ;;  %v443_v11 = vld [vmem:[%s668_s0 + $0x30] sm:$0xff]  ;;  %v438_v12 = vld [vmem:[%s668_s0 + $0x8] sm:$0xff] }
   0x5   :  { %v441_v10 = vld [vmem:[%s668_s0 + $0x20] sm:$0xff]  ;;  %v440_v13 = vld [vmem:[%s668_s0 + $0x18] sm:$0xff]  ;;  %v442_v14 = vld [vmem:[%s668_s0 + $0x28] sm:$0xff] }
   0x6   :  { %182 = vmatpush.bf16.msra.mxu0 %v451_v1  ;;  %503 = vmatpush.bf16.msra.mxu1 %v451_v1  ;;  %v444_v15 = vld [vmem:[%s668_s0 + $0x38] sm:$0xff]  ;;  %v602_v18 = vld [vmem:[%s666_s2] ss:$0 sm:$0xff] }
   0x7   :  { %504 = vmatpush.bf16.msra.mxu2 %v451_v1  ;;  %505 = vmatpush.bf16.msra.mxu3 %v451_v1  ;;  %v608_v20 = vld [vmem:[%s667_s3] ss:$0 sm:$0xff] }
   0xa   :  { %183 = vmatpush.bf16.msra.mxu0 %v450_v2  ;;  %506 = vmatpush.bf16.msra.mxu1 %v450_v2 }
   0xb   :  { %507 = vmatpush.bf16.msra.mxu2 %v450_v2  ;;  %508 = vmatpush.bf16.msra.mxu3 %v450_v2 }
   0xe   :  { %184 = vmatpush.bf16.msra.mxu0 %v449_v3  ;;  %509 = vmatpush.bf16.msra.mxu1 %v449_v3 }
   0xf   :  { %510 = vmatpush.bf16.msra.mxu2 %v449_v3  ;;  %511 = vmatpush.bf16.msra.mxu3 %v449_v3 }
  0x12   :  { %185 = vmatpush.bf16.msra.mxu0 %v448_v4  ;;  %512 = vmatpush.bf16.msra.mxu1 %v448_v4 }
  0x13   :  { %513 = vmatpush.bf16.msra.mxu2 %v448_v4  ;;  %514 = vmatpush.bf16.msra.mxu3 %v448_v4 }
  0x16   :  { %186 = vmatpush.bf16.msra.mxu0 %v447_v5  ;;  %515 = vmatpush.bf16.msra.mxu1 %v447_v5 }
  0x17   :  { %516 = vmatpush.bf16.msra.mxu2 %v447_v5  ;;  %517 = vmatpush.bf16.msra.mxu3 %v447_v5 }
  0x1a   :  { %187 = vmatpush.bf16.msra.mxu0 %v446_v6  ;;  %518 = vmatpush.bf16.msra.mxu1 %v446_v6 }
  0x1b   :  { %519 = vmatpush.bf16.msra.mxu2 %v446_v6  ;;  %520 = vmatpush.bf16.msra.mxu3 %v446_v6 }
  0x1e   :  { %188 = vmatpush.bf16.msra.mxu0 %v445_v7  ;;  %521 = vmatpush.bf16.msra.mxu1 %v445_v7 }
  0x1f   :  { %522 = vmatpush.bf16.msra.mxu2 %v445_v7  ;;  %523 = vmatpush.bf16.msra.mxu3 %v445_v7 }
  0x21   :  { %189 = vmatmul.bf16.vlgmr.msra.gmra.mxu0 %v437_v8  ;;  %199 = vmatmul.bf16.vlgmr.msra.gmra.mxu1 %v439_v9 }
  0x22   :  { %209 = vmatmul.bf16.vlgmr.msra.gmra.mxu2 %v441_v10  ;;  %219 = vmatmul.bf16.vlgmr.msra.gmra.mxu3 %v443_v11 }
  0x31   :  { %194 = vmatmul.bf16.gmra.mxu0 %v438_v12  ;;  %204 = vmatmul.bf16.gmra.mxu1 %v440_v13 }
  0x32   :  { %214 = vmatmul.bf16.gmra.mxu2 %v442_v14  ;;  %224 = vmatmul.bf16.gmra.mxu3 %v444_v15 }
  0x9e   :  { %v190_v16 = vpop.f32.mrf.mxu0  ;;  %v200_v17 = vpop.f32.mrf.mxu1 }
  0x9f   :  { %v285_v19 = vmul.f32 %v602_v18, %v190_v16  ;;  %v289_v21 = vmul.f32 %v602_v18, %v200_v17 }
  0xa1   :  { %v305_v26 = vadd.f32 %v608_v20, %v285_v19  ;;  %v309_v27 = vadd.f32 %v608_v20, %v289_v21 }
  0xa3   :  { %v321_v34 = vmax.f32 %v305_v26, 0.0  ;;  %v325_v35 = vmax.f32 %v309_v27, 0.0 }
  0xa5   :  { %v210_v22 = vpop.f32.mrf.mxu2  ;;  %v220_v23 = vpop.f32.mrf.mxu3 }
  0xa6   :  { %v192_v24 = vpop.f32.mrf.mxu0  ;;  %v202_v25 = vpop.f32.mrf.mxu1  ;;  %v293_v32 = vmul.f32 %v602_v18, %v210_v22  ;;  %v297_v33 = vmul.f32 %v602_v18, %v220_v23 }
  0xa7   :  { %v286_v28 = vmul.f32 %v602_v18, %v192_v24  ;;  %v290_v29 = vmul.f32 %v602_v18, %v202_v25 }
  0xa8   :  { %v313_v42 = vadd.f32 %v608_v20, %v293_v32  ;;  %v317_v43 = vadd.f32 %v608_v20, %v297_v33 }
  0xa9   :  { %v306_v30 = vadd.f32 %v608_v20, %v286_v28  ;;  %v310_v31 = vadd.f32 %v608_v20, %v290_v29 }
  0xaa   :  { %v329_v50 = vmax.f32 %v313_v42, 0.0  ;;  %v333_v51 = vmax.f32 %v317_v43, 0.0 }
  0xab   :  { %v322_v36 = vmax.f32 %v306_v30, 0.0  ;;  %v326_v37 = vmax.f32 %v310_v31, 0.0 }
  0xad   :  { %v456_v38 = vpack.c.bf16 %v322_v36, %v321_v34  ;;  %v466_v39 = vpack.c.bf16 %v326_v37, %v325_v35  ;;  %v212_v40 = vpop.f32.mrf.mxu2  ;;  %v222_v41 = vpop.f32.mrf.mxu3 }
  0xae   :  { %v294_v44 = vmul.f32 %v602_v18, %v212_v40  ;;  %v298_v45 = vmul.f32 %v602_v18, %v222_v41  ;;  %v195_v46 = vpop.f32.mrf.mxu0  ;;  %v205_v47 = vpop.f32.mrf.mxu1 }
  0xaf   :  { %457 = vst [vmem:[%s669_s4] sm:$0xff] %v456_v38   ;;  %v287_v54 = vmul.f32 %v602_v18, %v195_v46  ;;  %v291_v55 = vmul.f32 %v602_v18, %v205_v47 }
  0xb0   :  { %494 = vst [vmem:[%s669_s4 + $0x10] sm:$0xff] %v466_v39   ;;  %v314_v48 = vadd.f32 %v608_v20, %v294_v44  ;;  %v318_v49 = vadd.f32 %v608_v20, %v298_v45 }
  0xb1   :  { %v307_v62 = vadd.f32 %v608_v20, %v287_v54  ;;  %v311_v63 = vadd.f32 %v608_v20, %v291_v55 }
  0xb2   :  { %v330_v52 = vmax.f32 %v314_v48, 0.0  ;;  %v334_v53 = vmax.f32 %v318_v49, 0.0 }
  0xb3   :  { %v323_v6 = vmax.f32 %v307_v62, 0.0  ;;  %v327_v7 = vmax.f32 %v311_v63, 0.0 }
  0xb4   :  { %v476_v56 = vpack.c.bf16 %v330_v52, %v329_v50  ;;  %v486_v57 = vpack.c.bf16 %v334_v53, %v333_v51 }
  0xb5   :  { %v215_v58 = vpop.f32.mrf.mxu2  ;;  %v225_v59 = vpop.f32.mrf.mxu3 }
  0xb6   :  { %496 = vst [vmem:[%s669_s4 + $0x20] sm:$0xff] %v476_v56   ;;  %v197_v60 = vpop.f32.mrf.mxu0  ;;  %v207_v61 = vpop.f32.mrf.mxu1  ;;  %v295_v4 = vmul.f32 %v602_v18, %v215_v58  ;;  %v299_v5 = vmul.f32 %v602_v18, %v225_v59 }
  0xb7   :  { %498 = vst [vmem:[%s669_s4 + $0x30] sm:$0xff] %v486_v57   ;;  %v288_v0 = vmul.f32 %v602_v18, %v197_v60  ;;  %v292_v1 = vmul.f32 %v602_v18, %v207_v61 }
  0xb8   :  { %v315_v14 = vadd.f32 %v608_v20, %v295_v4  ;;  %v319_v15 = vadd.f32 %v608_v20, %v299_v5 }
  0xb9   :  { %v308_v2 = vadd.f32 %v608_v20, %v288_v0  ;;  %v312_v3 = vadd.f32 %v608_v20, %v292_v1 }
  0xba   :  { %v331_v22 = vmax.f32 %v315_v14, 0.0  ;;  %v335_v23 = vmax.f32 %v319_v15, 0.0 }
  0xbb   :  { %v324_v8 = vmax.f32 %v308_v2, 0.0  ;;  %v328_v9 = vmax.f32 %v312_v3, 0.0 }
  0xbd   :  { %v461_v10 = vpack.c.bf16 %v324_v8, %v323_v6  ;;  %v471_v11 = vpack.c.bf16 %v328_v9, %v327_v7  ;;  %v217_v12 = vpop.f32.mrf.mxu2  ;;  %v227_v13 = vpop.f32.mrf.mxu3 }
  0xbe   :  { %v296_v16 = vmul.f32 %v602_v18, %v217_v12  ;;  %v300_v17 = vmul.f32 %v602_v18, %v227_v13 }
  0xbf   :  { %493 = vst [vmem:[%s669_s4 + $0x8] sm:$0xff] %v461_v10  }
  0xc0   :  { %495 = vst [vmem:[%s669_s4 + $0x18] sm:$0xff] %v471_v11   ;;  %v316_v19 = vadd.f32 %v608_v20, %v296_v16  ;;  %v320_v21 = vadd.f32 %v608_v20, %v300_v17 }
  0xc2   :  { %v332_v24 = vmax.f32 %v316_v19, 0.0  ;;  %v336_v25 = vmax.f32 %v320_v21, 0.0 }
  0xc4   :  { %v481_v26 = vpack.c.bf16 %v332_v24, %v331_v22  ;;  %v491_v27 = vpack.c.bf16 %v336_v25, %v335_v23 }
  0xc6   :  { %497 = vst [vmem:[%s669_s4 + $0x28] sm:$0xff] %v481_v26  }
  0xc7   :  { %499 = vst [vmem:[%s669_s4 + $0x38] sm:$0xff] %v491_v27  }

// kernel: feature_extractor_forward.48
= control target key start
LH: loop header
LB: loop body
LE: loop exit
PB: predicated region body
PF: predicated region fallthrough
CT: control target
= control target key end

     0   :  { %s613_s1 = inlined_call_operand.vmem [shape: bf16[128,128], index: 1, kind: input, shape index: {}]   ;;  %s614_s2 = inlined_call_operand.vmem [shape: f32[1,128], index: 2, kind: input, shape index: {}]   ;;  %s615_s3 = inlined_call_operand.vmem [shape: f32[1,128], index: 3, kind: input, shape index: {}]   ;;  %s616_s0 = inlined_call_operand.vmem [shape: bf16[128,128], index: 0, kind: input, shape index: {}]   ;;  %s617_s4 = inlined_call_operand.vmem [shape: bf16[128,128], index: 4, kind: output, shape index: {}]  }
   0x1   :  { %v436_v0 = vld [vmem:[%s613_s1 + $0x38] sm:$0xff]  ;;  %v435_v1 = vld [vmem:[%s613_s1 + $0x30] sm:$0xff]  ;;  %v434_v2 = vld [vmem:[%s613_s1 + $0x28] sm:$0xff] }
   0x2   :  { %181 = vmatpush.bf16.msra.mxu0 %v436_v0  ;;  %484 = vmatpush.bf16.msra.mxu1 %v436_v0  ;;  %v433_v3 = vld [vmem:[%s613_s1 + $0x20] sm:$0xff]  ;;  %v432_v4 = vld [vmem:[%s613_s1 + $0x18] sm:$0xff]  ;;  %v431_v5 = vld [vmem:[%s613_s1 + $0x10] sm:$0xff] }
   0x3   :  { %485 = vmatpush.bf16.msra.mxu2 %v436_v0  ;;  %486 = vmatpush.bf16.msra.mxu3 %v436_v0  ;;  %v430_v6 = vld [vmem:[%s613_s1 + $0x8] sm:$0xff]  ;;  %v429_v7 = vld [vmem:[%s613_s1] sm:$0xff]  ;;  %v423_v9 = vld [vmem:[%s616_s0 + $0x10] sm:$0xff] }
   0x4   :  { %v421_v8 = vld [vmem:[%s616_s0] sm:$0xff]  ;;  %v427_v11 = vld [vmem:[%s616_s0 + $0x30] sm:$0xff]  ;;  %v422_v12 = vld [vmem:[%s616_s0 + $0x8] sm:$0xff] }
   0x5   :  { %v425_v10 = vld [vmem:[%s616_s0 + $0x20] sm:$0xff]  ;;  %v424_v13 = vld [vmem:[%s616_s0 + $0x18] sm:$0xff]  ;;  %v426_v14 = vld [vmem:[%s616_s0 + $0x28] sm:$0xff] }
   0x6   :  { %182 = vmatpush.bf16.msra.mxu0 %v435_v1  ;;  %487 = vmatpush.bf16.msra.mxu1 %v435_v1  ;;  %v428_v15 = vld [vmem:[%s616_s0 + $0x38] sm:$0xff]  ;;  %v508_v18 = vld [vmem:[%s614_s2] ss:$0 sm:$0xff] }
   0x7   :  { %488 = vmatpush.bf16.msra.mxu2 %v435_v1  ;;  %489 = vmatpush.bf16.msra.mxu3 %v435_v1  ;;  %v509_v20 = vld [vmem:[%s615_s3] ss:$0 sm:$0xff] }
   0xa   :  { %183 = vmatpush.bf16.msra.mxu0 %v434_v2  ;;  %490 = vmatpush.bf16.msra.mxu1 %v434_v2 }
   0xb   :  { %491 = vmatpush.bf16.msra.mxu2 %v434_v2  ;;  %492 = vmatpush.bf16.msra.mxu3 %v434_v2 }
   0xe   :  { %184 = vmatpush.bf16.msra.mxu0 %v433_v3  ;;  %493 = vmatpush.bf16.msra.mxu1 %v433_v3 }
   0xf   :  { %494 = vmatpush.bf16.msra.mxu2 %v433_v3  ;;  %495 = vmatpush.bf16.msra.mxu3 %v433_v3 }
  0x12   :  { %185 = vmatpush.bf16.msra.mxu0 %v432_v4  ;;  %496 = vmatpush.bf16.msra.mxu1 %v432_v4 }
  0x13   :  { %497 = vmatpush.bf16.msra.mxu2 %v432_v4  ;;  %498 = vmatpush.bf16.msra.mxu3 %v432_v4 }
  0x16   :  { %186 = vmatpush.bf16.msra.mxu0 %v431_v5  ;;  %499 = vmatpush.bf16.msra.mxu1 %v431_v5 }
  0x17   :  { %500 = vmatpush.bf16.msra.mxu2 %v431_v5  ;;  %501 = vmatpush.bf16.msra.mxu3 %v431_v5 }
  0x1a   :  { %187 = vmatpush.bf16.msra.mxu0 %v430_v6  ;;  %502 = vmatpush.bf16.msra.mxu1 %v430_v6 }
  0x1b   :  { %503 = vmatpush.bf16.msra.mxu2 %v430_v6  ;;  %504 = vmatpush.bf16.msra.mxu3 %v430_v6 }
  0x1e   :  { %188 = vmatpush.bf16.msra.mxu0 %v429_v7  ;;  %505 = vmatpush.bf16.msra.mxu1 %v429_v7 }
  0x1f   :  { %506 = vmatpush.bf16.msra.mxu2 %v429_v7  ;;  %507 = vmatpush.bf16.msra.mxu3 %v429_v7 }
  0x21   :  { %189 = vmatmul.bf16.vlgmr.msra.gmra.mxu0 %v421_v8  ;;  %199 = vmatmul.bf16.vlgmr.msra.gmra.mxu1 %v423_v9 }
  0x22   :  { %209 = vmatmul.bf16.vlgmr.msra.gmra.mxu2 %v425_v10  ;;  %219 = vmatmul.bf16.vlgmr.msra.gmra.mxu3 %v427_v11 }
  0x31   :  { %194 = vmatmul.bf16.gmra.mxu0 %v422_v12  ;;  %204 = vmatmul.bf16.gmra.mxu1 %v424_v13 }
  0x32   :  { %214 = vmatmul.bf16.gmra.mxu2 %v426_v14  ;;  %224 = vmatmul.bf16.gmra.mxu3 %v428_v15 }
  0x9e   :  { %v190_v16 = vpop.f32.mrf.mxu0  ;;  %v200_v17 = vpop.f32.mrf.mxu1 }
  0x9f   :  { %v285_v19 = vmul.f32 %v508_v18, %v190_v16  ;;  %v289_v21 = vmul.f32 %v508_v18, %v200_v17 }
  0xa1   :  { %v305_v28 = vadd.f32 %v509_v20, %v285_v19  ;;  %v309_v29 = vadd.f32 %v509_v20, %v289_v21 }
  0xa5   :  { %v210_v22 = vpop.f32.mrf.mxu2  ;;  %v220_v23 = vpop.f32.mrf.mxu3 }
  0xa6   :  { %v192_v24 = vpop.f32.mrf.mxu0  ;;  %v202_v25 = vpop.f32.mrf.mxu1  ;;  %v293_v34 = vmul.f32 %v508_v18, %v210_v22  ;;  %v297_v35 = vmul.f32 %v508_v18, %v220_v23 }
  0xa7   :  { %v286_v26 = vmul.f32 %v508_v18, %v192_v24  ;;  %v290_v27 = vmul.f32 %v508_v18, %v202_v25 }
  0xa8   :  { %v313_v42 = vadd.f32 %v509_v20, %v293_v34  ;;  %v317_v43 = vadd.f32 %v509_v20, %v297_v35 }
  0xa9   :  { %v306_v30 = vadd.f32 %v509_v20, %v286_v26  ;;  %v310_v31 = vadd.f32 %v509_v20, %v290_v27 }
  0xab   :  { %v440_v32 = vpack.c.bf16 %v306_v30, %v305_v28  ;;  %v450_v33 = vpack.c.bf16 %v310_v31, %v309_v29 }
  0xad   :  { %441 = vst [vmem:[%s617_s4] sm:$0xff] %v440_v32   ;;  %v212_v36 = vpop.f32.mrf.mxu2  ;;  %v222_v37 = vpop.f32.mrf.mxu3 }
  0xae   :  { %478 = vst [vmem:[%s617_s4 + $0x10] sm:$0xff] %v450_v33   ;;  %v294_v38 = vmul.f32 %v508_v18, %v212_v36  ;;  %v298_v39 = vmul.f32 %v508_v18, %v222_v37  ;;  %v195_v40 = vpop.f32.mrf.mxu0  ;;  %v205_v41 = vpop.f32.mrf.mxu1 }
  0xaf   :  { %v287_v48 = vmul.f32 %v508_v18, %v195_v40  ;;  %v291_v49 = vmul.f32 %v508_v18, %v205_v41 }
  0xb0   :  { %v314_v44 = vadd.f32 %v509_v20, %v294_v38  ;;  %v318_v45 = vadd.f32 %v509_v20, %v298_v39 }
  0xb1   :  { %v307_v56 = vadd.f32 %v509_v20, %v287_v48  ;;  %v311_v57 = vadd.f32 %v509_v20, %v291_v49 }
  0xb2   :  { %v460_v46 = vpack.c.bf16 %v314_v44, %v313_v42  ;;  %v470_v47 = vpack.c.bf16 %v318_v45, %v317_v43 }
  0xb4   :  { %480 = vst [vmem:[%s617_s4 + $0x20] sm:$0xff] %v460_v46  }
  0xb5   :  { %482 = vst [vmem:[%s617_s4 + $0x30] sm:$0xff] %v470_v47   ;;  %v215_v50 = vpop.f32.mrf.mxu2  ;;  %v225_v51 = vpop.f32.mrf.mxu3 }
  0xb6   :  { %v197_v52 = vpop.f32.mrf.mxu0  ;;  %v207_v53 = vpop.f32.mrf.mxu1  ;;  %v295_v62 = vmul.f32 %v508_v18, %v215_v50  ;;  %v299_v63 = vmul.f32 %v508_v18, %v225_v51 }
  0xb7   :  { %v288_v54 = vmul.f32 %v508_v18, %v197_v52  ;;  %v292_v55 = vmul.f32 %v508_v18, %v207_v53 }
  0xb8   :  { %v315_v4 = vadd.f32 %v509_v20, %v295_v62  ;;  %v319_v5 = vadd.f32 %v509_v20, %v299_v63 }
  0xb9   :  { %v308_v58 = vadd.f32 %v509_v20, %v288_v54  ;;  %v312_v59 = vadd.f32 %v509_v20, %v292_v55 }
  0xbb   :  { %v445_v60 = vpack.c.bf16 %v308_v58, %v307_v56  ;;  %v455_v61 = vpack.c.bf16 %v312_v59, %v311_v57 }
  0xbd   :  { %477 = vst [vmem:[%s617_s4 + $0x8] sm:$0xff] %v445_v60   ;;  %v217_v0 = vpop.f32.mrf.mxu2  ;;  %v227_v1 = vpop.f32.mrf.mxu3 }
  0xbe   :  { %479 = vst [vmem:[%s617_s4 + $0x18] sm:$0xff] %v455_v61   ;;  %v296_v2 = vmul.f32 %v508_v18, %v217_v0  ;;  %v300_v3 = vmul.f32 %v508_v18, %v227_v1 }
  0xc0   :  { %v316_v6 = vadd.f32 %v509_v20, %v296_v2  ;;  %v320_v7 = vadd.f32 %v509_v20, %v300_v3 }
  0xc2   :  { %v465_v8 = vpack.c.bf16 %v316_v6, %v315_v4  ;;  %v475_v9 = vpack.c.bf16 %v320_v7, %v319_v5 }
  0xc4   :  { %481 = vst [vmem:[%s617_s4 + $0x28] sm:$0xff] %v465_v8  }
  0xc5   :  { %483 = vst [vmem:[%s617_s4 + $0x38] sm:$0xff] %v475_v9  }

// kernel: feature_extractor_forward.49
= control target key start
LH: loop header
LB: loop body
LE: loop exit
PB: predicated region body
PF: predicated region fallthrough
CT: control target
= control target key end

     0   :  { %s784_s1 = inlined_call_operand.vmem [shape: bf16[128,128], index: 1, kind: input, shape index: {}]   ;;  %s785_s2 = inlined_call_operand.vmem [shape: f32[1,128], index: 2, kind: input, shape index: {}]   ;;  %s786_s3 = inlined_call_operand.vmem [shape: f32[1,128], index: 3, kind: input, shape index: {}]   ;;  %s787_s0 = inlined_call_operand.vmem [shape: bf16[128,128], index: 0, kind: input, shape index: {}]   ;;  %s788_s4 = inlined_call_operand.vmem [shape: bf16[128,128], index: 4, kind: input, shape index: {}]   ;;  %s789_s5 = inlined_call_operand.vmem [shape: bf16[128,128], index: 5, kind: output, shape index: {}]  }
   0x1   :  { %v503_v0 = vld [vmem:[%s784_s1 + $0x38] sm:$0xff]  ;;  %v502_v1 = vld [vmem:[%s784_s1 + $0x30] sm:$0xff]  ;;  %v501_v2 = vld [vmem:[%s784_s1 + $0x28] sm:$0xff] }
   0x2   :  { %184 = vmatpush.bf16.msra.mxu0 %v503_v0  ;;  %590 = vmatpush.bf16.msra.mxu1 %v503_v0  ;;  %v500_v3 = vld [vmem:[%s784_s1 + $0x20] sm:$0xff]  ;;  %v499_v4 = vld [vmem:[%s784_s1 + $0x18] sm:$0xff]  ;;  %v498_v5 = vld [vmem:[%s784_s1 + $0x10] sm:$0xff] }
   0x3   :  { %591 = vmatpush.bf16.msra.mxu2 %v503_v0  ;;  %592 = vmatpush.bf16.msra.mxu3 %v503_v0  ;;  %v497_v6 = vld [vmem:[%s784_s1 + $0x8] sm:$0xff]  ;;  %v496_v7 = vld [vmem:[%s784_s1] sm:$0xff]  ;;  %v490_v9 = vld [vmem:[%s787_s0 + $0x10] sm:$0xff] }
   0x4   :  { %v488_v8 = vld [vmem:[%s787_s0] sm:$0xff]  ;;  %v494_v11 = vld [vmem:[%s787_s0 + $0x30] sm:$0xff]  ;;  %v489_v12 = vld [vmem:[%s787_s0 + $0x8] sm:$0xff] }
   0x5   :  { %v492_v10 = vld [vmem:[%s787_s0 + $0x20] sm:$0xff]  ;;  %v491_v13 = vld [vmem:[%s787_s0 + $0x18] sm:$0xff]  ;;  %v493_v14 = vld [vmem:[%s787_s0 + $0x28] sm:$0xff] }
   0x6   :  { %185 = vmatpush.bf16.msra.mxu0 %v502_v1  ;;  %593 = vmatpush.bf16.msra.mxu1 %v502_v1  ;;  %v495_v15 = vld [vmem:[%s787_s0 + $0x38] sm:$0xff]  ;;  %v697_v16 = vld [vmem:[%s785_s2] ss:$0 sm:$0xff]  ;;  %v577_v23 = vld [vmem:[%s788_s4 + $0x10] sm:$0xff]  }
   0x7   :  { %594 = vmatpush.bf16.msra.mxu2 %v502_v1  ;;  %595 = vmatpush.bf16.msra.mxu3 %v502_v1  ;;  %v703_v20 = vld [vmem:[%s786_s3] ss:$0 sm:$0xff]  ;;  %v514_v27 = vunpack.c.l.bf16 %v577_v23  ;;  %v515_v35 = vunpack.c.h.bf16 %v577_v23  ;;  %v581_v41 = vld [vmem:[%s788_s4 + $0x30] sm:$0xff]  }
   0x8   :  { %v505_v22 = vld [vmem:[%s788_s4] sm:$0xff]   ;;  %v530_v49 = vunpack.c.l.bf16 %v581_v41  ;;  %v531_v59 = vunpack.c.h.bf16 %v581_v41 }
   0x9   :  { %v506_v25 = vunpack.c.l.bf16 %v505_v22  ;;  %v507_v33 = vunpack.c.h.bf16 %v505_v22  ;;  %v579_v40 = vld [vmem:[%s788_s4 + $0x20] sm:$0xff]  }
   0xa   :  { %186 = vmatpush.bf16.msra.mxu0 %v501_v2  ;;  %596 = vmatpush.bf16.msra.mxu1 %v501_v2  ;;  %v522_v47 = vunpack.c.l.bf16 %v579_v40  ;;  %v523_v57 = vunpack.c.h.bf16 %v579_v40 }
   0xb   :  { %597 = vmatpush.bf16.msra.mxu2 %v501_v2  ;;  %598 = vmatpush.bf16.msra.mxu3 %v501_v2 }
   0xe   :  { %187 = vmatpush.bf16.msra.mxu0 %v500_v3  ;;  %599 = vmatpush.bf16.msra.mxu1 %v500_v3 }
   0xf   :  { %600 = vmatpush.bf16.msra.mxu2 %v500_v3  ;;  %601 = vmatpush.bf16.msra.mxu3 %v500_v3 }
  0x12   :  { %188 = vmatpush.bf16.msra.mxu0 %v499_v4  ;;  %602 = vmatpush.bf16.msra.mxu1 %v499_v4 }
  0x13   :  { %603 = vmatpush.bf16.msra.mxu2 %v499_v4  ;;  %604 = vmatpush.bf16.msra.mxu3 %v499_v4 }
  0x16   :  { %189 = vmatpush.bf16.msra.mxu0 %v498_v5  ;;  %605 = vmatpush.bf16.msra.mxu1 %v498_v5 }
  0x17   :  { %606 = vmatpush.bf16.msra.mxu2 %v498_v5  ;;  %607 = vmatpush.bf16.msra.mxu3 %v498_v5 }
  0x1a   :  { %190 = vmatpush.bf16.msra.mxu0 %v497_v6  ;;  %608 = vmatpush.bf16.msra.mxu1 %v497_v6 }
  0x1b   :  { %609 = vmatpush.bf16.msra.mxu2 %v497_v6  ;;  %610 = vmatpush.bf16.msra.mxu3 %v497_v6 }
  0x1e   :  { %191 = vmatpush.bf16.msra.mxu0 %v496_v7  ;;  %611 = vmatpush.bf16.msra.mxu1 %v496_v7 }
  0x1f   :  { %612 = vmatpush.bf16.msra.mxu2 %v496_v7  ;;  %613 = vmatpush.bf16.msra.mxu3 %v496_v7 }
  0x21   :  { %192 = vmatmul.bf16.vlgmr.msra.gmra.mxu0 %v488_v8  ;;  %202 = vmatmul.bf16.vlgmr.msra.gmra.mxu1 %v490_v9  ;;  %v576_v8 = vld [vmem:[%s788_s4 + $0x8] sm:$0xff]   ;;  %v578_v9 = vld [vmem:[%s788_s4 + $0x18] sm:$0xff]  }
  0x22   :  { %212 = vmatmul.bf16.vlgmr.msra.gmra.mxu2 %v492_v10  ;;  %222 = vmatmul.bf16.vlgmr.msra.gmra.mxu3 %v494_v11 }
  0x31   :  { %197 = vmatmul.bf16.gmra.mxu0 %v489_v12  ;;  %207 = vmatmul.bf16.gmra.mxu1 %v491_v13 }
  0x32   :  { %217 = vmatmul.bf16.gmra.mxu2 %v493_v14  ;;  %227 = vmatmul.bf16.gmra.mxu3 %v495_v15  ;;  %v510_v15 = vunpack.c.l.bf16 %v576_v8 }
  0x9e   :  { %v193_v17 = vpop.f32.mrf.mxu0  ;;  %v203_v18 = vpop.f32.mrf.mxu1 }
  0x9f   :  { %v288_v19 = vmul.f32 %v697_v16, %v193_v17  ;;  %v292_v21 = vmul.f32 %v697_v16, %v203_v18  ;;  %v518_v18 = vunpack.c.l.bf16 %v578_v9 }
  0xa1   :  { %v308_v24 = vadd.f32 %v703_v20, %v288_v19  ;;  %v312_v26 = vadd.f32 %v703_v20, %v292_v21 }
  0xa3   :  { %v356_v38 = vadd.f32 %v506_v25, %v308_v24  ;;  %v360_v39 = vadd.f32 %v514_v27, %v312_v26  ;;  %v511_v27 = vunpack.c.h.bf16 %v576_v8 }
  0xa5   :  { %v213_v28 = vpop.f32.mrf.mxu2  ;;  %v223_v29 = vpop.f32.mrf.mxu3  ;;  %v372_v50 = vmax.f32 %v356_v38, 0.0  ;;  %v376_v51 = vmax.f32 %v360_v39, 0.0 }
  0xa6   :  { %v195_v30 = vpop.f32.mrf.mxu0  ;;  %v205_v31 = vpop.f32.mrf.mxu1  ;;  %v296_v36 = vmul.f32 %v697_v16, %v213_v28  ;;  %v300_v37 = vmul.f32 %v697_v16, %v223_v29  ;;  %v519_v29 = vunpack.c.h.bf16 %v578_v9 }
  0xa7   :  { %v289_v32 = vmul.f32 %v697_v16, %v195_v30  ;;  %v293_v34 = vmul.f32 %v697_v16, %v205_v31 }
  0xa8   :  { %v316_v46 = vadd.f32 %v703_v20, %v296_v36  ;;  %v320_v48 = vadd.f32 %v703_v20, %v300_v37 }
  0xa9   :  { %v309_v42 = vadd.f32 %v703_v20, %v289_v32  ;;  %v313_v43 = vadd.f32 %v703_v20, %v293_v34  ;;  %v580_v34 = vld [vmem:[%s788_s4 + $0x28] sm:$0xff]  }
  0xaa   :  { %v364_v0 = vadd.f32 %v522_v47, %v316_v46  ;;  %v368_v1 = vadd.f32 %v530_v49, %v320_v48  ;;  %v526_v41 = vunpack.c.l.bf16 %v580_v34 }
  0xab   :  { %v357_v44 = vadd.f32 %v507_v33, %v309_v42  ;;  %v361_v45 = vadd.f32 %v515_v35, %v313_v43  ;;  %v582_v35 = vld [vmem:[%s788_s4 + $0x38] sm:$0xff]  }
  0xac   :  { %v380_v10 = vmax.f32 %v364_v0, 0.0  ;;  %v384_v11 = vmax.f32 %v368_v1, 0.0  ;;  %v534_v43 = vunpack.c.l.bf16 %v582_v35 }
  0xad   :  { %v373_v52 = vmax.f32 %v357_v44, 0.0  ;;  %v377_v53 = vmax.f32 %v361_v45, 0.0  ;;  %v215_v54 = vpop.f32.mrf.mxu2  ;;  %v225_v55 = vpop.f32.mrf.mxu3 }
  0xae   :  { %v297_v56 = vmul.f32 %v697_v16, %v215_v54  ;;  %v301_v58 = vmul.f32 %v697_v16, %v225_v55  ;;  %v198_v60 = vpop.f32.mrf.mxu0  ;;  %v208_v61 = vpop.f32.mrf.mxu1 }
  0xaf   :  { %v539_v62 = vpack.c.bf16 %v373_v52, %v372_v50  ;;  %v549_v63 = vpack.c.bf16 %v377_v53, %v376_v51  ;;  %v290_v4 = vmul.f32 %v697_v16, %v198_v60  ;;  %v294_v5 = vmul.f32 %v697_v16, %v208_v61 }
  0xb0   :  { %v317_v2 = vadd.f32 %v703_v20, %v297_v56  ;;  %v321_v3 = vadd.f32 %v703_v20, %v301_v58  ;;  %v527_v51 = vunpack.c.h.bf16 %v580_v34  ;;  %v535_v53 = vunpack.c.h.bf16 %v582_v35 }
  0xb1   :  { %540 = vst [vmem:[%s789_s5] sm:$0xff] %v539_v62   ;;  %v310_v14 = vadd.f32 %v703_v20, %v290_v4  ;;  %v314_v17 = vadd.f32 %v703_v20, %v294_v5 }
  0xb2   :  { %584 = vst [vmem:[%s789_s5 + $0x10] sm:$0xff] %v549_v63   ;;  %v365_v6 = vadd.f32 %v523_v57, %v317_v2  ;;  %v369_v7 = vadd.f32 %v531_v59, %v321_v3 }
  0xb3   :  { %v358_v32 = vadd.f32 %v510_v15, %v310_v14  ;;  %v362_v33 = vadd.f32 %v518_v18, %v314_v17 }
  0xb4   :  { %v381_v12 = vmax.f32 %v365_v6, 0.0  ;;  %v385_v13 = vmax.f32 %v369_v7, 0.0 }
  0xb5   :  { %v218_v19 = vpop.f32.mrf.mxu2  ;;  %v228_v21 = vpop.f32.mrf.mxu3  ;;  %v374_v44 = vmax.f32 %v358_v32, 0.0  ;;  %v378_v45 = vmax.f32 %v362_v33, 0.0 }
  0xb6   :  { %v559_v22 = vpack.c.bf16 %v381_v12, %v380_v10  ;;  %v569_v23 = vpack.c.bf16 %v385_v13, %v384_v11  ;;  %v200_v24 = vpop.f32.mrf.mxu0  ;;  %v210_v25 = vpop.f32.mrf.mxu1  ;;  %v298_v30 = vmul.f32 %v697_v16, %v218_v19  ;;  %v302_v31 = vmul.f32 %v697_v16, %v228_v21 }
  0xb7   :  { %v291_v26 = vmul.f32 %v697_v16, %v200_v24  ;;  %v295_v28 = vmul.f32 %v697_v16, %v210_v25 }
  0xb8   :  { %586 = vst [vmem:[%s789_s5 + $0x20] sm:$0xff] %v559_v22   ;;  %v318_v40 = vadd.f32 %v703_v20, %v298_v30  ;;  %v322_v42 = vadd.f32 %v703_v20, %v302_v31 }
  0xb9   :  { %588 = vst [vmem:[%s789_s5 + $0x30] sm:$0xff] %v569_v23   ;;  %v311_v36 = vadd.f32 %v703_v20, %v291_v26  ;;  %v315_v37 = vadd.f32 %v703_v20, %v295_v28 }
  0xba   :  { %v366_v56 = vadd.f32 %v526_v41, %v318_v40  ;;  %v370_v57 = vadd.f32 %v534_v43, %v322_v42 }
  0xbb   :  { %v359_v38 = vadd.f32 %v511_v27, %v311_v36  ;;  %v363_v39 = vadd.f32 %v519_v29, %v315_v37 }
  0xbc   :  { %v386_v62 = vmax.f32 %v370_v57, 0.0 }
  0xbd   :  { %v375_v46 = vmax.f32 %v359_v38, 0.0  ;;  %v379_v47 = vmax.f32 %v363_v39, 0.0  ;;  %v220_v48 = vpop.f32.mrf.mxu2  ;;  %v230_v49 = vpop.f32.mrf.mxu3 }
  0xbe   :  { %v299_v50 = vmul.f32 %v697_v16, %v220_v48  ;;  %v303_v52 = vmul.f32 %v697_v16, %v230_v49  ;;  %v382_v16 = vmax.f32 %v366_v56, 0.0 }
  0xbf   :  { %v544_v54 = vpack.c.bf16 %v375_v46, %v374_v44  ;;  %v554_v55 = vpack.c.bf16 %v379_v47, %v378_v45 }
  0xc0   :  { %v319_v58 = vadd.f32 %v703_v20, %v299_v50  ;;  %v323_v59 = vadd.f32 %v703_v20, %v303_v52 }
  0xc1   :  { %583 = vst [vmem:[%s789_s5 + $0x8] sm:$0xff] %v544_v54  }
  0xc2   :  { %585 = vst [vmem:[%s789_s5 + $0x18] sm:$0xff] %v554_v55   ;;  %v367_v60 = vadd.f32 %v527_v51, %v319_v58  ;;  %v371_v61 = vadd.f32 %v535_v53, %v323_v59 }
  0xc4   :  { %v383_v63 = vmax.f32 %v367_v60, 0.0  ;;  %v387_v0 = vmax.f32 %v371_v61, 0.0 }
  0xc6   :  { %v564_v1 = vpack.c.bf16 %v383_v63, %v382_v16  ;;  %v574_v2 = vpack.c.bf16 %v387_v0, %v386_v62 }
  0xc8   :  { %587 = vst [vmem:[%s789_s5 + $0x28] sm:$0xff] %v564_v1  }
  0xc9   :  { %589 = vst [vmem:[%s789_s5 + $0x38] sm:$0xff] %v574_v2  }

// kernel: feature_extractor_forward.47
= control target key start
LH: loop header
LB: loop body
LE: loop exit
PB: predicated region body
PF: predicated region fallthrough
CT: control target
= control target key end

     0   :  { %s2134_s15 = smov 0   ;;  %s2136_s16 = smov 0   ;;  %s2657_s0 = inlined_call_operand.vmem [shape: f32[3,2,80,128], index: 0, kind: input, shape index: {}]   ;;  %s2658_s1 = inlined_call_operand.vmem [shape: bf16[9,128,128], index: 1, kind: input, shape index: {}]   ;;  %s2659_s2 = inlined_call_operand.vmem [shape: f32[1,128], index: 2, kind: input, shape index: {}]   ;;  %s2660_s3 = inlined_call_operand.vmem [shape: f32[1,128], index: 3, kind: input, shape index: {}]   ;;  %s2661_s4 = inlined_call_operand.vmem [shape: bf16[2,64,128], index: 4, kind: output, shape index: {}]  }
   0x1   :  { %s2138_s17 = smov 0  }
   0x2 LB: > { %s1470_s18 = sadd.s32 4294967295, %s2107_s17   ;;  %s2151_s19 = sadd.s32 1, %s2107_s17   ;;  %s2107_s17 = sphi %s2138_s17, %s2664_s17   ;;  %s2103_s16 = sphi %s2136_s16, %s2663_s16   ;;  %s2099_s15 = sphi %s2134_s15, %s2662_s15  }
   0x3   : > { %s18_s20 = ssub.s32 %s2107_s17, %s2151_s19  ;;  %s21_s21 = sadd.s32 1, %s2103_s16 }
   0x4   : > { %p19_p0 = scmp.eq.s32.totalorder %s18_s20, 0  ;;  %p28_p1 = scmp.ne.s32.totalorder %s2103_s16, %s2099_s15 }
   0x5   : > { %p29_p2 = scmp.eq.s32.totalorder %s2107_s17, 0  ;;  %p1473_p4 = scmp.ge.s32.totalorder %s2107_s17, 2 }
   0x6   : > { %s2160_s22 = scalar_select %p19_p0, %s2103_s16, %s21_s21  }
   0x7   : > { %p30_p3 = por %p29_p2, %p28_p1  ;;  %152 = sbr.rel (%p1473_p4) target bundleno = 47 (0x2f), region = 28 }
   0xc   : > { %155 = sbr.rel (!%p30_p3) target bundleno = 47 (0x2f), region = 32  ;;  %s157_s23 = sand.u32 (%p30_p3), 1, %s2103_s16  }
   0xd   : > { %s2057_s24 = smul.u32 (%p30_p3), 80, %s2107_s17 }
   0xe   : > { %s2056_s25 = smul.u32 (%p30_p3), 240, %s157_s23 }
   0xf   : > { %s2168_s28 = scalar_lea.vmem (%p30_p3), %s2657_s0, %s2057_s24 }
  0x10   : > { %v249_v0 = vld [vmem:[%s2168_s28] sm:$0xff] (%p30_p3)  ;;  %v251_v1 = vld [vmem:[%s2168_s28 + $0x8] sm:$0xff] (%p30_p3)  ;;  %v253_v2 = vld [vmem:[%s2168_s28 + $0x10] sm:$0xff] (%p30_p3)  ;;  %s2173_s29 = scalar_lea.vmem (%p30_p3), [#allocation2], %s2056_s25 }
  0x11   : > { %250 = vst [vmem:[%s2173_s29] sm:$0xff] %v249_v0  ;;  %v255_v3 = vld [vmem:[%s2168_s28 + $0x18] sm:$0xff]  ;;  %v257_v4 = vld [vmem:[%s2168_s28 + $0x20] sm:$0xff]  ;;  %v259_v5 = vld [vmem:[%s2168_s28 + $0x28] sm:$0xff] }
  0x12   : > { %252 = vst [vmem:[%s2173_s29 + $0x8] sm:$0xff] %v251_v1  ;;  %v261_v6 = vld [vmem:[%s2168_s28 + $0x30] sm:$0xff]  ;;  %v263_v7 = vld [vmem:[%s2168_s28 + $0x38] sm:$0xff]  ;;  %v265_v8 = vld [vmem:[%s2168_s28 + $0x40] sm:$0xff] }
  0x13   : > { %254 = vst [vmem:[%s2173_s29 + $0x10] sm:$0xff] %v253_v2  ;;  %v267_v9 = vld [vmem:[%s2168_s28 + $0x48] sm:$0xff]  ;;  %v269_v10 = vld [vmem:[%s2168_s28 + $0xa0] sm:$0xff]  ;;  %v273_v12 = vld [vmem:[%s2168_s28 + $0xb0] sm:$0xff] }
  0x14   : > { %256 = vst [vmem:[%s2173_s29 + $0x18] sm:$0xff] %v255_v3  ;;  %v271_v11 = vld [vmem:[%s2168_s28 + $0xa8] sm:$0xff]  ;;  %v275_v13 = vld [vmem:[%s2168_s28 + $0xb8] sm:$0xff]  ;;  %v277_v14 = vld [vmem:[%s2168_s28 + $0xc0] sm:$0xff] }
  0x15   : > { %258 = vst [vmem:[%s2173_s29 + $0x20] sm:$0xff] %v257_v4  ;;  %v279_v15 = vld [vmem:[%s2168_s28 + $0xc8] sm:$0xff]  ;;  %v281_v16 = vld [vmem:[%s2168_s28 + $0xd0] sm:$0xff]  ;;  %v283_v17 = vld [vmem:[%s2168_s28 + $0xd8] sm:$0xff] }
  0x16   : > { %260 = vst [vmem:[%s2173_s29 + $0x28] sm:$0xff] %v259_v5  ;;  %v285_v18 = vld [vmem:[%s2168_s28 + $0xe0] sm:$0xff]  ;;  %v287_v19 = vld [vmem:[%s2168_s28 + $0xe8] sm:$0xff]  ;;  %v293_v22 = vld [vmem:[%s2168_s28 + $0x150] sm:$0xff] }
  0x17   : > { %262 = vst [vmem:[%s2173_s29 + $0x30] sm:$0xff] %v261_v6  ;;  %v289_v20 = vld [vmem:[%s2168_s28 + $0x140] sm:$0xff]  ;;  %v291_v21 = vld [vmem:[%s2168_s28 + $0x148] sm:$0xff]  ;;  %v295_v23 = vld [vmem:[%s2168_s28 + $0x158] sm:$0xff] }
  0x18   : > { %264 = vst [vmem:[%s2173_s29 + $0x38] sm:$0xff] %v263_v7  ;;  %v297_v24 = vld [vmem:[%s2168_s28 + $0x160] sm:$0xff]  ;;  %v299_v25 = vld [vmem:[%s2168_s28 + $0x168] sm:$0xff]  ;;  %v301_v26 = vld [vmem:[%s2168_s28 + $0x170] sm:$0xff] }
  0x19   : > { %266 = vst [vmem:[%s2173_s29 + $0x40] sm:$0xff] %v265_v8  ;;  %v303_v27 = vld [vmem:[%s2168_s28 + $0x178] sm:$0xff]  ;;  %v305_v28 = vld [vmem:[%s2168_s28 + $0x180] sm:$0xff]  ;;  %v307_v29 = vld [vmem:[%s2168_s28 + $0x188] sm:$0xff] }
  0x1a   : > { %268 = vst [vmem:[%s2173_s29 + $0x48] sm:$0xff] %v267_v9 }
  0x1b   : > { %270 = vst [vmem:[%s2173_s29 + $0x50] sm:$0xff] %v269_v10 }
  0x1c   : > { %272 = vst [vmem:[%s2173_s29 + $0x58] sm:$0xff] %v271_v11 }
  0x1d   : > { %274 = vst [vmem:[%s2173_s29 + $0x60] sm:$0xff] %v273_v12 }
  0x1e   : > { %276 = vst [vmem:[%s2173_s29 + $0x68] sm:$0xff] %v275_v13 }
  0x1f   : > { %278 = vst [vmem:[%s2173_s29 + $0x70] sm:$0xff] %v277_v14 }
  0x20   : > { %280 = vst [vmem:[%s2173_s29 + $0x78] sm:$0xff] %v279_v15 }
  0x21   : > { %282 = vst [vmem:[%s2173_s29 + $0x80] sm:$0xff] %v281_v16 }
  0x22   : > { %284 = vst [vmem:[%s2173_s29 + $0x88] sm:$0xff] %v283_v17 }
  0x23   : > { %286 = vst [vmem:[%s2173_s29 + $0x90] sm:$0xff] %v285_v18 }
  0x24   : > { %288 = vst [vmem:[%s2173_s29 + $0x98] sm:$0xff] %v287_v19 }
  0x25   : > { %290 = vst [vmem:[%s2173_s29 + $0xa0] sm:$0xff] %v289_v20 }
  0x26   : > { %292 = vst [vmem:[%s2173_s29 + $0xa8] sm:$0xff] %v291_v21 }
  0x27   : > { %294 = vst [vmem:[%s2173_s29 + $0xb0] sm:$0xff] %v293_v22 }
  0x28   : > { %296 = vst [vmem:[%s2173_s29 + $0xb8] sm:$0xff] %v295_v23 }
  0x29   : > { %298 = vst [vmem:[%s2173_s29 + $0xc0] sm:$0xff] %v297_v24 }
  0x2a   : > { %300 = vst [vmem:[%s2173_s29 + $0xc8] sm:$0xff] %v299_v25 }
  0x2b   : > { %302 = vst [vmem:[%s2173_s29 + $0xd0] sm:$0xff] %v301_v26 }
  0x2c   : > { %304 = vst [vmem:[%s2173_s29 + $0xd8] sm:$0xff] %v303_v27 }
  0x2d   : > { %306 = vst [vmem:[%s2173_s29 + $0xe0] sm:$0xff] %v305_v28 }
  0x2e   : > { %308 = vst [vmem:[%s2173_s29 + $0xe8] sm:$0xff] %v307_v29 }
  0x2f PF: > { %p1475_p5 = scmp.ge.s32.totalorder %s2107_s17, 1  ;;  %p313_p6 = scmp.lt.s32.totalorder %s2107_s17, 3 }
  0x31   : > { %p314_p7 = pnand %p1475_p5, %p313_p6 }
  0x32   : > { %s320_s12 = sand.u32 (!%p314_p7), 1, %s2099_s15   ;;  %p345_p8 = scmp.lt.s32.totalorder (!%p314_p7), %s1470_s18, 1 }
  0x33   : > { %317 = sbr.rel (%p314_p7) target bundleno = 383 (0x17f), region = 70 }
  0x34   : > { %s2058_s23 = smul.u32 (!%p314_p7), 240, %s320_s12 }
  0x36   : > { %s2298_s7 = scalar_lea.vmem (!%p314_p7), [#allocation2], %s2058_s23 }
  0x38   : > { %v1960_v30 = vld [vmem:[%s2658_s1 + $0x78] sm:$0xff]  ;;  %v1959_v32 = vld [vmem:[%s2658_s1 + $0x70] sm:$0xff]  ;;  %v1958_v36 = vld [vmem:[%s2658_s1 + $0x68] sm:$0xff]  ;;  %s2666_s18 = smov (!%p345_p8, %s1470_s18), 1 }
  0x39   : > { %v1968_v31 = vld [vmem:[%s2658_s1 + $0xb8] sm:$0xff]  ;;  %2040 = vmatpush.bf16.msra.mxu1 %v1960_v30  ;;  %456 = vmatpush.bf16.msra.mxu0 %v1960_v30  ;;  %v1967_v33 = vld [vmem:[%s2658_s1 + $0xb0] sm:$0xff]  ;;  %v1966_v37 = vld [vmem:[%s2658_s1 + $0xa8] sm:$0xff]  ;;  %s1944_s13 = sshll.u32 %s2666_s18, 5 }
  0x3a   : > { %640 = vmatpush.bf16.msra.mxu2 %v1968_v31  ;;  %v1976_v34 = vld [vmem:[%s2658_s1 + $0xf8] sm:$0xff]  ;;  %v1975_v35 = vld [vmem:[%s2658_s1 + $0xf0] sm:$0xff]  ;;  %v1974_v38 = vld [vmem:[%s2658_s1 + $0xe8] sm:$0xff]  ;;  %s2620_s20 = scalar_lea.vmem %s2661_s4, %s1944_s13 }
  0x3b   : > { %754 = vmatpush.bf16.msra.mxu3 %v1976_v34  ;;  %v1957_v39 = vld [vmem:[%s2658_s1 + $0x60] sm:$0xff]  ;;  %v1956_v42 = vld [vmem:[%s2658_s1 + $0x58] sm:$0xff]  ;;  %v1955_v45 = vld [vmem:[%s2658_s1 + $0x50] sm:$0xff] }
  0x3c   : > { %v1965_v40 = vld [vmem:[%s2658_s1 + $0xa0] sm:$0xff]  ;;  %v1964_v43 = vld [vmem:[%s2658_s1 + $0x98] sm:$0xff]  ;;  %v1963_v46 = vld [vmem:[%s2658_s1 + $0x90] sm:$0xff] }
  0x3d   : > { %2041 = vmatpush.bf16.msra.mxu1 %v1959_v32  ;;  %457 = vmatpush.bf16.msra.mxu0 %v1959_v32  ;;  %v1973_v41 = vld [vmem:[%s2658_s1 + $0xe0] sm:$0xff]  ;;  %v1972_v44 = vld [vmem:[%s2658_s1 + $0xd8] sm:$0xff]  ;;  %v1971_v47 = vld [vmem:[%s2658_s1 + $0xd0] sm:$0xff] }
  0x3e   : > { %641 = vmatpush.bf16.msra.mxu2 %v1967_v33  ;;  %v1954_v48 = vld [vmem:[%s2658_s1 + $0x48] sm:$0xff]  ;;  %v1953_v50 = vld [vmem:[%s2658_s1 + $0x40] sm:$0xff]  ;;  %v1952_v54 = vld [vmem:[%s2658_s1 + $0x38] sm:$0xff] }
  0x3f   : > { %755 = vmatpush.bf16.msra.mxu3 %v1975_v35  ;;  %v1962_v49 = vld [vmem:[%s2658_s1 + $0x88] sm:$0xff]  ;;  %v2301_v51 = vld [vmem:[%s2298_s7 + $0x70] sm:$0xff]  ;;  %v1566_v58 = vld [vmem:[%s2298_s7 + $0xa0] sm:$0xff] }
  0x40   : > { %v2304_v52 = vld [vmem:[%s2298_s7 + $0x78] sm:$0xff]  ;;  %v1478_v55 = vld [vmem:[%s2298_s7 + $0x50] sm:$0xff]  ;;  %v2321_v59 = vld [vmem:[%s2298_s7 + $0xa8] sm:$0xff] }
  0x41   : > { %2042 = vmatpush.bf16.msra.mxu1 %v1958_v36  ;;  %458 = vmatpush.bf16.msra.mxu0 %v1958_v36  ;;  %v1970_v53 = vld [vmem:[%s2658_s1 + $0xc8] sm:$0xff]  ;;  %v1961_v57 = vld [vmem:[%s2658_s1 + $0x80] sm:$0xff]  ;;  %v1984_v60 = vld [vmem:[%s2658_s1 + $0x138] sm:$0xff]  ;;  %v2331_v62 = vpack.c.bf16 %v2304_v52, %v2301_v51  ;;  %v571_v0 = vpack.c.bf16 %v2321_v59, %v1566_v58 }
  0x42   : > { %642 = vmatpush.bf16.msra.mxu2 %v1966_v37  ;;  %v2314_v56 = vld [vmem:[%s2298_s7 + $0x58] sm:$0xff]  ;;  %v1969_v1 = vld [vmem:[%s2658_s1 + $0xc0] sm:$0xff]  ;;  %v2339_v2 = vld [vmem:[%s2298_s7 + $0x8] sm:$0xff] }
  0x43   : > { %756 = vmatpush.bf16.msra.mxu3 %v1974_v38  ;;  %v2000_v61 = vld [vmem:[%s2658_s1 + $0x1b8] sm:$0xff]  ;;  %v387_v63 = vpack.c.bf16 %v2314_v56, %v1478_v55  ;;  %v2342_v3 = vld [vmem:[%s2298_s7 + $0x10] sm:$0xff]  ;;  %v1950_v9 = vld [vmem:[%s2658_s1 + $0x28] sm:$0xff] }
  0x44   : > { %v1951_v4 = vld [vmem:[%s2658_s1 + $0x30] sm:$0xff]  ;;  %v2008_v5 = vld [vmem:[%s2658_s1 + $0x1f8] sm:$0xff]  ;;  %v685_v8 = vpack.c.bf16 %v2342_v3, %v2339_v2  ;;  %v1982_v11 = vld [vmem:[%s2658_s1 + $0x128] sm:$0xff] }
  0x45   : > { %2043 = vmatpush.bf16.msra.mxu1 %v1957_v39  ;;  %459 = vmatpush.bf16.msra.mxu0 %v1957_v39  ;;  %v1983_v6 = vld [vmem:[%s2658_s1 + $0x130] sm:$0xff]  ;;  %v1998_v12 = vld [vmem:[%s2658_s1 + $0x1a8] sm:$0xff]  ;;  %v1949_v13 = vld [vmem:[%s2658_s1 + $0x20] sm:$0xff] }
  0x46   : > { %643 = vmatpush.bf16.msra.mxu2 %v1965_v40  ;;  %v1999_v7 = vld [vmem:[%s2658_s1 + $0x1b0] sm:$0xff]  ;;  %v2006_v14 = vld [vmem:[%s2658_s1 + $0x1e8] sm:$0xff]  ;;  %v1981_v15 = vld [vmem:[%s2658_s1 + $0x120] sm:$0xff] }
  0x47   : > { %757 = vmatpush.bf16.msra.mxu3 %v1973_v41  ;;  %v2007_v10 = vld [vmem:[%s2658_s1 + $0x1f0] sm:$0xff]  ;;  %v1997_v16 = vld [vmem:[%s2658_s1 + $0x1a0] sm:$0xff]  ;;  %v2387_v18 = vld [vmem:[%s2298_s7 + $0x88] sm:$0xff] }
  0x48   : > { %v2384_v17 = vld [vmem:[%s2298_s7 + $0x80] sm:$0xff]  ;;  %v2391_v20 = vld [vmem:[%s2298_s7 + $0x68] sm:$0xff]  ;;  %v2397_v22 = vld [vmem:[%s2298_s7 + $0xb0] sm:$0xff] }
  0x49   : > { %2044 = vmatpush.bf16.msra.mxu1 %v1956_v42  ;;  %460 = vmatpush.bf16.msra.mxu0 %v1956_v42  ;;  %v1480_v19 = vld [vmem:[%s2298_s7 + $0x60] sm:$0xff]  ;;  %v1948_v21 = vld [vmem:[%s2658_s1 + $0x18] sm:$0xff]  ;;  %v2407_v25 = vpack.c.bf16 %v2387_v18, %v2384_v17  ;;  %v1946_v35 = vld [vmem:[%s2658_s1 + $0x8] sm:$0xff] }
  0x4a   : > { %644 = vmatpush.bf16.msra.mxu2 %v1964_v43  ;;  %v2400_v23 = vld [vmem:[%s2298_s7 + $0xb8] sm:$0xff]  ;;  %v2410_v26 = vpack.c.bf16 %v2391_v20, %v1480_v19  ;;  %v2420_v29 = vld [vmem:[%s2298_s7 + $0x20] sm:$0xff] }
  0x4b   : > { %758 = vmatpush.bf16.msra.mxu3 %v1972_v44  ;;  %v1980_v24 = vld [vmem:[%s2658_s1 + $0x118] sm:$0xff]  ;;  %v2414_v27 = vpack.c.bf16 %v2400_v23, %v2397_v22  ;;  %v1947_v30 = vld [vmem:[%s2658_s1 + $0x10] sm:$0xff]  ;;  %v2005_v34 = vld [vmem:[%s2658_s1 + $0x1e0] sm:$0xff] }
  0x4c   : > { %v2417_v28 = vld [vmem:[%s2298_s7 + $0x18] sm:$0xff]  ;;  %v1979_v31 = vld [vmem:[%s2658_s1 + $0x110] sm:$0xff]  ;;  %v1945_v39 = vld [vmem:[%s2658_s1] sm:$0xff] }
  0x4d   : > { %2045 = vmatpush.bf16.msra.mxu1 %v1955_v45  ;;  %461 = vmatpush.bf16.msra.mxu0 %v1955_v45  ;;  %v686_v32 = vpack.c.bf16 %v2420_v29, %v2417_v28  ;;  %v1996_v33 = vld [vmem:[%s2658_s1 + $0x198] sm:$0xff]  ;;  %v1978_v36 = vld [vmem:[%s2658_s1 + $0x108] sm:$0xff]  ;;  %v1995_v37 = vld [vmem:[%s2658_s1 + $0x190] sm:$0xff] }
  0x4e   : > { %645 = vmatpush.bf16.msra.mxu2 %v1963_v46  ;;  %v2004_v38 = vld [vmem:[%s2658_s1 + $0x1d8] sm:$0xff]  ;;  %v1977_v41 = vld [vmem:[%s2658_s1 + $0x100] sm:$0xff]  ;;  %v1991_v46 = vld [vmem:[%s2658_s1 + $0x170] sm:$0xff] }
  0x4f   : > { %759 = vmatpush.bf16.msra.mxu3 %v1971_v47  ;;  %v1992_v40 = vld [vmem:[%s2658_s1 + $0x178] sm:$0xff]  ;;  %v350_v43 = vld [vmem:[%s2298_s7] sm:$0xff]  ;;  %v1990_v55 = vld [vmem:[%s2658_s1 + $0x168] sm:$0xff] }
  0x50   : > { %v2016_v42 = vld [vmem:[%s2658_s1 + $0x238] sm:$0xff]  ;;  %v2465_v44 = vld [vmem:[%s2298_s7 + $0xc0] sm:$0xff]  ;;  %v358_v47 = vpack.c.bf16 %v2339_v2, %v350_v43 }
  0x51   : > { %2046 = vmatpush.bf16.msra.mxu1 %v1954_v48  ;;  %462 = vmatpush.bf16.msra.mxu0 %v1954_v48  ;;  %v2468_v45 = vld [vmem:[%s2298_s7 + $0xc8] sm:$0xff]  ;;  %v799_v48 = vpack.c.bf16 %v1480_v19, %v2314_v56  ;;  %v2003_v58 = vld [vmem:[%s2658_s1 + $0x1d0] sm:$0xff] }
  0x52   : > { %646 = vmatpush.bf16.msra.mxu2 %v1962_v49  ;;  %v2477_v49 = vpack.c.bf16 %v2468_v45, %v2465_v44  ;;  %v1994_v56 = vld [vmem:[%s2658_s1 + $0x188] sm:$0xff]  ;;  %v1988_v2 = vld [vmem:[%s2658_s1 + $0x158] sm:$0xff] }
  0x53   : > { %760 = vmatpush.bf16.msra.mxu3 %v1970_v53  ;;  %v2481_v53 = vld [vmem:[%s2298_s7 + $0x30] sm:$0xff] }
  0x55   : > { %2047 = vmatpush.bf16.msra.mxu1 %v1953_v50  ;;  %463 = vmatpush.bf16.msra.mxu0 %v1953_v50  ;;  %v681_v50 = vld [vmem:[%s2298_s7 + $0x28] sm:$0xff] }
  0x56   : > { %647 = vmatpush.bf16.msra.mxu2 %v1961_v57  ;;  %v687_v57 = vpack.c.bf16 %v2481_v53, %v681_v50  ;;  %v360_v19 = vpack.c.bf16 %v681_v50, %v2420_v29 }
  0x57   : > { %761 = vmatpush.bf16.msra.mxu3 %v1969_v1  ;;  %v2013_v1 = vld [vmem:[%s2658_s1 + $0x220] sm:$0xff] }
  0x58   : > { %474 = vmatmul.bf16.vlgmr.msra.gmra.mxu1 %v2331_v62  ;;  %464 = vmatmul.bf16.vlgmr.msra.gmra.mxu0 %v387_v63  ;;  %v1989_v63 = vld [vmem:[%s2658_s1 + $0x160] sm:$0xff] }
  0x59   : > { %533 = vmatpush.bf16.msrb.mxu1 %v1952_v54  ;;  %868 = vmatpush.bf16.msrb.mxu0 %v1984_v60  ;;  %v2015_v54 = vld [vmem:[%s2658_s1 + $0x230] sm:$0xff]  ;;  %v2014_v60 = vld [vmem:[%s2658_s1 + $0x228] sm:$0xff] }
  0x5a   : > { %1096 = vmatpush.bf16.msrb.mxu2 %v2000_v61  ;;  %762 = vmatmul.bf16.vlgmr.msra.gmra.mxu3 %v685_v8  ;;  %v1993_v61 = vld [vmem:[%s2658_s1 + $0x180] sm:$0xff]  ;;  %v800_v8 = vpack.c.bf16 %v2301_v51, %v2391_v20  ;;  %v2012_v51 = vld [vmem:[%s2658_s1 + $0x218] sm:$0xff]  ;;  %v801_v20 = vpack.c.bf16 %v2384_v17, %v2304_v52  ;;  %v913_v17 = vpack.c.bf16 %v2397_v22, %v2321_v59 }
  0x5b   : > { %648 = vmatmul.bf16.vlgmr.msra.gmra.mxu2 %v571_v0  ;;  %1210 = vmatpush.bf16.msrb.mxu3 %v2008_v5  ;;  %v2002_v0 = vld [vmem:[%s2658_s1 + $0x1c8] sm:$0xff] }
  0x5c   : > { %v2519_v5 = vld [vmem:[%s2298_s7 + $0xd8] sm:$0xff]  ;;  %v1893_v59 = vld [vmem:[%s2298_s7 + $0xe8] sm:$0xff] }
  0x5d   : > { %534 = vmatpush.bf16.msrb.mxu1 %v1951_v4  ;;  %869 = vmatpush.bf16.msrb.mxu0 %v1983_v6  ;;  %v2516_v4 = vld [vmem:[%s2298_s7 + $0xd0] sm:$0xff] }
  0x5e   : > { %1097 = vmatpush.bf16.msrb.mxu2 %v1999_v7  ;;  %v1987_v6 = vld [vmem:[%s2658_s1 + $0x150] sm:$0xff]  ;;  %v359_v7 = vpack.c.bf16 %v2417_v28, %v2342_v3  ;;  %v2001_v3 = vld [vmem:[%s2658_s1 + $0x1c0] sm:$0xff]  ;;  %v915_v22 = vpack.c.bf16 %v2516_v4, %v2468_v45 }
  0x5f   : > { %1211 = vmatpush.bf16.msrb.mxu3 %v2007_v10  ;;  %v683_v10 = vld [vmem:[%s2298_s7 + $0x38] sm:$0xff] }
  0x60   : > { %v361_v28 = vpack.c.bf16 %v683_v10, %v2481_v53 }
  0x61   : > { %535 = vmatpush.bf16.msrb.mxu1 %v1950_v9  ;;  %870 = vmatpush.bf16.msrb.mxu0 %v1982_v11  ;;  %v574_v9 = vpack.c.bf16 %v2519_v5, %v2516_v4  ;;  %v684_v11 = vld [vmem:[%s2298_s7 + $0x40] sm:$0xff] }
  0x62   : > { %1098 = vmatpush.bf16.msrb.mxu2 %v1998_v12  ;;  %v688_v12 = vpack.c.bf16 %v684_v11, %v683_v10 }
  0x63   : > { %1212 = vmatpush.bf16.msrb.mxu3 %v2006_v14  ;;  %v1985_v14 = vld [vmem:[%s2658_s1 + $0x140] sm:$0xff] }
  0x65   : > { %536 = vmatpush.bf16.msrb.mxu1 %v1949_v13  ;;  %871 = vmatpush.bf16.msrb.mxu0 %v1981_v15  ;;  %v1986_v13 = vld [vmem:[%s2658_s1 + $0x148] sm:$0xff]  ;;  %v2011_v15 = vld [vmem:[%s2658_s1 + $0x210] sm:$0xff] }
  0x66   : > { %1099 = vmatpush.bf16.msrb.mxu2 %v1997_v16  ;;  %v2010_v16 = vld [vmem:[%s2658_s1 + $0x208] sm:$0xff] }
  0x67   : > { %1213 = vmatpush.bf16.msrb.mxu3 %v2005_v34 }
  0x68   : > { %479 = vmatmul.bf16.gmra.mxu1 %v2407_v25  ;;  %469 = vmatmul.bf16.gmra.mxu0 %v2410_v26 }
  0x69   : > { %537 = vmatpush.bf16.msrb.mxu1 %v1948_v21  ;;  %872 = vmatpush.bf16.msrb.mxu0 %v1980_v24  ;;  %v2009_v21 = vld [vmem:[%s2658_s1 + $0x200] sm:$0xff] }
  0x6a   : > { %1100 = vmatpush.bf16.msrb.mxu2 %v1996_v33  ;;  %767 = vmatmul.bf16.gmra.mxu3 %v686_v32  ;;  %v1677_v24 = vld [vmem:[%s2298_s7 + $0x90] sm:$0xff] }
  0x6b   : > { %653 = vmatmul.bf16.gmra.mxu2 %v2414_v27  ;;  %1214 = vmatpush.bf16.msrb.mxu3 %v2004_v38  ;;  %v802_v52 = vpack.c.bf16 %v1677_v24, %v2387_v18  ;;  %v914_v18 = vpack.c.bf16 %v2465_v44, %v2400_v23 }
  0x6d   : > { %538 = vmatpush.bf16.msrb.mxu1 %v1947_v30  ;;  %873 = vmatpush.bf16.msrb.mxu0 %v1979_v31  ;;  %v1837_v30 = vld [vmem:[%s2298_s7 + $0x98] sm:$0xff]  ;;  %v1892_v31 = vld [vmem:[%s2298_s7 + $0xe0] sm:$0xff] }
  0x6e   : > { %1101 = vmatpush.bf16.msrb.mxu2 %v1995_v37 }
  0x6f   : > { %1215 = vmatpush.bf16.msrb.mxu3 %v2003_v58 }
  0x71   : > { %539 = vmatpush.bf16.msrb.mxu1 %v1946_v35  ;;  %874 = vmatpush.bf16.msrb.mxu0 %v1978_v36  ;;  %v916_v36 = vpack.c.bf16 %v1892_v31, %v2519_v5 }
  0x72   : > { %1102 = vmatpush.bf16.msrb.mxu2 %v1994_v56 }
  0x73   : > { %1216 = vmatpush.bf16.msrb.mxu3 %v2002_v0 }
  0x75   : > { %540 = vmatpush.bf16.msrb.mxu1 %v1945_v39  ;;  %875 = vmatpush.bf16.msrb.mxu0 %v1977_v41 }
  0x76   : > { %1103 = vmatpush.bf16.msrb.mxu2 %v1993_v61 }
  0x77   : > { %1217 = vmatpush.bf16.msrb.mxu3 %v2001_v3 }
  0x78   : > { %541 = vmatmul.bf16.vlgmr.msrb.gmra.mxu1 %v358_v47  ;;  %876 = vmatmul.bf16.vlgmr.msrb.gmra.mxu0 %v799_v48 }
  0x79   : > { %982 = vmatpush.bf16.msra.mxu1 %v1992_v40  ;;  %1324 = vmatpush.bf16.msra.mxu0 %v2016_v42 }
  0x7a   : > { %772 = vmatmul.bf16.gmra.mxu3 %v687_v57  ;;  %2048 = vmatpush.bf16.msra.mxu2 %v2016_v42 }
  0x7b   : > { %658 = vmatmul.bf16.gmra.mxu2 %v2477_v49 }
  0x7d   : > { %983 = vmatpush.bf16.msra.mxu1 %v1991_v46  ;;  %1325 = vmatpush.bf16.msra.mxu0 %v2015_v54 }
  0x7e   : > { %2049 = vmatpush.bf16.msra.mxu2 %v2015_v54 }
  0x81   : > { %984 = vmatpush.bf16.msra.mxu1 %v1990_v55  ;;  %1326 = vmatpush.bf16.msra.mxu0 %v2014_v60 }
  0x82   : > { %2050 = vmatpush.bf16.msra.mxu2 %v2014_v60 }
  0x85   : > { %985 = vmatpush.bf16.msra.mxu1 %v1989_v63  ;;  %1327 = vmatpush.bf16.msra.mxu0 %v2013_v1 }
  0x86   : > { %2051 = vmatpush.bf16.msra.mxu2 %v2013_v1 }
  0x88   : > { %546 = vmatmul.bf16.gmra.mxu1 %v359_v7  ;;  %881 = vmatmul.bf16.gmra.mxu0 %v800_v8 }
  0x89   : > { %986 = vmatpush.bf16.msra.mxu1 %v1988_v2  ;;  %1328 = vmatpush.bf16.msra.mxu0 %v2012_v51 }
  0x8a   : > { %777 = vmatmul.bf16.gmra.mxu3 %v688_v12  ;;  %2052 = vmatpush.bf16.msra.mxu2 %v2012_v51 }
  0x8b   : > { %663 = vmatmul.bf16.gmra.mxu2 %v574_v9 }
  0x8d   : > { %987 = vmatpush.bf16.msra.mxu1 %v1987_v6  ;;  %1329 = vmatpush.bf16.msra.mxu0 %v2011_v15 }
  0x8e   : > { %2053 = vmatpush.bf16.msra.mxu2 %v2011_v15 }
  0x91   : > { %988 = vmatpush.bf16.msra.mxu1 %v1986_v13  ;;  %1330 = vmatpush.bf16.msra.mxu0 %v2010_v16 }
  0x92   : > { %2054 = vmatpush.bf16.msra.mxu2 %v2010_v16 }
  0x95   : > { %989 = vmatpush.bf16.msra.mxu1 %v1985_v14  ;;  %1331 = vmatpush.bf16.msra.mxu0 %v2009_v21 }
  0x96   : > { %2055 = vmatpush.bf16.msra.mxu2 %v2009_v21 }
  0x98   : > { %551 = vmatmul.bf16.gmra.mxu1 %v360_v19  ;;  %886 = vmatmul.bf16.gmra.mxu0 %v801_v20 }
  0x9a   : > { %1218 = vmatmul.bf16.vlgmr.msrb.gmra.mxu3 %v2410_v26  ;;  %v1026_v26 = vld [vmem:[%s2298_s7 + $0x48] sm:$0xff] }
  0x9b   : > { %1104 = vmatmul.bf16.vlgmr.msrb.gmra.mxu2 %v359_v7  ;;  %v1030_v29 = vpack.c.bf16 %v1026_v26, %v684_v11 }
  0xa8   : > { %556 = vmatmul.bf16.gmra.mxu1 %v361_v28  ;;  %891 = vmatmul.bf16.gmra.mxu0 %v802_v52 }
  0xaa   : > { %1223 = vmatmul.bf16.gmra.mxu3 %v2331_v62  ;;  %v1144_v62 = vpack.c.bf16 %v1837_v30, %v1677_v24 }
  0xab   : > { %1109 = vmatmul.bf16.gmra.mxu2 %v360_v19 }
  0xb8   : > { %990 = vmatmul.bf16.vlgmr.msra.gmra.mxu1 %v913_v17  ;;  %1332 = vmatmul.bf16.vlgmr.msra.gmra.mxu0 %v2414_v27 }
  0xba   : > { %1228 = vmatmul.bf16.gmra.mxu3 %v2407_v25  ;;  %v1258_v25 = vpack.c.bf16 %v1893_v59, %v1892_v31 }
  0xbb   : > { %1114 = vmatmul.bf16.gmra.mxu2 %v361_v28 }
  0xc8   : > { %995 = vmatmul.bf16.gmra.mxu1 %v914_v18  ;;  %1337 = vmatmul.bf16.gmra.mxu0 %v2477_v49 }
  0xca   : > { %1233 = vmatmul.bf16.gmra.mxu3 %v1144_v62 }
  0xcb   : > { %1119 = vmatmul.bf16.gmra.mxu2 %v1030_v29 }
  0xd5   : > { %v475_v27 = vpop.f32.mrf.mxu1  ;;  %v465_v32 = vpop.f32.mrf.mxu0 }
  0xd8   : > { %1000 = vmatmul.bf16.gmra.mxu1 %v915_v22  ;;  %1342 = vmatmul.bf16.gmra.mxu0 %v574_v9 }
  0xdb   : > { %1347 = vmatmul.bf16.vlgmr.msra.gmra.mxu2 %v1258_v25 }
  0xdd   : > { %v477_v33 = vpop.f32.mrf.mxu1  ;;  %v467_v34 = vpop.f32.mrf.mxu0 }
  0xde   : > { %v649_v23 = vpop.f32.mrf.mxu2  ;;  %v763_v35 = vpop.f32.mrf.mxu3 }
  0xe5   : > { %v480_v38 = vpop.f32.mrf.mxu1  ;;  %v470_v39 = vpop.f32.mrf.mxu0 }
  0xe6   : > { %v651_v37 = vpop.f32.mrf.mxu2  ;;  %v2575_v40 = vpop.f32.mrf.mxu3 }
  0xe8   : > { %1005 = vmatmul.bf16.gmra.mxu1 %v916_v36 }
  0xed   : > { %v482_v42 = vpop.f32.mrf.mxu1  ;;  %v472_v43 = vpop.f32.mrf.mxu0 }
  0xee   : > { %v654_v41 = vpop.f32.mrf.mxu2  ;;  %v768_v44 = vpop.f32.mrf.mxu3 }
  0xf5   : > { %v542_v46 = vpop.f32.mrf.mxu1  ;;  %v877_v47 = vpop.f32.mrf.mxu0 }
  0xf6   : > { %v656_v45 = vpop.f32.mrf.mxu2  ;;  %v543_v48 = vadd.f32 %v542_v46, %v465_v32  ;;  %v2577_v50 = vpop.f32.mrf.mxu3 }
  0xf8   : > { %v669_v49 = vadd.f32 %v649_v23, %v543_v48 }
  0xfa   : > { %v783_v53 = vadd.f32 %v763_v35, %v669_v49 }
  0xfc   : > { %v897_v54 = vadd.f32 %v877_v47, %v783_v53 }
  0xfd   : > { %v544_v56 = vpop.f32.mrf.mxu1  ;;  %v879_v57 = vpop.f32.mrf.mxu0 }
  0xfe   : > { %v659_v55 = vpop.f32.mrf.mxu2  ;;  %v545_v58 = vadd.f32 %v544_v56, %v467_v34  ;;  %v773_v61 = vpop.f32.mrf.mxu3  ;;  %v2609_v56 = vld [vmem:[%s2660_s3] ss:$0 sm:$0xff] }
 0x100   : > { %v670_v60 = vadd.f32 %v651_v37, %v545_v58 }
 0x105   : > { %v547_v0 = vpop.f32.mrf.mxu1  ;;  %v882_v1 = vpop.f32.mrf.mxu0 }
 0x106   : > { %v661_v63 = vpop.f32.mrf.mxu2  ;;  %v548_v2 = vadd.f32 %v547_v0, %v470_v39  ;;  %v2579_v8 = vpop.f32.mrf.mxu3 }
 0x108   : > { %v671_v4 = vadd.f32 %v654_v41, %v548_v2 }
 0x10a   : > { %v785_v5 = vadd.f32 %v768_v44, %v671_v4 }
 0x10c   : > { %v899_v6 = vadd.f32 %v882_v1, %v785_v5 }
 0x10d   : > { %v549_v9 = vpop.f32.mrf.mxu1  ;;  %v2581_v10 = vpop.f32.mrf.mxu0 }
 0x10e   : > { %v664_v7 = vpop.f32.mrf.mxu2  ;;  %v550_v11 = vadd.f32 %v549_v9, %v472_v43  ;;  %v778_v15 = vpop.f32.mrf.mxu3 }
 0x110   : > { %v672_v12 = vadd.f32 %v656_v45, %v550_v11 }
 0x112   : > { %v786_v2 = vadd.f32 %v2577_v50, %v672_v12 }
 0x115   : > { %v552_v3 = vpop.f32.mrf.mxu1  ;;  %v887_v51 = vpop.f32.mrf.mxu0 }
 0x116   : > { %v666_v13 = vpop.f32.mrf.mxu2  ;;  %v553_v14 = vadd.f32 %v552_v3, %v475_v27  ;;  %v2589_v26 = vpop.f32.mrf.mxu3 }
 0x118   : > { %v673_v16 = vadd.f32 %v659_v55, %v553_v14 }
 0x11a   : > { %v787_v19 = vadd.f32 %v773_v61, %v673_v16 }
 0x11c   : > { %v2583_v20 = vadd.f32 %v887_v51, %v787_v19  ;;  %v900_v51 = vadd.f32 %v2581_v10, %v786_v2 }
 0x11d   : > { %v554_v24 = vpop.f32.mrf.mxu1  ;;  %v2585_v28 = vpop.f32.mrf.mxu0 }
 0x11e   : > { %v1105_v21 = vpop.f32.mrf.mxu2  ;;  %v555_v52 = vadd.f32 %v554_v24, %v477_v33  ;;  %v1219_v22 = vpop.f32.mrf.mxu3 }
 0x120   : > { %v2587_v17 = vadd.f32 %v661_v63, %v555_v52 }
 0x125   : > { %v557_v29 = vpop.f32.mrf.mxu1  ;;  %v892_v30 = vpop.f32.mrf.mxu0 }
 0x126   : > { %v1107_v18 = vpop.f32.mrf.mxu2  ;;  %v558_v62 = vadd.f32 %v557_v29, %v480_v38  ;;  %v1221_v33 = vpop.f32.mrf.mxu3  ;;  %v784_v38 = vadd.f32 %v2575_v40, %v670_v60 }
 0x128   : > { %v675_v31 = vadd.f32 %v664_v7, %v558_v62  ;;  %v898_v45 = vadd.f32 %v879_v57, %v784_v38 }
 0x12a   : > { %v789_v59 = vadd.f32 %v778_v15, %v675_v31 }
 0x12c   : > { %v2591_v27 = vadd.f32 %v892_v30, %v789_v59  ;;  %v788_v59 = vadd.f32 %v2579_v8, %v2587_v17 }
 0x12d   : > { %v559_v25 = vpop.f32.mrf.mxu1  ;;  %v2593_v23 = vpop.f32.mrf.mxu0 }
 0x12e   : > { %v1110_v32 = vpop.f32.mrf.mxu2  ;;  %v560_v34 = vadd.f32 %v559_v25, %v482_v42  ;;  %v2601_v42 = vld [vmem:[%s2659_s2] ss:$0 sm:$0xff]  ;;  %v1224_v53 = vpop.f32.mrf.mxu3 }
 0x130   : > { %v2595_v35 = vadd.f32 %v666_v13, %v560_v34 }
 0x135   : > { %v991_v36 = vpop.f32.mrf.mxu1  ;;  %v1333_v37 = vpop.f32.mrf.mxu0 }
 0x136   : > { %v1011_v39 = vadd.f32 %v991_v36, %v897_v54  ;;  %v1112_v41 = vpop.f32.mrf.mxu2  ;;  %v1226_v7 = vpop.f32.mrf.mxu3  ;;  %v902_v36 = vadd.f32 %v2585_v28, %v788_v59 }
 0x138   : > { %v1125_v43 = vadd.f32 %v1105_v21, %v1011_v39 }
 0x13a   : > { %v1239_v44 = vadd.f32 %v1219_v22, %v1125_v43 }
 0x13c   : > { %v1353_v48 = vadd.f32 %v1333_v37, %v1239_v44 }
 0x13d   : > { %v993_v46 = vpop.f32.mrf.mxu1  ;;  %v1335_v47 = vpop.f32.mrf.mxu0 }
 0x13e   : > { %v1012_v49 = vadd.f32 %v993_v46, %v898_v45  ;;  %v1115_v54 = vpop.f32.mrf.mxu2  ;;  %v1365_v40 = vmul.f32 %v2601_v42, %v1353_v48  ;;  %v1229_v24 = vpop.f32.mrf.mxu3 }
 0x140   : > { %v1126_v55 = vadd.f32 %v1107_v18, %v1012_v49  ;;  %v1377_v63 = vadd.f32 %v2609_v56, %v1365_v40 }
 0x142   : > { %v1240_v57 = vadd.f32 %v1221_v33, %v1126_v55  ;;  %v1385_v9 = vmax.f32 %v1377_v63, 0.0  ;;  %v790_v55 = vadd.f32 %v2589_v26, %v2595_v35 }
 0x144   : > { %v1354_v58 = vadd.f32 %v1335_v47, %v1240_v57  ;;  %v904_v63 = vadd.f32 %v2593_v23, %v790_v55 }
 0x145   : > { %v996_v60 = vpop.f32.mrf.mxu1  ;;  %v1338_v61 = vpop.f32.mrf.mxu0 }
 0x146   : > { %v1366_v0 = vmul.f32 %v2601_v42, %v1354_v58  ;;  %v1013_v1 = vadd.f32 %v996_v60, %v899_v6  ;;  %v1117_v3 = vpop.f32.mrf.mxu2  ;;  %v1231_v39 = vpop.f32.mrf.mxu3 }
 0x148   : > { %v1378_v4 = vadd.f32 %v2609_v56, %v1366_v0  ;;  %v1127_v5 = vadd.f32 %v1110_v32, %v1013_v1 }
 0x14a   : > { %v1386_v11 = vmax.f32 %v1378_v4, 0.0  ;;  %v1241_v13 = vadd.f32 %v1224_v53, %v1127_v5 }
 0x14c   : > { %v2020_v6 = vpack.c.bf16 %v1386_v11, %v1385_v9  ;;  %v1355_v12 = vadd.f32 %v1338_v61, %v1241_v13 }
 0x14d   : > { %v998_v14 = vpop.f32.mrf.mxu1  ;;  %v1340_v50 = vpop.f32.mrf.mxu0 }
 0x14e   : > { %2021 = vst [vmem:[%s2620_s20] sm:$0xff] %v2020_v6   ;;  %v1014_v15 = vadd.f32 %v998_v14, %v900_v51  ;;  %v1367_v19 = vmul.f32 %v2601_v42, %v1355_v12  ;;  %v1120_v18 = vpop.f32.mrf.mxu2  ;;  %v1234_v53 = vpop.f32.mrf.mxu3 }
 0x150   : > { %v1128_v16 = vadd.f32 %v1112_v41, %v1014_v15  ;;  %v1379_v30 = vadd.f32 %v2609_v56, %v1367_v19 }
 0x152   : > { %v1242_v21 = vadd.f32 %v1226_v7, %v1128_v16  ;;  %v1387_v25 = vmax.f32 %v1379_v30, 0.0 }
 0x154   : > { %v1356_v52 = vadd.f32 %v1340_v50, %v1242_v21 }
 0x155   : > { %v1001_v29 = vpop.f32.mrf.mxu1  ;;  %v1343_v31 = vpop.f32.mrf.mxu0 }
 0x156   : > { %v1368_v62 = vmul.f32 %v2601_v42, %v1356_v52  ;;  %v1015_v10 = vadd.f32 %v1001_v29, %v2583_v20  ;;  %v1122_v44 = vpop.f32.mrf.mxu2  ;;  %v1236_v5 = vpop.f32.mrf.mxu3 }
 0x158   : > { %v1380_v22 = vadd.f32 %v2609_v56, %v1368_v62  ;;  %v1129_v32 = vadd.f32 %v1115_v54, %v1015_v10 }
 0x15a   : > { %v1388_v34 = vmax.f32 %v1380_v22, 0.0  ;;  %v1243_v33 = vadd.f32 %v1229_v24, %v1129_v32 }
 0x15c   : > { %v2025_v37 = vpack.c.bf16 %v1388_v34, %v1387_v25  ;;  %v1357_v38 = vadd.f32 %v1343_v31, %v1243_v33 }
 0x15d   : > { %v1003_v41 = vpop.f32.mrf.mxu1  ;;  %v1345_v45 = vpop.f32.mrf.mxu0 }
 0x15e   : > { %2037 = vst [vmem:[%s2620_s20 + $0x8] sm:$0xff] %v2025_v37   ;;  %v1016_v43 = vadd.f32 %v1003_v41, %v902_v36  ;;  %v1369_v46 = vmul.f32 %v2601_v42, %v1357_v38  ;;  %v1348_v57 = vpop.f32.mrf.mxu2 }
 0x160   : > { %v1130_v20 = vadd.f32 %v1117_v3, %v1016_v43  ;;  %v1381_v48 = vadd.f32 %v2609_v56, %v1369_v46 }
 0x162   : > { %v1244_v8 = vadd.f32 %v1231_v39, %v1130_v20  ;;  %v1389_v58 = vmax.f32 %v1381_v48, 0.0 }
 0x164   : > { %v1358_v17 = vadd.f32 %v1345_v45, %v1244_v8 }
 0x165   : > { %v1006_v47 = vpop.f32.mrf.mxu1 }
 0x166   : > { %v1370_v49 = vmul.f32 %v2601_v42, %v1358_v17  ;;  %v1017_v28 = vadd.f32 %v1006_v47, %v2591_v27  ;;  %v1350_v35 = vpop.f32.mrf.mxu2 }
 0x168   : > { %v1382_v54 = vadd.f32 %v2609_v56, %v1370_v49  ;;  %v1131_v40 = vadd.f32 %v1120_v18, %v1017_v28 }
 0x16a   : > { %v1390_v60 = vmax.f32 %v1382_v54, 0.0  ;;  %v1245_v61 = vadd.f32 %v1234_v53, %v1131_v40 }
 0x16c   : > { %v2030_v0 = vpack.c.bf16 %v1390_v60, %v1389_v58  ;;  %v1359_v2 = vadd.f32 %v1348_v57, %v1245_v61 }
 0x16d   : > { %v1008_v1 = vpop.f32.mrf.mxu1 }
 0x16e   : > { %2038 = vst [vmem:[%s2620_s20 + $0x10] sm:$0xff] %v2030_v0   ;;  %v1018_v4 = vadd.f32 %v1008_v1, %v904_v63  ;;  %v1371_v7 = vmul.f32 %v2601_v42, %v1359_v2 }
 0x170   : > { %v1132_v27 = vadd.f32 %v1122_v44, %v1018_v4  ;;  %v1383_v11 = vadd.f32 %v2609_v56, %v1371_v7 }
 0x172   : > { %v1246_v26 = vadd.f32 %v1236_v5, %v1132_v27  ;;  %v1391_v23 = vmax.f32 %v1383_v11, 0.0 }
 0x174   : > { %v1360_v9 = vadd.f32 %v1350_v35, %v1246_v26 }
 0x176   : > { %v1372_v13 = vmul.f32 %v2601_v42, %v1360_v9 }
 0x178   : > { %v1384_v3 = vadd.f32 %v2609_v56, %v1372_v13 }
 0x17a   : > { %v1392_v51 = vmax.f32 %v1384_v3, 0.0 }
 0x17c   : > { %v2035_v6 = vpack.c.bf16 %v1392_v51, %v1391_v23 }
 0x17e   : > { %2039 = vst [vmem:[%s2620_s20 + $0x18] sm:$0xff] %v2035_v6  }
 0x17f PF: > { %p11_p9 = scmp.ge.s32.totalorder %s2151_s19, 4   ;;  %s2662_s15 = smov %s2103_s16 }
 0x180   : > { %s2663_s16 = smov %s2160_s22  ;;  %s2664_s17 = smov %s2151_s19 }
 0x181   :  { %13 = sbr.rel (!%p11_p9) target bundleno = 2 (0x2), region = 119 }

// kernel: feature_extractor_forward.58
= control target key start
LH: loop header
LB: loop body
LE: loop exit
PB: predicated region body
PF: predicated region fallthrough
CT: control target
= control target key end

     0   :  { %s309_s1 = inlined_call_operand.vmem [shape: bf16[128,128], index: 1, kind: input, shape index: {}]   ;;  %s310_s2 = inlined_call_operand.vmem [shape: f32[1,128], index: 2, kind: input, shape index: {}]   ;;  %s311_s3 = inlined_call_operand.vmem [shape: f32[1,128], index: 3, kind: input, shape index: {}]   ;;  %s312_s0 = inlined_call_operand.vmem [shape: bf16[32,128], index: 0, kind: input, shape index: {}]   ;;  %s313_s4 = inlined_call_operand.vmem [shape: bf16[32,128], index: 4, kind: output, shape index: {}]  }
   0x1   :  { %v220_v0 = vld [vmem:[%s309_s1 + $0x38] sm:$0xff]  ;;  %v219_v1 = vld [vmem:[%s309_s1 + $0x30] sm:$0xff]  ;;  %v218_v2 = vld [vmem:[%s309_s1 + $0x28] sm:$0xff] }
   0x2   :  { %109 = vmatpush.bf16.msra.mxu0 %v220_v0  ;;  %232 = vmatpush.bf16.msra.mxu1 %v220_v0  ;;  %v217_v3 = vld [vmem:[%s309_s1 + $0x20] sm:$0xff]  ;;  %v216_v4 = vld [vmem:[%s309_s1 + $0x18] sm:$0xff]  ;;  %v215_v5 = vld [vmem:[%s309_s1 + $0x10] sm:$0xff] }
   0x3   :  { %v214_v6 = vld [vmem:[%s309_s1 + $0x8] sm:$0xff]  ;;  %v213_v7 = vld [vmem:[%s309_s1] sm:$0xff] }
   0x4   :  { %v211_v8 = vld [vmem:[%s312_s0] sm:$0xff]  ;;  %v212_v9 = vld [vmem:[%s312_s0 + $0x8] sm:$0xff] }
   0x5   :  { %v240_v12 = vld [vmem:[%s310_s2] ss:$0 sm:$0xff] }
   0x6   :  { %110 = vmatpush.bf16.msra.mxu0 %v219_v1  ;;  %233 = vmatpush.bf16.msra.mxu1 %v219_v1  ;;  %v241_v14 = vld [vmem:[%s311_s3] ss:$0 sm:$0xff] }
   0xa   :  { %111 = vmatpush.bf16.msra.mxu0 %v218_v2  ;;  %234 = vmatpush.bf16.msra.mxu1 %v218_v2 }
   0xe   :  { %112 = vmatpush.bf16.msra.mxu0 %v217_v3  ;;  %235 = vmatpush.bf16.msra.mxu1 %v217_v3 }
  0x12   :  { %113 = vmatpush.bf16.msra.mxu0 %v216_v4  ;;  %236 = vmatpush.bf16.msra.mxu1 %v216_v4 }
  0x16   :  { %114 = vmatpush.bf16.msra.mxu0 %v215_v5  ;;  %237 = vmatpush.bf16.msra.mxu1 %v215_v5 }
  0x1a   :  { %115 = vmatpush.bf16.msra.mxu0 %v214_v6  ;;  %238 = vmatpush.bf16.msra.mxu1 %v214_v6 }
  0x1e   :  { %116 = vmatpush.bf16.msra.mxu0 %v213_v7  ;;  %239 = vmatpush.bf16.msra.mxu1 %v213_v7 }
  0x21   :  { %117 = vmatmul.bf16.vlgmr.msra.gmra.mxu0 %v211_v8  ;;  %122 = vmatmul.bf16.vlgmr.msra.gmra.mxu1 %v212_v9 }
  0x9e   :  { %v118_v10 = vpop.f32.mrf.mxu0  ;;  %v123_v11 = vpop.f32.mrf.mxu1 }
  0x9f   :  { %v147_v13 = vmul.f32 %v240_v12, %v118_v10  ;;  %v149_v15 = vmul.f32 %v240_v12, %v123_v11 }
  0xa1   :  { %v155_v20 = vadd.f32 %v241_v14, %v147_v13  ;;  %v157_v21 = vadd.f32 %v241_v14, %v149_v15 }
  0xa6   :  { %v120_v16 = vpop.f32.mrf.mxu0  ;;  %v125_v17 = vpop.f32.mrf.mxu1 }
  0xa7   :  { %v148_v18 = vmul.f32 %v240_v12, %v120_v16  ;;  %v150_v19 = vmul.f32 %v240_v12, %v125_v17 }
  0xa9   :  { %v156_v22 = vadd.f32 %v241_v14, %v148_v18  ;;  %v158_v23 = vadd.f32 %v241_v14, %v150_v19 }
  0xab   :  { %v224_v24 = vpack.c.bf16 %v156_v22, %v155_v20  ;;  %v229_v25 = vpack.c.bf16 %v158_v23, %v157_v21 }
  0xad   :  { %225 = vst [vmem:[%s313_s4] sm:$0xff] %v224_v24  }
  0xae   :  { %231 = vst [vmem:[%s313_s4 + $0x8] sm:$0xff] %v229_v25  }

// kernel: feature_extractor_forward.57
= control target key start
LH: loop header
LB: loop body
LE: loop exit
PB: predicated region body
PF: predicated region fallthrough
CT: control target
= control target key end

     0   :  { %s724_s15 = smov 0   ;;  %s726_s16 = smov 0   ;;  %s820_s0 = inlined_call_operand.vmem [shape: bf16[32,1152], index: 0, kind: input, shape index: {}]   ;;  %s821_s1 = inlined_call_operand.vmem [shape: bf16[1152,128], index: 1, kind: input, shape index: {}]   ;;  %s822_s2 = inlined_call_operand.vmem [shape: f32[1,128], index: 2, kind: input, shape index: {}]   ;;  %s823_s3 = inlined_call_operand.vmem [shape: f32[1,128], index: 3, kind: input, shape index: {}]   ;;  %s824_s4 = inlined_call_operand.vmem [shape: bf16[32,128], index: 4, kind: output, shape index: {}]  }
   0x1   :  { %s728_s17 = smov 0   ;;  %s730_s18 = smov 0  }
   0x2   :  { %s732_s19 = smov 0  }
   0x3 LB: > { %s23_s20 = sadd.s32 1, %s692_s18  ;;  %p42_p1 = scmp.ne.s32.totalorder %s684_s16, %s680_s15  ;;  %s696_s19 = sphi %s732_s19, %s14_s19   ;;  %s692_s18 = sphi %s730_s18, %s828_s18   ;;  %s688_s17 = sphi %s728_s17, %s827_s17   ;;  %s684_s16 = sphi %s726_s16, %s826_s16   ;;  %s680_s15 = sphi %s724_s15, %s825_s15  }
   0x4   : > { %p24_p0 = scmp.ge.s32.totalorder %s23_s20, 9  ;;  %p43_p2 = scmp.eq.s32.totalorder %s696_s19, 0 }
   0x5   : > { %s35_s22 = sadd.s32 1, %s684_s16  ;;  %p533_p5 = scmp.ge.s32.totalorder %s696_s19, 9 }
   0x6   : > { %s830_s20 = smov (%p24_p0, %s23_s20), 0  ;;  %p44_p3 = por %p43_p2, %p42_p1 }
   0x7   : > { %s31_s21 = ssub.s32 %s692_s18, %s830_s20  ;;  %168 = sbr.rel (%p533_p5) target bundleno = 20 (0x14), region = 24 }
   0x8   : > { %p33_p4 = scmp.eq.s32.totalorder %s31_s21, 0 }
   0xa   : > { %s759_s23 = scalar_select %p33_p4, %s684_s16, %s35_s22  }
   0xc   : > { %171 = sbr.rel (!%p44_p3) target bundleno = 20 (0x14), region = 28  ;;  %s173_s24 = sand.u32 (%p44_p3), 1, %s684_s16  }
   0xd   : > { %s535_s25 = sshll.u32 (%p44_p3), %s692_s18, 2  ;;  %s534_s26 = sshll.u32 (%p44_p3), %s173_s24, 4 }
   0xe   : > { %s180_s29 = scalar_lea.vmem (%p44_p3), %s820_s0, %s535_s25  ;;  %s175_s30 = scalar_lea.vmem (%p44_p3), [#allocation3], %s534_s26 }
   0xf   : > { %v197_v0 = vld [vmem:[%s180_s29] sm:$0xf] (%p44_p3)  ;;  %v199_v1 = vld [vmem:[%s180_s29 + $0x24] sm:$0xf] (%p44_p3)  ;;  %v201_v2 = vld [vmem:[%s180_s29 + $0x48] sm:$0xf] (%p44_p3) }
  0x10   : > { %198 = vst [vmem:[%s175_s30] sm:$0xf] (%p44_p3), %v197_v0  ;;  %v203_v3 = vld [vmem:[%s180_s29 + $0x6c] sm:$0xf] (%p44_p3) }
  0x11   : > { %200 = vst [vmem:[%s175_s30 + $0x4] sm:$0xf] %v199_v1 }
  0x12   : > { %202 = vst [vmem:[%s175_s30 + $0x8] sm:$0xf] %v201_v2 }
  0x13   : > { %204 = vst [vmem:[%s175_s30 + $0xc] sm:$0xf] %v203_v3 }
  0x14 PF: > { %p536_p6 = scmp.ge.s32.totalorder %s696_s19, 1  ;;  %p244_p7 = scmp.lt.s32.totalorder %s696_s19, 10 }
  0x16   : > { %p245_p8 = pnand %p536_p6, %p244_p7 }
  0x17   : > { %s251_s5 = sand.u32 (!%p245_p8), 1, %s680_s15   ;;  %s538_s6 = sshll.u32 (!%p245_p8), %s688_s17, 4 }
  0x18   : > { %248 = sbr.rel (%p245_p8) target bundleno = 225 (0xe1), region = 73  ;;  %s771_s7 = sshll.u32 (!%p245_p8), %s251_s5, 4 }
  0x19   : > { %p283_p9 = scmp.lt.s32.totalorder (!%p245_p8), %s538_s6, 143  ;;  %s253_s12 = scalar_lea.vmem (!%p245_p8), [#allocation3], %s771_s7 }
  0x1a   : > { %p540_p10 = scmp.ne.s32.totalorder (!%p245_p8), %s688_s17, 0 }
  0x1d   : > { %s832_s6 = smov (!%p283_p9, %s538_s6), 143  ;;  %297 = sbr.rel (%p540_p10) target bundleno = 39 (0x27), region = 81 }
  0x1e   : > { %s539_s8 = sshll.u32 %s832_s6, 2 }
  0x1f   : > { %s776_s11 = scalar_lea.vmem %s821_s1, %s539_s8 }
  0x22   : > { %v698_v4 = vmov 0.0  }
  0x23   : > { %298 = vst [vmem:[#allocation2 + $0x10] sm:$0xff] %v698_v4 }
  0x24   : > { %299 = vst [vmem:[#allocation2] sm:$0xff] %v698_v4 }
  0x25   : > { %300 = vst [vmem:[#allocation2 + $0x18] sm:$0xff] %v698_v4 }
  0x26   : > { %301 = vst [vmem:[#allocation2 + $0x8] sm:$0xff] %v698_v4 }
  0x27 PF: > { %v595_v5 = vld [vmem:[%s776_s11 + $0x38] sm:$0xff]  ;;  %v594_v6 = vld [vmem:[%s776_s11 + $0x30] sm:$0xff]  ;;  %v593_v7 = vld [vmem:[%s776_s11 + $0x28] sm:$0xff]  ;;  %p581_p11 = scmp.ne.s32.totalorder %s688_s17, 8 }
  0x28   : > { %386 = vmatpush.bf16.msra.mxu0 %v595_v5  ;;  %607 = vmatpush.bf16.msra.mxu1 %v595_v5  ;;  %v592_v8 = vld [vmem:[%s776_s11 + $0x20] sm:$0xff]  ;;  %v591_v9 = vld [vmem:[%s776_s11 + $0x18] sm:$0xff]  ;;  %v590_v10 = vld [vmem:[%s776_s11 + $0x10] sm:$0xff] }
  0x29   : > { %v589_v11 = vld [vmem:[%s776_s11 + $0x8] sm:$0xff]  ;;  %v588_v12 = vld [vmem:[%s776_s11] sm:$0xff] }
  0x2a   : > { %v586_v13 = vld [vmem:[%s253_s12] sm:$0xff]  ;;  %v587_v14 = vld [vmem:[%s253_s12 + $0x8] sm:$0xff] }
  0x2b   : > { %v302_v15 = vld [vmem:[#allocation2 + $0x10] sm:$0xff]  ;;  %v303_v21 = vld [vmem:[#allocation2] sm:$0xff] }
  0x2c   : > { %387 = vmatpush.bf16.msra.mxu0 %v594_v6  ;;  %608 = vmatpush.bf16.msra.mxu1 %v594_v6  ;;  %v304_v16 = vld [vmem:[#allocation2 + $0x18] sm:$0xff] }
  0x2d   : > { %v305_v22 = vld [vmem:[#allocation2 + $0x8] sm:$0xff] }
  0x30   : > { %388 = vmatpush.bf16.msra.mxu0 %v593_v7  ;;  %609 = vmatpush.bf16.msra.mxu1 %v593_v7 }
  0x34   : > { %389 = vmatpush.bf16.msra.mxu0 %v592_v8  ;;  %610 = vmatpush.bf16.msra.mxu1 %v592_v8 }
  0x38   : > { %390 = vmatpush.bf16.msra.mxu0 %v591_v9  ;;  %611 = vmatpush.bf16.msra.mxu1 %v591_v9 }
  0x3c   : > { %391 = vmatpush.bf16.msra.mxu0 %v590_v10  ;;  %612 = vmatpush.bf16.msra.mxu1 %v590_v10 }
  0x40   : > { %392 = vmatpush.bf16.msra.mxu0 %v589_v11  ;;  %613 = vmatpush.bf16.msra.mxu1 %v589_v11 }
  0x44   : > { %393 = vmatpush.bf16.msra.mxu0 %v588_v12  ;;  %614 = vmatpush.bf16.msra.mxu1 %v588_v12 }
  0x47   : > { %394 = vmatmul.bf16.vlgmr.msra.gmra.mxu0 %v586_v13  ;;  %399 = vmatmul.bf16.vlgmr.msra.gmra.mxu1 %v587_v14 }
  0xc4   : > { %v395_v17 = vpop.f32.mrf.mxu0  ;;  %v400_v18 = vpop.f32.mrf.mxu1 }
  0xc5   : > { %v405_v19 = vadd.f32 %v395_v17, %v302_v15  ;;  %v407_v20 = vadd.f32 %v400_v18, %v304_v16 }
  0xc7   : > { %409 = vst [vmem:[#allocation2 + $0x10] sm:$0xff] %v405_v19 }
  0xc8   : > { %411 = vst [vmem:[#allocation2 + $0x18] sm:$0xff] %v407_v20 }
  0xcc   : > { %v397_v23 = vpop.f32.mrf.mxu0  ;;  %v402_v24 = vpop.f32.mrf.mxu1  ;;  %416 = sbr.rel (%p581_p11) target bundleno = 225 (0xe1), region = 85 }
  0xcd   : > { %v406_v25 = vadd.f32 %v397_v23, %v303_v21  ;;  %v408_v26 = vadd.f32 %v402_v24, %v305_v22 }
  0xcf   : > { %410 = vst [vmem:[#allocation2] sm:$0xff] %v406_v25 }
  0xd0   : > { %412 = vst [vmem:[#allocation2 + $0x8] sm:$0xff] %v408_v26 }
  0xd1   : > { %v417_v27 = vld [vmem:[#allocation2 + $0x10] sm:$0xff]  ;;  %v656_v29 = vld [vmem:[%s822_s2] ss:$0 sm:$0xff]  ;;  %v419_v31 = vld [vmem:[#allocation2 + $0x18] sm:$0xff] }
  0xd2   : > { %v657_v30 = vld [vmem:[%s823_s3] ss:$0 sm:$0xff]  ;;  %v425_v33 = vmul.f32 %v656_v29, %v417_v27  ;;  %v427_v35 = vmul.f32 %v656_v29, %v419_v31 }
  0xd4   : > { %v433_v37 = vadd.f32 %v657_v30, %v425_v33  ;;  %v435_v39 = vadd.f32 %v657_v30, %v427_v35 }
  0xd6   : > { %v418_v28 = vld [vmem:[#allocation2] sm:$0xff]  ;;  %v437_v41 = vmax.f32 %v433_v37, 0.0  ;;  %v439_v43 = vmax.f32 %v435_v39, 0.0 }
  0xd7   : > { %v420_v32 = vld [vmem:[#allocation2 + $0x8] sm:$0xff]  ;;  %v426_v34 = vmul.f32 %v656_v29, %v418_v28 }
  0xd8   : > { %v428_v36 = vmul.f32 %v656_v29, %v420_v32 }
  0xd9   : > { %v434_v38 = vadd.f32 %v657_v30, %v426_v34 }
  0xda   : > { %v436_v40 = vadd.f32 %v657_v30, %v428_v36 }
  0xdb   : > { %v438_v42 = vmax.f32 %v434_v38, 0.0 }
  0xdc   : > { %v440_v44 = vmax.f32 %v436_v40, 0.0 }
  0xdd   : > { %v599_v45 = vpack.c.bf16 %v438_v42, %v437_v41 }
  0xde   : > { %v604_v46 = vpack.c.bf16 %v440_v44, %v439_v43 }
  0xdf   : > { %600 = vst [vmem:[%s824_s4] sm:$0xff] %v599_v45  }
  0xe0   : > { %606 = vst [vmem:[%s824_s4 + $0x8] sm:$0xff] %v604_v46  }
  0xe1 PF: > { %s14_s19 = sadd.s32 1, %s696_s19   ;;  %s825_s15 = smov %s684_s16 }
  0xe2   : > { %p11_p12 = scmp.ge.s32.totalorder %s14_s19, 11   ;;  %s826_s16 = smov %s759_s23 }
  0xe3   : > { %s827_s17 = smov %s692_s18  ;;  %s828_s18 = smov %s830_s20 }
  0xe4   :  { %13 = sbr.rel (!%p11_p12) target bundleno = 3 (0x3), region = 123 }

// kernel: feature_extractor_forward.59
= control target key start
LH: loop header
LB: loop body
LE: loop exit
PB: predicated region body
PF: predicated region fallthrough
CT: control target
= control target key end

     0   :  { %s348_s1 = inlined_call_operand.vmem [shape: bf16[128,128], index: 1, kind: input, shape index: {}]   ;;  %s349_s2 = inlined_call_operand.vmem [shape: f32[1,128], index: 2, kind: input, shape index: {}]   ;;  %s350_s3 = inlined_call_operand.vmem [shape: f32[1,128], index: 3, kind: input, shape index: {}]   ;;  %s351_s0 = inlined_call_operand.vmem [shape: bf16[32,128], index: 0, kind: input, shape index: {}]   ;;  %s352_s4 = inlined_call_operand.vmem [shape: bf16[32,128], index: 4, kind: input, shape index: {}]   ;;  %s353_s5 = inlined_call_operand.vmem [shape: bf16[32,128], index: 5, kind: output, shape index: {}]  }
   0x1   :  { %v239_v0 = vld [vmem:[%s348_s1 + $0x38] sm:$0xff]  ;;  %v238_v1 = vld [vmem:[%s348_s1 + $0x30] sm:$0xff]  ;;  %v237_v2 = vld [vmem:[%s348_s1 + $0x28] sm:$0xff] }
   0x2   :  { %112 = vmatpush.bf16.msra.mxu0 %v239_v0  ;;  %260 = vmatpush.bf16.msra.mxu1 %v239_v0  ;;  %v236_v3 = vld [vmem:[%s348_s1 + $0x20] sm:$0xff]  ;;  %v235_v4 = vld [vmem:[%s348_s1 + $0x18] sm:$0xff]  ;;  %v234_v5 = vld [vmem:[%s348_s1 + $0x10] sm:$0xff] }
   0x3   :  { %v233_v6 = vld [vmem:[%s348_s1 + $0x8] sm:$0xff]  ;;  %v232_v7 = vld [vmem:[%s348_s1] sm:$0xff] }
   0x4   :  { %v230_v8 = vld [vmem:[%s351_s0] sm:$0xff]  ;;  %v231_v9 = vld [vmem:[%s351_s0 + $0x8] sm:$0xff] }
   0x5   :  { %v268_v10 = vld [vmem:[%s349_s2] ss:$0 sm:$0xff]  ;;  %v258_v17 = vld [vmem:[%s352_s4 + $0x8] sm:$0xff]  }
   0x6   :  { %113 = vmatpush.bf16.msra.mxu0 %v238_v1  ;;  %261 = vmatpush.bf16.msra.mxu1 %v238_v1  ;;  %v269_v14 = vld [vmem:[%s350_s3] ss:$0 sm:$0xff]  ;;  %v246_v21 = vunpack.c.l.bf16 %v258_v17  ;;  %v247_v27 = vunpack.c.h.bf16 %v258_v17 }
   0x7   :  { %v241_v16 = vld [vmem:[%s352_s4] sm:$0xff]  }
   0x8   :  { %v242_v19 = vunpack.c.l.bf16 %v241_v16  ;;  %v243_v25 = vunpack.c.h.bf16 %v241_v16 }
   0xa   :  { %114 = vmatpush.bf16.msra.mxu0 %v237_v2  ;;  %262 = vmatpush.bf16.msra.mxu1 %v237_v2 }
   0xe   :  { %115 = vmatpush.bf16.msra.mxu0 %v236_v3  ;;  %263 = vmatpush.bf16.msra.mxu1 %v236_v3 }
  0x12   :  { %116 = vmatpush.bf16.msra.mxu0 %v235_v4  ;;  %264 = vmatpush.bf16.msra.mxu1 %v235_v4 }
  0x16   :  { %117 = vmatpush.bf16.msra.mxu0 %v234_v5  ;;  %265 = vmatpush.bf16.msra.mxu1 %v234_v5 }
  0x1a   :  { %118 = vmatpush.bf16.msra.mxu0 %v233_v6  ;;  %266 = vmatpush.bf16.msra.mxu1 %v233_v6 }
  0x1e   :  { %119 = vmatpush.bf16.msra.mxu0 %v232_v7  ;;  %267 = vmatpush.bf16.msra.mxu1 %v232_v7 }
  0x21   :  { %120 = vmatmul.bf16.vlgmr.msra.gmra.mxu0 %v230_v8  ;;  %125 = vmatmul.bf16.vlgmr.msra.gmra.mxu1 %v231_v9 }
  0x9e   :  { %v121_v11 = vpop.f32.mrf.mxu0  ;;  %v126_v12 = vpop.f32.mrf.mxu1 }
  0x9f   :  { %v150_v13 = vmul.f32 %v268_v10, %v121_v11  ;;  %v152_v15 = vmul.f32 %v268_v10, %v126_v12 }
  0xa1   :  { %v158_v18 = vadd.f32 %v269_v14, %v150_v13  ;;  %v160_v20 = vadd.f32 %v269_v14, %v152_v15 }
  0xa3   :  { %v170_v28 = vadd.f32 %v242_v19, %v158_v18  ;;  %v172_v29 = vadd.f32 %v246_v21, %v160_v20 }
  0xa5   :  { %v174_v34 = vmax.f32 %v170_v28, 0.0  ;;  %v176_v35 = vmax.f32 %v172_v29, 0.0 }
  0xa6   :  { %v123_v22 = vpop.f32.mrf.mxu0  ;;  %v128_v23 = vpop.f32.mrf.mxu1 }
  0xa7   :  { %v151_v24 = vmul.f32 %v268_v10, %v123_v22  ;;  %v153_v26 = vmul.f32 %v268_v10, %v128_v23 }
  0xa9   :  { %v159_v30 = vadd.f32 %v269_v14, %v151_v24  ;;  %v161_v31 = vadd.f32 %v269_v14, %v153_v26 }
  0xab   :  { %v171_v32 = vadd.f32 %v243_v25, %v159_v30  ;;  %v173_v33 = vadd.f32 %v247_v27, %v161_v31 }
  0xad   :  { %v175_v36 = vmax.f32 %v171_v32, 0.0  ;;  %v177_v37 = vmax.f32 %v173_v33, 0.0 }
  0xaf   :  { %v251_v38 = vpack.c.bf16 %v175_v36, %v174_v34  ;;  %v256_v39 = vpack.c.bf16 %v177_v37, %v176_v35 }
  0xb1   :  { %252 = vst [vmem:[%s353_s5] sm:$0xff] %v251_v38  }
  0xb2   :  { %259 = vst [vmem:[%s353_s5 + $0x8] sm:$0xff] %v256_v39  }

// kernel: feature_extractor_forward.60
= control target key start
LH: loop header
LB: loop body
LE: loop exit
PB: predicated region body
PF: predicated region fallthrough
CT: control target
= control target key end

     0   :  { %s313_s1 = inlined_call_operand.vmem [shape: bf16[128,128], index: 1, kind: input, shape index: {}]   ;;  %s314_s2 = inlined_call_operand.vmem [shape: f32[1,128], index: 2, kind: input, shape index: {}]   ;;  %s315_s3 = inlined_call_operand.vmem [shape: f32[1,128], index: 3, kind: input, shape index: {}]   ;;  %s316_s0 = inlined_call_operand.vmem [shape: bf16[32,128], index: 0, kind: input, shape index: {}]   ;;  %s317_s4 = inlined_call_operand.vmem [shape: bf16[32,128], index: 4, kind: output, shape index: {}]  }
   0x1   :  { %v224_v0 = vld [vmem:[%s313_s1 + $0x38] sm:$0xff]  ;;  %v223_v1 = vld [vmem:[%s313_s1 + $0x30] sm:$0xff]  ;;  %v222_v2 = vld [vmem:[%s313_s1 + $0x28] sm:$0xff] }
   0x2   :  { %109 = vmatpush.bf16.msra.mxu0 %v224_v0  ;;  %236 = vmatpush.bf16.msra.mxu1 %v224_v0  ;;  %v221_v3 = vld [vmem:[%s313_s1 + $0x20] sm:$0xff]  ;;  %v220_v4 = vld [vmem:[%s313_s1 + $0x18] sm:$0xff]  ;;  %v219_v5 = vld [vmem:[%s313_s1 + $0x10] sm:$0xff] }
   0x3   :  { %v218_v6 = vld [vmem:[%s313_s1 + $0x8] sm:$0xff]  ;;  %v217_v7 = vld [vmem:[%s313_s1] sm:$0xff] }
   0x4   :  { %v215_v8 = vld [vmem:[%s316_s0] sm:$0xff]  ;;  %v216_v9 = vld [vmem:[%s316_s0 + $0x8] sm:$0xff] }
   0x5   :  { %v244_v12 = vld [vmem:[%s314_s2] ss:$0 sm:$0xff] }
   0x6   :  { %110 = vmatpush.bf16.msra.mxu0 %v223_v1  ;;  %237 = vmatpush.bf16.msra.mxu1 %v223_v1  ;;  %v245_v14 = vld [vmem:[%s315_s3] ss:$0 sm:$0xff] }
   0xa   :  { %111 = vmatpush.bf16.msra.mxu0 %v222_v2  ;;  %238 = vmatpush.bf16.msra.mxu1 %v222_v2 }
   0xe   :  { %112 = vmatpush.bf16.msra.mxu0 %v221_v3  ;;  %239 = vmatpush.bf16.msra.mxu1 %v221_v3 }
  0x12   :  { %113 = vmatpush.bf16.msra.mxu0 %v220_v4  ;;  %240 = vmatpush.bf16.msra.mxu1 %v220_v4 }
  0x16   :  { %114 = vmatpush.bf16.msra.mxu0 %v219_v5  ;;  %241 = vmatpush.bf16.msra.mxu1 %v219_v5 }
  0x1a   :  { %115 = vmatpush.bf16.msra.mxu0 %v218_v6  ;;  %242 = vmatpush.bf16.msra.mxu1 %v218_v6 }
  0x1e   :  { %116 = vmatpush.bf16.msra.mxu0 %v217_v7  ;;  %243 = vmatpush.bf16.msra.mxu1 %v217_v7 }
  0x21   :  { %117 = vmatmul.bf16.vlgmr.msra.gmra.mxu0 %v215_v8  ;;  %122 = vmatmul.bf16.vlgmr.msra.gmra.mxu1 %v216_v9 }
  0x9e   :  { %v118_v10 = vpop.f32.mrf.mxu0  ;;  %v123_v11 = vpop.f32.mrf.mxu1 }
  0x9f   :  { %v147_v13 = vmul.f32 %v244_v12, %v118_v10  ;;  %v149_v15 = vmul.f32 %v244_v12, %v123_v11 }
  0xa1   :  { %v155_v18 = vadd.f32 %v245_v14, %v147_v13  ;;  %v157_v19 = vadd.f32 %v245_v14, %v149_v15 }
  0xa3   :  { %v159_v24 = vmax.f32 %v155_v18, 0.0  ;;  %v161_v25 = vmax.f32 %v157_v19, 0.0 }
  0xa6   :  { %v120_v16 = vpop.f32.mrf.mxu0  ;;  %v125_v17 = vpop.f32.mrf.mxu1 }
  0xa7   :  { %v148_v20 = vmul.f32 %v244_v12, %v120_v16  ;;  %v150_v21 = vmul.f32 %v244_v12, %v125_v17 }
  0xa9   :  { %v156_v22 = vadd.f32 %v245_v14, %v148_v20  ;;  %v158_v23 = vadd.f32 %v245_v14, %v150_v21 }
  0xab   :  { %v160_v26 = vmax.f32 %v156_v22, 0.0  ;;  %v162_v27 = vmax.f32 %v158_v23, 0.0 }
  0xad   :  { %v228_v28 = vpack.c.bf16 %v160_v26, %v159_v24  ;;  %v233_v29 = vpack.c.bf16 %v162_v27, %v161_v25 }
  0xaf   :  { %229 = vst [vmem:[%s317_s4] sm:$0xff] %v228_v28  }
  0xb0   :  { %235 = vst [vmem:[%s317_s4 + $0x8] sm:$0xff] %v233_v29  }

// kernel: feature_extractor_forward.70
= control target key start
LH: loop header
LB: loop body
LE: loop exit
PB: predicated region body
PF: predicated region fallthrough
CT: control target
= control target key end

     0   :  { %9 = vsyncpa [#allocation5], 0  ;;  %s921_s0 = inlined_call_operand.vmem [shape: bf16[16,1152], index: 0, kind: input, shape index: {}]   ;;  %s922_s1 = inlined_call_operand.vmem [shape: bf16[1152,128], index: 1, kind: input, shape index: {}]   ;;  %s923_s2 = inlined_call_operand.hbm [shape: f32[1,128], index: 2, kind: input, shape index: {}]   ;;  %s924_s3 = inlined_call_operand.hbm [shape: f32[1,128], index: 3, kind: input, shape index: {}]   ;;  %s925_s4 = inlined_call_operand.vmem [shape: bf16[16,128], index: 4, kind: output, shape index: {}]  }
   0x1   :  { %10 = vsyncpa [#allocation7], 0  ;;  %s811_s15 = smov 0   ;;  %s813_s16 = smov 0  }
   0x2   :  { %s815_s17 = smov 0   ;;  %s817_s18 = smov 0  }
   0x3   :  { %s819_s19 = smov 0  }
   0x4 LB: > { %s542_s20 = sadd.s32 4294967295, %s781_s19   ;;  %s25_s21 = sadd.s32 1, %s777_s18  ;;  %s781_s19 = sphi %s819_s19, %s16_s19   ;;  %s777_s18 = sphi %s817_s18, %s932_s18   ;;  %s773_s17 = sphi %s815_s17, %s931_s17   ;;  %s769_s16 = sphi %s813_s16, %s930_s16   ;;  %s765_s15 = sphi %s811_s15, %s929_s15  }
   0x5   : > { %p26_p0 = scmp.ge.s32.totalorder %s25_s21, 9  ;;  %s37_s22 = sadd.s32 1, %s769_s16 }
   0x6   : > { %p44_p1 = scmp.ne.s32.totalorder %s769_s16, %s765_s15  ;;  %p45_p2 = scmp.eq.s32.totalorder %s781_s19, 0 }
   0x7   : > { %s934_s21 = smov (%p26_p0, %s25_s21), 0  ;;  %p543_p4 = scmp.ge.s32.totalorder %s781_s19, 1 }
   0x8   : > { %p844_p3 = por %p45_p2, %p44_p1  ;;  %s33_s24 = ssub.s32 %s777_s18, %s934_s21 }
   0x9   : > { %p155_p5 = scmp.lt.s32.totalorder %s781_s19, 10  ;;  %p35_p6 = scmp.eq.s32.totalorder %s33_s24, 0 }
   0xa   : > { %p856_p8 = scmp.eq.s32.totalorder %s542_s20, 0  ;;  %s167_s30 = sshll.u32 %s923_s2, 4  ;;  %s168_s30 = int_to_ptr.hbm [resolvable:$true] %s167_s30 }
   0xb   : > { %p852_p7 = pnand %p543_p4, %p155_p5  ;;  %s783_s5 = smov [#allocation4]  }
   0xc   : > { %s861_s27 = scalar_select %p35_p6, %s769_s16, %s37_s22  }
   0xd   : > { %p619_p9 = pneg %p852_p7  ;;  %s169_s6 = sshll.u32 %s783_s5, 4  ;;  %s170_s6 = int_to_ptr.vmem [resolvable:$true] %s169_s6 }
   0xe   : > { %s179_s9 = sshll.u32 %s924_s3, 4  ;;  %s784_s10 = smov [#allocation6]   ;;  %s180_s9 = int_to_ptr.hbm [resolvable:$true] %s179_s9 }
   0xf   : > { %p620_p10 = pnand %p856_p8, %p619_p9  ;;  %s181_s11 = sshll.u32 %s784_s10, 4  ;;  %s182_s11 = int_to_ptr.vmem [resolvable:$true] %s181_s11 }
  0x10   : > { %p546_p11 = scmp.ge.s32.totalorder %s781_s19, 9 }
  0x11   : > { %622 = dma.hbm_to_vmem [thread:$0]  (!%p620_p10), %s168_s30, 16, %s170_s6, [#allocation5]  }
  0x12   : > { %625 = dma.hbm_to_vmem [thread:$0]  (!%p620_p10), %s180_s9, 16, %s182_s11, [#allocation7]  }
  0x13   : > { %188 = sbr.rel (%p546_p11) target bundleno = 30 (0x1e), region = 24 }
  0x18   : > { %191 = sbr.rel (!%p844_p3) target bundleno = 30 (0x1e), region = 28  ;;  %s193_s12 = sand.u32 (%p844_p3), 1, %s769_s16  }
  0x19   : > { %s548_s13 = sshll.u32 (%p844_p3), %s777_s18, 2  ;;  %s547_s14 = sshll.u32 (%p844_p3), %s193_s12, 3 }
  0x1a   : > { %s200_s24 = scalar_lea.vmem (%p844_p3), %s921_s0, %s548_s13  ;;  %s195_s28 = scalar_lea.vmem (%p844_p3), [#allocation3], %s547_s14 }
  0x1b   : > { %v217_v0 = vld [vmem:[%s200_s24] sm:$0xf] (%p844_p3)  ;;  %v219_v1 = vld [vmem:[%s200_s24 + $0x24] sm:$0xf] (%p844_p3) }
  0x1c   : > { %218 = vst [vmem:[%s195_s28] sm:$0xf] (%p844_p3), %v217_v0 }
  0x1d   : > { %220 = vst [vmem:[%s195_s28 + $0x4] sm:$0xf] %v219_v1 }
  0x1e PF: > { %260 = sbr.rel (%p852_p7) target bundleno = 233 (0xe9), region = 73  ;;  %s263_s23 = sand.u32 (!%p852_p7), 1, %s765_s15  }
  0x1f   : > { %s884_s29 = sshll.u32 (!%p852_p7), %s263_s23, 3 }
  0x20   : > { %s265_s30 = scalar_lea.vmem (!%p852_p7), [#allocation3], %s884_s29 }
  0x23   : > { %756 = dma.done.wait (%p856_p8), [#allocation5], 16  }
  0x24   : > { %758 = vsyncadd (%p856_p8), [#allocation5], 4294967280 }
  0x25   : > { %760 = dma.done.wait (%p856_p8), [#allocation7], 16  }
  0x26   : > { %762 = vsyncadd (%p856_p8), [#allocation7], 4294967280  ;;  %s553_s25 = sshll.u32 %s773_s17, 4  ;;  %p555_p13 = scmp.ne.s32.totalorder %s773_s17, 0 }
  0x27   : > { %p305_p12 = scmp.lt.s32.totalorder %s553_s25, 143 }
  0x28   : > { %319 = sbr.rel (%p555_p13) target bundleno = 48 (0x30), region = 89 }
  0x29   : > { %s936_s25 = smov (!%p305_p12, %s553_s25), 143 }
  0x2a   : > { %s554_s15 = sshll.u32 %s936_s25, 2 }
  0x2b   : > { %s308_s7 = scalar_lea.vmem %s922_s1, %s554_s15 }
  0x2d   : > { %v785_v2 = vmov 0.0  }
  0x2e   : > { %320 = vst [vmem:[#allocation2] sm:$0xff] %v785_v2 }
  0x2f   : > { %321 = vst [vmem:[#allocation2 + $0x8] sm:$0xff] %v785_v2 }
  0x30 PF: > { %v605_v3 = vld [vmem:[%s308_s7 + $0x38] sm:$0xff]  ;;  %v604_v4 = vld [vmem:[%s308_s7 + $0x30] sm:$0xff]  ;;  %v603_v5 = vld [vmem:[%s308_s7 + $0x28] sm:$0xff]  ;;  %p592_p0 = scmp.ne.s32.totalorder %s773_s17, 8 }
  0x31   : > { %396 = vmatpush.bf16.msra.mxu0 %v605_v3  ;;  %v602_v6 = vld [vmem:[%s308_s7 + $0x20] sm:$0xff]  ;;  %v601_v7 = vld [vmem:[%s308_s7 + $0x18] sm:$0xff]  ;;  %v600_v8 = vld [vmem:[%s308_s7 + $0x10] sm:$0xff] }
  0x32   : > { %v599_v9 = vld [vmem:[%s308_s7 + $0x8] sm:$0xff]  ;;  %v598_v10 = vld [vmem:[%s308_s7] sm:$0xff]  ;;  %v597_v11 = vld [vmem:[%s265_s30] sm:$0xff] }
  0x35   : > { %397 = vmatpush.bf16.msra.mxu0 %v604_v4  ;;  %v322_v12 = vld [vmem:[#allocation2] sm:$0xff] }
  0x36   : > { %v323_v15 = vld [vmem:[#allocation2 + $0x8] sm:$0xff] }
  0x39   : > { %398 = vmatpush.bf16.msra.mxu0 %v603_v5 }
  0x3d   : > { %399 = vmatpush.bf16.msra.mxu0 %v602_v6 }
  0x41   : > { %400 = vmatpush.bf16.msra.mxu0 %v601_v7 }
  0x45   : > { %401 = vmatpush.bf16.msra.mxu0 %v600_v8 }
  0x49   : > { %402 = vmatpush.bf16.msra.mxu0 %v599_v9 }
  0x4d   : > { %403 = vmatpush.bf16.msra.mxu0 %v598_v10 }
  0x50   : > { %404 = vmatmul.bf16.vlgmr.msra.gmra.mxu0 %v597_v11 }
  0xcd   : > { %v405_v13 = vpop.f32.mrf.mxu0 }
  0xce   : > { %v410_v14 = vadd.f32 %v405_v13, %v322_v12 }
  0xd0   : > { %412 = vst [vmem:[#allocation2] sm:$0xff] %v410_v14 }
  0xd4   : > { %417 = sbr.rel (%p592_p0) target bundleno = 233 (0xe9), region = 93 }
  0xd5   : > { %v407_v16 = vpop.f32.mrf.mxu0 }
  0xd6   : > { %v411_v17 = vadd.f32 %v407_v16, %v323_v15 }
  0xd8   : > { %413 = vst [vmem:[#allocation2 + $0x8] sm:$0xff] %v411_v17 }
  0xd9   : > { %v418_v18 = vld [vmem:[#allocation2] sm:$0xff] }
  0xda   : > { %v673_v20 = vld [vmem:[#allocation4] ss:$0 sm:$0xff]  ;;  %v674_v21 = vld [vmem:[#allocation6] ss:$0 sm:$0xff] }
  0xdb   : > { %v424_v22 = vmul.f32 %v673_v20, %v418_v18 }
  0xdd   : > { %v430_v24 = vadd.f32 %v674_v21, %v424_v22 }
  0xdf   : > { %v419_v19 = vld [vmem:[#allocation2 + $0x8] sm:$0xff]  ;;  %v432_v26 = vmax.f32 %v430_v24, 0.0 }
  0xe0   : > { %v425_v23 = vmul.f32 %v673_v20, %v419_v19 }
  0xe2   : > { %v431_v25 = vadd.f32 %v674_v21, %v425_v23 }
  0xe4   : > { %v433_v27 = vmax.f32 %v431_v25, 0.0 }
  0xe6   : > { %v609_v28 = vpack.c.bf16 %v433_v27, %v432_v26 }
  0xe8   : > { %610 = vst [vmem:[%s925_s4] sm:$0xff] %v609_v28  }
  0xe9 PF: > { %s16_s19 = sadd.s32 1, %s781_s19   ;;  %s929_s15 = smov %s769_s16 }
  0xea   : > { %p13_p1 = scmp.ge.s32.totalorder %s16_s19, 11   ;;  %s930_s16 = smov %s861_s27 }
  0xeb   : > { %s931_s17 = smov %s777_s18  ;;  %s932_s18 = smov %s934_s21 }
  0xec   :  { %15 = sbr.rel (!%p13_p1) target bundleno = 4 (0x4), region = 132 }
  0xf1   :  { %460 = vsyncpa [#allocation5], 1 }
  0xf2   :  { %462 = vsyncpa [#allocation5 + $0x1], 1 }
  0xf3   :  { %463 = vsyncpa [#allocation7], 1 }

// kernel: feature_extractor_forward.71
= control target key start
LH: loop header
LB: loop body
LE: loop exit
PB: predicated region body
PF: predicated region fallthrough
CT: control target
= control target key end

     0   :  { %s425_s1 = inlined_call_operand.vmem [shape: bf16[128,256], index: 1, kind: input, shape index: {}]   ;;  %s426_s0 = inlined_call_operand.vmem [shape: bf16[16,128], index: 0, kind: input, shape index: {}]   ;;  %s427_s2 = inlined_call_operand.vmem [shape: f32[1,256], index: 2, kind: input, shape index: {}]   ;;  %s428_s3 = inlined_call_operand.vmem [shape: f32[1,256], index: 3, kind: input, shape index: {}]   ;;  %s429_s4 = inlined_call_operand.vmem [shape: bf16[16,256], index: 4, kind: output, shape index: {}]  }
   0x1   :  { %v266_v0 = vld [vmem:[%s425_s1 + $0x70] sm:$0xf]  ;;  %v288_v1 = vld [vmem:[%s425_s1 + $0x74] sm:$0xf0]  ;;  %v287_v2 = vld [vmem:[%s425_s1 + $0x74] sm:$0xf] }
   0x2   :  { %v267_v3 = vor.u32 %v288_v1, %v266_v0  ;;  %v268_v4 = vld [vmem:[%s425_s1 + $0x78] sm:$0xf0]  ;;  %v258_v5 = vld [vmem:[%s425_s1 + $0x60] sm:$0xf]  ;;  %v286_v6 = vld [vmem:[%s425_s1 + $0x64] sm:$0xf0] }
   0x3   :  { %v271_v7 = vor.u32 %v287_v2, %v268_v4  ;;  %v285_v8 = vld [vmem:[%s425_s1 + $0x64] sm:$0xf]  ;;  %v260_v9 = vld [vmem:[%s425_s1 + $0x68] sm:$0xf0]  ;;  %v259_v10 = vor.u32 %v286_v6, %v258_v5  ;;  %v250_v12 = vld [vmem:[%s425_s1 + $0x50] sm:$0xf] }
   0x4   :  { %133 = vmatpush.bf16.msra.mxu0 %v267_v3  ;;  %v263_v11 = vor.u32 %v285_v8, %v260_v9  ;;  %v284_v13 = vld [vmem:[%s425_s1 + $0x54] sm:$0xf0]  ;;  %v283_v14 = vld [vmem:[%s425_s1 + $0x54] sm:$0xf]  ;;  %v252_v15 = vld [vmem:[%s425_s1 + $0x58] sm:$0xf0] }
   0x5   :  { %147 = vmatpush.bf16.msra.mxu1 %v271_v7  ;;  %v251_v16 = vor.u32 %v284_v13, %v250_v12  ;;  %v255_v17 = vor.u32 %v283_v14, %v252_v15  ;;  %v242_v18 = vld [vmem:[%s425_s1 + $0x40] sm:$0xf]  ;;  %v282_v19 = vld [vmem:[%s425_s1 + $0x44] sm:$0xf0]  ;;  %v281_v20 = vld [vmem:[%s425_s1 + $0x44] sm:$0xf] }
   0x6   :  { %v244_v21 = vld [vmem:[%s425_s1 + $0x48] sm:$0xf0]  ;;  %v243_v22 = vor.u32 %v282_v19, %v242_v18  ;;  %v234_v24 = vld [vmem:[%s425_s1 + $0x30] sm:$0xf]  ;;  %v280_v25 = vld [vmem:[%s425_s1 + $0x34] sm:$0xf0] }
   0x7   :  { %v247_v23 = vor.u32 %v281_v20, %v244_v21  ;;  %v279_v26 = vld [vmem:[%s425_s1 + $0x34] sm:$0xf]  ;;  %v236_v27 = vld [vmem:[%s425_s1 + $0x38] sm:$0xf0]  ;;  %v235_v28 = vor.u32 %v280_v25, %v234_v24  ;;  %v226_v30 = vld [vmem:[%s425_s1 + $0x20] sm:$0xf] }
   0x8   :  { %134 = vmatpush.bf16.msra.mxu0 %v259_v10  ;;  %v239_v29 = vor.u32 %v279_v26, %v236_v27  ;;  %v278_v31 = vld [vmem:[%s425_s1 + $0x24] sm:$0xf0]  ;;  %v277_v32 = vld [vmem:[%s425_s1 + $0x24] sm:$0xf]  ;;  %v228_v33 = vld [vmem:[%s425_s1 + $0x28] sm:$0xf0] }
   0x9   :  { %148 = vmatpush.bf16.msra.mxu1 %v263_v11  ;;  %v227_v34 = vor.u32 %v278_v31, %v226_v30  ;;  %v231_v35 = vor.u32 %v277_v32, %v228_v33  ;;  %v218_v36 = vld [vmem:[%s425_s1 + $0x10] sm:$0xf]  ;;  %v276_v37 = vld [vmem:[%s425_s1 + $0x14] sm:$0xf0]  ;;  %v275_v38 = vld [vmem:[%s425_s1 + $0x14] sm:$0xf] }
   0xa   :  { %v220_v39 = vld [vmem:[%s425_s1 + $0x18] sm:$0xf0]  ;;  %v219_v40 = vor.u32 %v276_v37, %v218_v36  ;;  %v210_v42 = vld [vmem:[%s425_s1] sm:$0xf]  ;;  %v274_v43 = vld [vmem:[%s425_s1 + $0x4] sm:$0xf0] }
   0xb   :  { %v223_v41 = vor.u32 %v275_v38, %v220_v39  ;;  %v273_v44 = vld [vmem:[%s425_s1 + $0x4] sm:$0xf]  ;;  %v212_v45 = vld [vmem:[%s425_s1 + $0x8] sm:$0xf0]  ;;  %v211_v46 = vor.u32 %v274_v43, %v210_v42  ;;  %v176_v49 = vld [vmem:[%s427_s2] sm:$0x3] }
   0xc   :  { %135 = vmatpush.bf16.msra.mxu0 %v251_v16  ;;  %v215_v47 = vor.u32 %v273_v44, %v212_v45  ;;  %v272_v48 = vld [vmem:[%s426_s0] sm:$0xff]  ;;  %v178_v51 = vperm.slane %v176_v49, 0  ;;  %v179_v52 = vperm.slane %v176_v49, 1 }
   0xd   :  { %149 = vmatpush.bf16.msra.mxu1 %v255_v17  ;;  %v186_v50 = vld [vmem:[%s428_s3] sm:$0x3] }
   0xe   :  { %v188_v53 = vperm.slane %v186_v50, 0  ;;  %v189_v55 = vperm.slane %v186_v50, 1 }
  0x10   :  { %136 = vmatpush.bf16.msra.mxu0 %v243_v22 }
  0x11   :  { %150 = vmatpush.bf16.msra.mxu1 %v247_v23 }
  0x14   :  { %137 = vmatpush.bf16.msra.mxu0 %v235_v28 }
  0x15   :  { %151 = vmatpush.bf16.msra.mxu1 %v239_v29 }
  0x18   :  { %138 = vmatpush.bf16.msra.mxu0 %v227_v34 }
  0x19   :  { %152 = vmatpush.bf16.msra.mxu1 %v231_v35 }
  0x1c   :  { %139 = vmatpush.bf16.msra.mxu0 %v219_v40 }
  0x1d   :  { %153 = vmatpush.bf16.msra.mxu1 %v223_v41 }
  0x20   :  { %140 = vmatpush.bf16.msra.mxu0 %v211_v46 }
  0x21   :  { %154 = vmatpush.bf16.msra.mxu1 %v215_v47 }
  0x23   :  { %141 = vmatmul.bf16.vlgmr.msra.gmra.mxu0 %v272_v48 }
  0x24   :  { %155 = vmatmul.bf16.vlgmr.msra.gmra.mxu1 %v272_v48 }
  0xa0   :  { %v142_v54 = vpop.f32.mrf.mxu0 }
  0xa1   :  { %v182_v56 = vmul.f32 %v178_v51, %v142_v54  ;;  %v156_v57 = vpop.f32.mrf.mxu1 }
  0xa2   :  { %v183_v58 = vmul.f32 %v179_v52, %v156_v57 }
  0xa3   :  { %v192_v59 = vadd.f32 %v188_v53, %v182_v56 }
  0xa4   :  { %v193_v60 = vadd.f32 %v189_v55, %v183_v58 }
  0xa6   :  { %v196_v61 = vpack.c.bf16 %v193_v60, %v192_v59 }
  0xa8   :  { %198 = vst [vmem:[%s429_s4] sm:$0xff] %v196_v61  ;;  %v144_v62 = vpop.f32.mrf.mxu0 }
  0xa9   :  { %v184_v63 = vmul.f32 %v178_v51, %v144_v62  ;;  %v158_v0 = vpop.f32.mrf.mxu1 }
  0xaa   :  { %v185_v1 = vmul.f32 %v179_v52, %v158_v0 }
  0xab   :  { %v194_v2 = vadd.f32 %v188_v53, %v184_v63 }
  0xac   :  { %v195_v3 = vadd.f32 %v189_v55, %v185_v1 }
  0xae   :  { %v197_v4 = vpack.c.bf16 %v195_v3, %v194_v2 }
  0xb0   :  { %199 = vst [vmem:[%s429_s4 + $0x8] sm:$0xff] %v197_v4 }

// kernel: feature_extractor_forward.72
= control target key start
LH: loop header
LB: loop body
LE: loop exit
PB: predicated region body
PF: predicated region fallthrough
CT: control target
= control target key end

     0   :  { %s453_s1 = inlined_call_operand.vmem [shape: bf16[128,256], index: 1, kind: input, shape index: {}]   ;;  %s454_s0 = inlined_call_operand.vmem [shape: bf16[16,128], index: 0, kind: input, shape index: {}]   ;;  %s455_s2 = inlined_call_operand.vmem [shape: f32[1,256], index: 2, kind: input, shape index: {}]   ;;  %s456_s3 = inlined_call_operand.vmem [shape: f32[1,256], index: 3, kind: input, shape index: {}]   ;;  %s457_s4 = inlined_call_operand.vmem [shape: bf16[16,256], index: 4, kind: input, shape index: {}]   ;;  %s458_s5 = inlined_call_operand.vmem [shape: bf16[16,256], index: 5, kind: output, shape index: {}]  }
   0x1   :  { %v283_v0 = vld [vmem:[%s453_s1 + $0x70] sm:$0xf]  ;;  %v305_v1 = vld [vmem:[%s453_s1 + $0x74] sm:$0xf0]  ;;  %v304_v2 = vld [vmem:[%s453_s1 + $0x74] sm:$0xf] }
   0x2   :  { %v284_v3 = vor.u32 %v305_v1, %v283_v0  ;;  %v285_v4 = vld [vmem:[%s453_s1 + $0x78] sm:$0xf0]  ;;  %v275_v5 = vld [vmem:[%s453_s1 + $0x60] sm:$0xf]  ;;  %v303_v6 = vld [vmem:[%s453_s1 + $0x64] sm:$0xf0] }
   0x3   :  { %v288_v7 = vor.u32 %v304_v2, %v285_v4  ;;  %v302_v8 = vld [vmem:[%s453_s1 + $0x64] sm:$0xf]  ;;  %v277_v9 = vld [vmem:[%s453_s1 + $0x68] sm:$0xf0]  ;;  %v276_v10 = vor.u32 %v303_v6, %v275_v5  ;;  %v267_v12 = vld [vmem:[%s453_s1 + $0x50] sm:$0xf] }
   0x4   :  { %136 = vmatpush.bf16.msra.mxu0 %v284_v3  ;;  %v280_v11 = vor.u32 %v302_v8, %v277_v9  ;;  %v301_v13 = vld [vmem:[%s453_s1 + $0x54] sm:$0xf0]  ;;  %v300_v14 = vld [vmem:[%s453_s1 + $0x54] sm:$0xf]  ;;  %v269_v15 = vld [vmem:[%s453_s1 + $0x58] sm:$0xf0] }
   0x5   :  { %150 = vmatpush.bf16.msra.mxu1 %v288_v7  ;;  %v268_v16 = vor.u32 %v301_v13, %v267_v12  ;;  %v272_v17 = vor.u32 %v300_v14, %v269_v15  ;;  %v259_v18 = vld [vmem:[%s453_s1 + $0x40] sm:$0xf]  ;;  %v299_v19 = vld [vmem:[%s453_s1 + $0x44] sm:$0xf0]  ;;  %v298_v20 = vld [vmem:[%s453_s1 + $0x44] sm:$0xf] }
   0x6   :  { %v261_v21 = vld [vmem:[%s453_s1 + $0x48] sm:$0xf0]  ;;  %v260_v22 = vor.u32 %v299_v19, %v259_v18  ;;  %v251_v24 = vld [vmem:[%s453_s1 + $0x30] sm:$0xf]  ;;  %v297_v25 = vld [vmem:[%s453_s1 + $0x34] sm:$0xf0] }
   0x7   :  { %v264_v23 = vor.u32 %v298_v20, %v261_v21  ;;  %v296_v26 = vld [vmem:[%s453_s1 + $0x34] sm:$0xf]  ;;  %v253_v27 = vld [vmem:[%s453_s1 + $0x38] sm:$0xf0]  ;;  %v252_v28 = vor.u32 %v297_v25, %v251_v24  ;;  %v243_v30 = vld [vmem:[%s453_s1 + $0x20] sm:$0xf] }
   0x8   :  { %137 = vmatpush.bf16.msra.mxu0 %v276_v10  ;;  %v256_v29 = vor.u32 %v296_v26, %v253_v27  ;;  %v295_v31 = vld [vmem:[%s453_s1 + $0x24] sm:$0xf0]  ;;  %v294_v32 = vld [vmem:[%s453_s1 + $0x24] sm:$0xf]  ;;  %v245_v33 = vld [vmem:[%s453_s1 + $0x28] sm:$0xf0] }
   0x9   :  { %151 = vmatpush.bf16.msra.mxu1 %v280_v11  ;;  %v244_v34 = vor.u32 %v295_v31, %v243_v30  ;;  %v248_v35 = vor.u32 %v294_v32, %v245_v33  ;;  %v235_v36 = vld [vmem:[%s453_s1 + $0x10] sm:$0xf]  ;;  %v293_v37 = vld [vmem:[%s453_s1 + $0x14] sm:$0xf0]  ;;  %v292_v38 = vld [vmem:[%s453_s1 + $0x14] sm:$0xf] }
   0xa   :  { %v237_v39 = vld [vmem:[%s453_s1 + $0x18] sm:$0xf0]  ;;  %v236_v40 = vor.u32 %v293_v37, %v235_v36  ;;  %v227_v42 = vld [vmem:[%s453_s1] sm:$0xf]  ;;  %v291_v43 = vld [vmem:[%s453_s1 + $0x4] sm:$0xf0] }
   0xb   :  { %v240_v41 = vor.u32 %v292_v38, %v237_v39  ;;  %v290_v44 = vld [vmem:[%s453_s1 + $0x4] sm:$0xf]  ;;  %v229_v45 = vld [vmem:[%s453_s1 + $0x8] sm:$0xf0]  ;;  %v228_v46 = vor.u32 %v291_v43, %v227_v42  ;;  %v179_v49 = vld [vmem:[%s455_s2] sm:$0x3] }
   0xc   :  { %138 = vmatpush.bf16.msra.mxu0 %v268_v16  ;;  %v232_v47 = vor.u32 %v290_v44, %v229_v45  ;;  %v289_v48 = vld [vmem:[%s454_s0] sm:$0xff]  ;;  %v181_v51 = vperm.slane %v179_v49, 0  ;;  %v182_v53 = vperm.slane %v179_v49, 1  ;;  %v200_v2 = vld [vmem:[%s457_s4 + $0x8] sm:$0xff] }
   0xd   :  { %152 = vmatpush.bf16.msra.mxu1 %v272_v17  ;;  %v189_v50 = vld [vmem:[%s456_s3] sm:$0x3]  ;;  %v203_v7 = vunpack.c.l.bf16 %v200_v2  ;;  %v204_v11 = vunpack.c.h.bf16 %v200_v2 }
   0xe   :  { %v199_v52 = vld [vmem:[%s457_s4] sm:$0xff]  ;;  %v191_v54 = vperm.slane %v189_v50, 0  ;;  %v192_v56 = vperm.slane %v189_v50, 1 }
   0xf   :  { %v201_v58 = vunpack.c.l.bf16 %v199_v52  ;;  %v202_v61 = vunpack.c.h.bf16 %v199_v52 }
  0x10   :  { %139 = vmatpush.bf16.msra.mxu0 %v260_v22 }
  0x11   :  { %153 = vmatpush.bf16.msra.mxu1 %v264_v23 }
  0x14   :  { %140 = vmatpush.bf16.msra.mxu0 %v252_v28 }
  0x15   :  { %154 = vmatpush.bf16.msra.mxu1 %v256_v29 }
  0x18   :  { %141 = vmatpush.bf16.msra.mxu0 %v244_v34 }
  0x19   :  { %155 = vmatpush.bf16.msra.mxu1 %v248_v35 }
  0x1c   :  { %142 = vmatpush.bf16.msra.mxu0 %v236_v40 }
  0x1d   :  { %156 = vmatpush.bf16.msra.mxu1 %v240_v41 }
  0x20   :  { %143 = vmatpush.bf16.msra.mxu0 %v228_v46 }
  0x21   :  { %157 = vmatpush.bf16.msra.mxu1 %v232_v47 }
  0x23   :  { %144 = vmatmul.bf16.vlgmr.msra.gmra.mxu0 %v289_v48 }
  0x24   :  { %158 = vmatmul.bf16.vlgmr.msra.gmra.mxu1 %v289_v48 }
  0xa0   :  { %v145_v55 = vpop.f32.mrf.mxu0 }
  0xa1   :  { %v185_v57 = vmul.f32 %v181_v51, %v145_v55  ;;  %v159_v59 = vpop.f32.mrf.mxu1 }
  0xa2   :  { %v186_v60 = vmul.f32 %v182_v53, %v159_v59 }
  0xa3   :  { %v195_v62 = vadd.f32 %v191_v54, %v185_v57 }
  0xa4   :  { %v196_v63 = vadd.f32 %v192_v56, %v186_v60 }
  0xa5   :  { %v205_v0 = vadd.f32 %v201_v58, %v195_v62 }
  0xa6   :  { %v206_v1 = vadd.f32 %v202_v61, %v196_v63 }
  0xa7   :  { %v209_v3 = vmax.f32 %v205_v0, 0.0 }
  0xa8   :  { %v210_v4 = vmax.f32 %v206_v1, 0.0  ;;  %v147_v5 = vpop.f32.mrf.mxu0 }
  0xa9   :  { %v187_v6 = vmul.f32 %v181_v51, %v147_v5  ;;  %v161_v8 = vpop.f32.mrf.mxu1 }
  0xaa   :  { %v213_v9 = vpack.c.bf16 %v210_v4, %v209_v3  ;;  %v188_v10 = vmul.f32 %v182_v53, %v161_v8 }
  0xab   :  { %v197_v12 = vadd.f32 %v191_v54, %v187_v6 }
  0xac   :  { %215 = vst [vmem:[%s458_s5] sm:$0xff] %v213_v9  ;;  %v198_v13 = vadd.f32 %v192_v56, %v188_v10 }
  0xad   :  { %v207_v14 = vadd.f32 %v203_v7, %v197_v12 }
  0xae   :  { %v208_v15 = vadd.f32 %v204_v11, %v198_v13 }
  0xaf   :  { %v211_v16 = vmax.f32 %v207_v14, 0.0 }
  0xb0   :  { %v212_v17 = vmax.f32 %v208_v15, 0.0 }
  0xb2   :  { %v214_v18 = vpack.c.bf16 %v212_v17, %v211_v16 }
  0xb4   :  { %216 = vst [vmem:[%s458_s5 + $0x8] sm:$0xff] %v214_v18 }

// kernel: feature_extractor_forward.73
= control target key start
LH: loop header
LB: loop body
LE: loop exit
PB: predicated region body
PF: predicated region fallthrough
CT: control target
= control target key end

     0   :  { %s415_s1 = inlined_call_operand.vmem [shape: bf16[256,128], index: 1, kind: input, shape index: {}]   ;;  %s416_s0 = inlined_call_operand.vmem [shape: bf16[16,256], index: 0, kind: input, shape index: {}]   ;;  %s417_s2 = inlined_call_operand.vmem [shape: f32[1,128], index: 2, kind: input, shape index: {}]   ;;  %s418_s3 = inlined_call_operand.vmem [shape: f32[1,128], index: 3, kind: input, shape index: {}]   ;;  %s419_s4 = inlined_call_operand.vmem [shape: bf16[16,128], index: 4, kind: output, shape index: {}]  }
   0x1   :  { %v305_v0 = vld [vmem:[%s415_s1 + $0x38] sm:$0xff]  ;;  %v304_v2 = vld [vmem:[%s415_s1 + $0x30] sm:$0xff]  ;;  %v303_v4 = vld [vmem:[%s415_s1 + $0x28] sm:$0xff] }
   0x2   :  { %v313_v1 = vld [vmem:[%s415_s1 + $0x78] sm:$0xff]  ;;  %165 = vmatpush.bf16.msra.mxu0 %v305_v0  ;;  %v312_v3 = vld [vmem:[%s415_s1 + $0x70] sm:$0xff]  ;;  %v311_v5 = vld [vmem:[%s415_s1 + $0x68] sm:$0xff] }
   0x3   :  { %179 = vmatpush.bf16.msra.mxu1 %v313_v1  ;;  %v302_v6 = vld [vmem:[%s415_s1 + $0x20] sm:$0xff]  ;;  %v301_v8 = vld [vmem:[%s415_s1 + $0x18] sm:$0xff]  ;;  %v300_v10 = vld [vmem:[%s415_s1 + $0x10] sm:$0xff] }
   0x4   :  { %v310_v7 = vld [vmem:[%s415_s1 + $0x60] sm:$0xff]  ;;  %v309_v9 = vld [vmem:[%s415_s1 + $0x58] sm:$0xff]  ;;  %v308_v11 = vld [vmem:[%s415_s1 + $0x50] sm:$0xff] }
   0x5   :  { %v299_v12 = vld [vmem:[%s415_s1 + $0x8] sm:$0xff]  ;;  %v298_v14 = vld [vmem:[%s415_s1] sm:$0xff] }
   0x6   :  { %166 = vmatpush.bf16.msra.mxu0 %v304_v2  ;;  %v307_v13 = vld [vmem:[%s415_s1 + $0x48] sm:$0xff]  ;;  %v306_v15 = vld [vmem:[%s415_s1 + $0x40] sm:$0xff] }
   0x7   :  { %180 = vmatpush.bf16.msra.mxu1 %v312_v3  ;;  %v226_v16 = vld [vmem:[%s416_s0] sm:$0xf]  ;;  %v297_v17 = vld [vmem:[%s416_s0 + $0x4] sm:$0xf0]  ;;  %v296_v18 = vld [vmem:[%s416_s0 + $0x4] sm:$0xf] }
   0x8   :  { %v228_v19 = vld [vmem:[%s416_s0 + $0x8] sm:$0xf0]  ;;  %v227_v20 = vor.u32 %v297_v17, %v226_v16  ;;  %v319_v25 = vld [vmem:[%s417_s2] ss:$0 sm:$0xff] }
   0x9   :  { %v231_v21 = vor.u32 %v296_v18, %v228_v19  ;;  %v320_v27 = vld [vmem:[%s418_s3] ss:$0 sm:$0xff] }
   0xa   :  { %167 = vmatpush.bf16.msra.mxu0 %v303_v4 }
   0xb   :  { %181 = vmatpush.bf16.msra.mxu1 %v311_v5 }
   0xe   :  { %168 = vmatpush.bf16.msra.mxu0 %v302_v6 }
   0xf   :  { %182 = vmatpush.bf16.msra.mxu1 %v310_v7 }
  0x12   :  { %169 = vmatpush.bf16.msra.mxu0 %v301_v8 }
  0x13   :  { %183 = vmatpush.bf16.msra.mxu1 %v309_v9 }
  0x16   :  { %170 = vmatpush.bf16.msra.mxu0 %v300_v10 }
  0x17   :  { %184 = vmatpush.bf16.msra.mxu1 %v308_v11 }
  0x1a   :  { %171 = vmatpush.bf16.msra.mxu0 %v299_v12 }
  0x1b   :  { %185 = vmatpush.bf16.msra.mxu1 %v307_v13 }
  0x1e   :  { %172 = vmatpush.bf16.msra.mxu0 %v298_v14 }
  0x1f   :  { %186 = vmatpush.bf16.msra.mxu1 %v306_v15 }
  0x21   :  { %173 = vmatmul.bf16.vlgmr.msra.gmra.mxu0 %v227_v20 }
  0x22   :  { %187 = vmatmul.bf16.vlgmr.msra.gmra.mxu1 %v231_v21 }
  0x9e   :  { %v174_v22 = vpop.f32.mrf.mxu0 }
  0x9f   :  { %v188_v23 = vpop.f32.mrf.mxu1 }
  0xa0   :  { %v189_v24 = vadd.f32 %v188_v23, %v174_v22 }
  0xa2   :  { %v206_v26 = vmul.f32 %v319_v25, %v189_v24 }
  0xa4   :  { %v212_v31 = vadd.f32 %v320_v27, %v206_v26 }
  0xa6   :  { %v176_v28 = vpop.f32.mrf.mxu0  ;;  %v214_v34 = vmax.f32 %v212_v31, 0.0 }
  0xa7   :  { %v190_v29 = vpop.f32.mrf.mxu1 }
  0xa8   :  { %v191_v30 = vadd.f32 %v190_v29, %v176_v28 }
  0xaa   :  { %v207_v32 = vmul.f32 %v319_v25, %v191_v30 }
  0xac   :  { %v213_v33 = vadd.f32 %v320_v27, %v207_v32 }
  0xae   :  { %v215_v35 = vmax.f32 %v213_v33, 0.0 }
  0xb0   :  { %v317_v36 = vpack.c.bf16 %v215_v35, %v214_v34 }
  0xb2   :  { %318 = vst [vmem:[%s419_s4] sm:$0xff] %v317_v36  }

// kernel: feature_extractor_forward.80
= control target key start
LH: loop header
LB: loop body
LE: loop exit
PB: predicated region body
PF: predicated region fallthrough
CT: control target
= control target key end

     0   :  { %s664_s15 = smov 0   ;;  %s666_s16 = smov 0   ;;  %s740_s0 = inlined_call_operand.vmem [shape: bf16[16,1152], index: 0, kind: input, shape index: {}]   ;;  %s741_s1 = inlined_call_operand.vmem [shape: bf16[1152,128], index: 1, kind: input, shape index: {}]   ;;  %s742_s2 = inlined_call_operand.vmem [shape: f32[1,128], index: 2, kind: input, shape index: {}]   ;;  %s743_s3 = inlined_call_operand.vmem [shape: f32[1,128], index: 3, kind: input, shape index: {}]   ;;  %s744_s4 = inlined_call_operand.vmem [shape: bf16[16,128], index: 4, kind: output, shape index: {}]  }
   0x1   :  { %s668_s17 = smov 0   ;;  %s670_s18 = smov 0  }
   0x2   :  { %s672_s19 = smov 0  }
   0x3 LB: > { %s23_s20 = sadd.s32 1, %s632_s18  ;;  %p42_p1 = scmp.ne.s32.totalorder %s624_s16, %s620_s15  ;;  %s636_s19 = sphi %s672_s19, %s14_s19   ;;  %s632_s18 = sphi %s670_s18, %s748_s18   ;;  %s628_s17 = sphi %s668_s17, %s747_s17   ;;  %s624_s16 = sphi %s666_s16, %s746_s16   ;;  %s620_s15 = sphi %s664_s15, %s745_s15  }
   0x4   : > { %p24_p0 = scmp.ge.s32.totalorder %s23_s20, 9  ;;  %p43_p2 = scmp.eq.s32.totalorder %s636_s19, 0 }
   0x5   : > { %s35_s22 = sadd.s32 1, %s624_s16  ;;  %p492_p5 = scmp.ge.s32.totalorder %s636_s19, 9 }
   0x6   : > { %s750_s20 = smov (%p24_p0, %s23_s20), 0  ;;  %p44_p3 = por %p43_p2, %p42_p1 }
   0x7   : > { %s31_s21 = ssub.s32 %s632_s18, %s750_s20  ;;  %168 = sbr.rel (%p492_p5) target bundleno = 18 (0x12), region = 24 }
   0x8   : > { %p33_p4 = scmp.eq.s32.totalorder %s31_s21, 0 }
   0xa   : > { %s699_s23 = scalar_select %p33_p4, %s624_s16, %s35_s22  }
   0xc   : > { %171 = sbr.rel (!%p44_p3) target bundleno = 18 (0x12), region = 28  ;;  %s173_s24 = sand.u32 (%p44_p3), 1, %s624_s16  }
   0xd   : > { %s494_s25 = sshll.u32 (%p44_p3), %s632_s18, 2  ;;  %s493_s26 = sshll.u32 (%p44_p3), %s173_s24, 3 }
   0xe   : > { %s180_s29 = scalar_lea.vmem (%p44_p3), %s740_s0, %s494_s25  ;;  %s175_s30 = scalar_lea.vmem (%p44_p3), [#allocation3], %s493_s26 }
   0xf   : > { %v197_v0 = vld [vmem:[%s180_s29] sm:$0xf] (%p44_p3)  ;;  %v199_v1 = vld [vmem:[%s180_s29 + $0x24] sm:$0xf] (%p44_p3) }
  0x10   : > { %198 = vst [vmem:[%s175_s30] sm:$0xf] (%p44_p3), %v197_v0 }
  0x11   : > { %200 = vst [vmem:[%s175_s30 + $0x4] sm:$0xf] %v199_v1 }
  0x12 PF: > { %p495_p6 = scmp.ge.s32.totalorder %s636_s19, 1  ;;  %p236_p7 = scmp.lt.s32.totalorder %s636_s19, 10 }
  0x14   : > { %p237_p8 = pnand %p495_p6, %p236_p7 }
  0x15   : > { %s243_s5 = sand.u32 (!%p237_p8), 1, %s620_s15   ;;  %s497_s6 = sshll.u32 (!%p237_p8), %s628_s17, 4 }
  0x16   : > { %240 = sbr.rel (%p237_p8) target bundleno = 220 (0xdc), region = 73  ;;  %s496_s7 = sshll.u32 (!%p237_p8), %s243_s5, 3 }
  0x17   : > { %p275_p9 = scmp.lt.s32.totalorder (!%p237_p8), %s497_s6, 143  ;;  %s245_s12 = scalar_lea.vmem (!%p237_p8), [#allocation3], %s496_s7 }
  0x18   : > { %p499_p10 = scmp.ne.s32.totalorder (!%p237_p8), %s628_s17, 0 }
  0x1b   : > { %s752_s6 = smov (!%p275_p9, %s497_s6), 143  ;;  %289 = sbr.rel (%p499_p10) target bundleno = 35 (0x23), region = 81 }
  0x1c   : > { %s498_s8 = sshll.u32 %s752_s6, 2 }
  0x1d   : > { %s278_s11 = scalar_lea.vmem %s741_s1, %s498_s8 }
  0x20   : > { %v638_v2 = vmov 0.0  }
  0x21   : > { %290 = vst [vmem:[#allocation2] sm:$0xff] %v638_v2 }
  0x22   : > { %291 = vst [vmem:[#allocation2 + $0x8] sm:$0xff] %v638_v2 }
  0x23 PF: > { %v549_v3 = vld [vmem:[%s278_s11 + $0x38] sm:$0xff]  ;;  %v548_v4 = vld [vmem:[%s278_s11 + $0x30] sm:$0xff]  ;;  %v547_v5 = vld [vmem:[%s278_s11 + $0x28] sm:$0xff]  ;;  %p536_p11 = scmp.ne.s32.totalorder %s628_s17, 8 }
  0x24   : > { %366 = vmatpush.bf16.msra.mxu0 %v549_v3  ;;  %v546_v6 = vld [vmem:[%s278_s11 + $0x20] sm:$0xff]  ;;  %v545_v7 = vld [vmem:[%s278_s11 + $0x18] sm:$0xff]  ;;  %v544_v8 = vld [vmem:[%s278_s11 + $0x10] sm:$0xff] }
  0x25   : > { %v543_v9 = vld [vmem:[%s278_s11 + $0x8] sm:$0xff]  ;;  %v542_v10 = vld [vmem:[%s278_s11] sm:$0xff]  ;;  %v541_v11 = vld [vmem:[%s245_s12] sm:$0xff] }
  0x28   : > { %367 = vmatpush.bf16.msra.mxu0 %v548_v4  ;;  %v292_v12 = vld [vmem:[#allocation2] sm:$0xff] }
  0x29   : > { %v293_v15 = vld [vmem:[#allocation2 + $0x8] sm:$0xff] }
  0x2c   : > { %368 = vmatpush.bf16.msra.mxu0 %v547_v5 }
  0x30   : > { %369 = vmatpush.bf16.msra.mxu0 %v546_v6 }
  0x34   : > { %370 = vmatpush.bf16.msra.mxu0 %v545_v7 }
  0x38   : > { %371 = vmatpush.bf16.msra.mxu0 %v544_v8 }
  0x3c   : > { %372 = vmatpush.bf16.msra.mxu0 %v543_v9 }
  0x40   : > { %373 = vmatpush.bf16.msra.mxu0 %v542_v10 }
  0x43   : > { %374 = vmatmul.bf16.vlgmr.msra.gmra.mxu0 %v541_v11 }
  0xc0   : > { %v375_v13 = vpop.f32.mrf.mxu0 }
  0xc1   : > { %v380_v14 = vadd.f32 %v375_v13, %v292_v12 }
  0xc3   : > { %382 = vst [vmem:[#allocation2] sm:$0xff] %v380_v14 }
  0xc7   : > { %387 = sbr.rel (%p536_p11) target bundleno = 220 (0xdc), region = 85 }
  0xc8   : > { %v377_v16 = vpop.f32.mrf.mxu0 }
  0xc9   : > { %v381_v17 = vadd.f32 %v377_v16, %v293_v15 }
  0xcb   : > { %383 = vst [vmem:[#allocation2 + $0x8] sm:$0xff] %v381_v17 }
  0xcc   : > { %v388_v18 = vld [vmem:[#allocation2] sm:$0xff] }
  0xcd   : > { %v596_v20 = vld [vmem:[%s742_s2] ss:$0 sm:$0xff] }
  0xce   : > { %v597_v21 = vld [vmem:[%s743_s3] ss:$0 sm:$0xff]  ;;  %v394_v22 = vmul.f32 %v596_v20, %v388_v18 }
  0xd0   : > { %v400_v24 = vadd.f32 %v597_v21, %v394_v22 }
  0xd2   : > { %v389_v19 = vld [vmem:[#allocation2 + $0x8] sm:$0xff]  ;;  %v402_v26 = vmax.f32 %v400_v24, 0.0 }
  0xd3   : > { %v395_v23 = vmul.f32 %v596_v20, %v389_v19 }
  0xd5   : > { %v401_v25 = vadd.f32 %v597_v21, %v395_v23 }
  0xd7   : > { %v403_v27 = vmax.f32 %v401_v25, 0.0 }
  0xd9   : > { %v553_v28 = vpack.c.bf16 %v403_v27, %v402_v26 }
  0xdb   : > { %554 = vst [vmem:[%s744_s4] sm:$0xff] %v553_v28  }
  0xdc PF: > { %s14_s19 = sadd.s32 1, %s636_s19   ;;  %s745_s15 = smov %s624_s16 }
  0xdd   : > { %p11_p12 = scmp.ge.s32.totalorder %s14_s19, 11   ;;  %s746_s16 = smov %s699_s23 }
  0xde   : > { %s747_s17 = smov %s632_s18  ;;  %s748_s18 = smov %s750_s20 }
  0xdf   :  { %13 = sbr.rel (!%p11_p12) target bundleno = 3 (0x3), region = 123 }

// kernel: feature_extractor_forward.76
= control target key start
LH: loop header
LB: loop body
LE: loop exit
PB: predicated region body
PF: predicated region fallthrough
CT: control target
= control target key end

     0   :  { %9 = vsyncpa [#allocation4], 0  ;;  %s363_s18 = smov [#allocation3]   ;;  %s458_s0 = inlined_call_operand.vmem [shape: bf16[16,256], index: 0, kind: input, shape index: {}]   ;;  %s459_s1 = inlined_call_operand.vmem [shape: bf16[256,128], index: 1, kind: input, shape index: {}]   ;;  %s460_s2 = inlined_call_operand.vmem [shape: f32[1,128], index: 2, kind: input, shape index: {}]   ;;  %s461_s3 = inlined_call_operand.hbm [shape: f32[1,128], index: 3, kind: input, shape index: {}]   ;;  %s462_s4 = inlined_call_operand.vmem [shape: bf16[16,128], index: 4, kind: output, shape index: {}]  }
   0x1   :  { %s21_s17 = sshll.u32 %s461_s3, 4  ;;  %s23_s19 = sshll.u32 %s363_s18, 4  ;;  %s22_s17 = int_to_ptr.hbm [resolvable:$true] %s21_s17  ;;  %s24_s19 = int_to_ptr.vmem [resolvable:$true] %s23_s19 }
   0x2   :  { %26 = dma.hbm_to_vmem [thread:$0]  %s22_s17, 16, %s24_s19, [#allocation4]  }
   0x3   :  { %361 = dma.done.wait [#allocation4], 16  }
   0x4   :  { %362 = vsyncadd [#allocation4], 4294967280  ;;  %v320_v0 = vld [vmem:[%s459_s1 + $0x38] sm:$0xff]  ;;  %v319_v2 = vld [vmem:[%s459_s1 + $0x30] sm:$0xff] }
   0x5   :  { %v328_v1 = vld [vmem:[%s459_s1 + $0x78] sm:$0xff]  ;;  %179 = vmatpush.bf16.msra.mxu0 %v320_v0  ;;  %v327_v3 = vld [vmem:[%s459_s1 + $0x70] sm:$0xff]  ;;  %v318_v4 = vld [vmem:[%s459_s1 + $0x28] sm:$0xff] }
   0x6   :  { %193 = vmatpush.bf16.msra.mxu1 %v328_v1  ;;  %v326_v5 = vld [vmem:[%s459_s1 + $0x68] sm:$0xff]  ;;  %v317_v6 = vld [vmem:[%s459_s1 + $0x20] sm:$0xff]  ;;  %v316_v8 = vld [vmem:[%s459_s1 + $0x18] sm:$0xff] }
   0x7   :  { %v325_v7 = vld [vmem:[%s459_s1 + $0x60] sm:$0xff]  ;;  %v324_v9 = vld [vmem:[%s459_s1 + $0x58] sm:$0xff]  ;;  %v315_v10 = vld [vmem:[%s459_s1 + $0x10] sm:$0xff] }
   0x8   :  { %v323_v11 = vld [vmem:[%s459_s1 + $0x50] sm:$0xff]  ;;  %v314_v12 = vld [vmem:[%s459_s1 + $0x8] sm:$0xff]  ;;  %v313_v14 = vld [vmem:[%s459_s1] sm:$0xff] }
   0x9   :  { %180 = vmatpush.bf16.msra.mxu0 %v319_v2  ;;  %v322_v13 = vld [vmem:[%s459_s1 + $0x48] sm:$0xff]  ;;  %v321_v15 = vld [vmem:[%s459_s1 + $0x40] sm:$0xff] }
   0xa   :  { %194 = vmatpush.bf16.msra.mxu1 %v327_v3  ;;  %v241_v16 = vld [vmem:[%s458_s0] sm:$0xf]  ;;  %v312_v17 = vld [vmem:[%s458_s0 + $0x4] sm:$0xf0]  ;;  %v311_v18 = vld [vmem:[%s458_s0 + $0x4] sm:$0xf] }
   0xb   :  { %v243_v19 = vld [vmem:[%s458_s0 + $0x8] sm:$0xf0]  ;;  %v242_v20 = vor.u32 %v312_v17, %v241_v16  ;;  %v335_v25 = vld [vmem:[%s460_s2] ss:$0 sm:$0xff] }
   0xc   :  { %v246_v21 = vor.u32 %v311_v18, %v243_v19  ;;  %v336_v27 = vld [vmem:[#allocation3] ss:$0 sm:$0xff] }
   0xd   :  { %181 = vmatpush.bf16.msra.mxu0 %v318_v4 }
   0xe   :  { %195 = vmatpush.bf16.msra.mxu1 %v326_v5 }
  0x11   :  { %182 = vmatpush.bf16.msra.mxu0 %v317_v6 }
  0x12   :  { %196 = vmatpush.bf16.msra.mxu1 %v325_v7 }
  0x15   :  { %183 = vmatpush.bf16.msra.mxu0 %v316_v8 }
  0x16   :  { %197 = vmatpush.bf16.msra.mxu1 %v324_v9 }
  0x19   :  { %184 = vmatpush.bf16.msra.mxu0 %v315_v10 }
  0x1a   :  { %198 = vmatpush.bf16.msra.mxu1 %v323_v11 }
  0x1d   :  { %185 = vmatpush.bf16.msra.mxu0 %v314_v12 }
  0x1e   :  { %199 = vmatpush.bf16.msra.mxu1 %v322_v13 }
  0x21   :  { %186 = vmatpush.bf16.msra.mxu0 %v313_v14 }
  0x22   :  { %200 = vmatpush.bf16.msra.mxu1 %v321_v15 }
  0x24   :  { %187 = vmatmul.bf16.vlgmr.msra.gmra.mxu0 %v242_v20 }
  0x25   :  { %201 = vmatmul.bf16.vlgmr.msra.gmra.mxu1 %v246_v21 }
  0xa1   :  { %v188_v22 = vpop.f32.mrf.mxu0 }
  0xa2   :  { %v202_v23 = vpop.f32.mrf.mxu1 }
  0xa3   :  { %v203_v24 = vadd.f32 %v202_v23, %v188_v22 }
  0xa5   :  { %v220_v26 = vmul.f32 %v335_v25, %v203_v24 }
  0xa7   :  { %v226_v31 = vadd.f32 %v336_v27, %v220_v26 }
  0xa9   :  { %v190_v28 = vpop.f32.mrf.mxu0  ;;  %v228_v34 = vmax.f32 %v226_v31, 0.0 }
  0xaa   :  { %v204_v29 = vpop.f32.mrf.mxu1 }
  0xab   :  { %v205_v30 = vadd.f32 %v204_v29, %v190_v28 }
  0xad   :  { %v221_v32 = vmul.f32 %v335_v25, %v205_v30 }
  0xaf   :  { %v227_v33 = vadd.f32 %v336_v27, %v221_v32 }
  0xb1   :  { %v229_v35 = vmax.f32 %v227_v33, 0.0 }
  0xb3   :  { %v332_v36 = vpack.c.bf16 %v229_v35, %v228_v34 }
  0xb5   :  { %333 = vst [vmem:[%s462_s4] sm:$0xff] %v332_v36  }
  0xb6   :  { %238 = vsyncpa [#allocation4], 1 }

</bundles_post_ra>
